<compile_context>
chip_gen: v7x
topology: tpu7x:2x2x1
jax: 0.10.0
libtpu: 0.0.40
codegen_flags: <defaults>
</compile_context>

<pallas_src>
import functools

import jax
import jax.numpy as jnp
import numpy as np
from jax.experimental import pallas as pl
from jax.experimental.pallas import tpu as pltpu

# aggregation codes per feature channel: 0 = max, 1 = min, 2 = mean
AGG_MAX, AGG_MIN, AGG_MEAN = 0, 1, 2


def _vdw_kernel(grid_ref, atoms_ref, mmat_ref, out_ref, acc_ref, *, agg_codes):
    # grid_ref : (3, tm)            voxel coordinates (voxels on lanes)
    # atoms_ref: (1, tn, 4+F)       current atom tile (atoms on sublanes)
    # mmat_ref : (1, 8, tn)         mean-feature rows + ones row (MXU lhs)
    # out_ref  : (1, 8, tm)         features + count + zero padding, lane-dense
    # acc_ref  : (8, tm) VMEM       running max / min / sum / count accumulators
    F = len(agg_codes)
    rows, tm = acc_ref.shape
    k = pl.program_id(2)

    def _row_ids():
        return jax.lax.broadcasted_iota(jnp.int32, (rows, tm), 0)

    @pl.when(k == 0)
    def _init():
        row_id = _row_ids()
        init = jnp.zeros((rows, tm), jnp.float32)
        for ch, code in enumerate(agg_codes):
            if code == AGG_MAX:
                init = jnp.where(row_id == ch, -jnp.inf, init)
            elif code == AGG_MIN:
                init = jnp.where(row_id == ch, jnp.inf, init)
        acc_ref[...] = init               # mean/count/pad rows start at 0

    g = grid_ref[...]                     # (3, tm)
    atoms = atoms_ref[0]                  # (tn, 4+F)
    gx, gy, gz = g[0:1, :], g[1:2, :], g[2:3, :]
    ax, ay, az = atoms[:, 0:1], atoms[:, 1:2], atoms[:, 2:3]
    r2 = atoms[:, 3:4]                    # (tn, 1)

    # Direct squared-difference distance on the VPU (exact; keeps count bit-exact).
    dx = gx - ax
    dy = gy - ay
    dz = gz - az
    d2 = dx * dx + dy * dy + dz * dz      # (tn, tm)

    # NaN-padded atoms / NaN radii compare False -> excluded everywhere below.
    mask = d2 <= r2                       # (tn, tm) bool
    maskf = mask.astype(jnp.float32)

    # MXU offload: mean-channel sums + occupancy count in one matmul.  mmat rows are
    # zero for non-mean channels, so the '+ sums' below is an exact no-op there.
    # HIGHEST precision keeps mean sums f32-accurate; count is exact in any precision.
    sums = jnp.dot(mmat_ref[0], maskf,
                   preferred_element_type=jnp.float32,
                   precision=jax.lax.Precision.HIGHEST)   # (rows, tm)
    acc_ref[...] = acc_ref[...] + sums

    # Max / min channels: compare-select masking (NaN-safe), cross-sublane reduce,
    # then a running-accumulator update (static row slices of the VMEM scratch).
    neg_inf = jnp.float32(-jnp.inf)
    pos_inf = jnp.float32(jnp.inf)
    for ch, code in enumerate(agg_codes):
        if code == AGG_MEAN:
            continue                      # handled by the MXU sums above
        fch = atoms[:, 4 + ch:5 + ch]     # (tn, 1)
        if code == AGG_MAX:
            red = jnp.max(jnp.where(mask, fch, neg_inf), axis=0, keepdims=True)
            acc_ref[ch:ch + 1, :] = jnp.maximum(acc_ref[ch:ch + 1, :], red)
        else:
            red = jnp.min(jnp.where(mask, fch, pos_inf), axis=0, keepdims=True)
            acc_ref[ch:ch + 1, :] = jnp.minimum(acc_ref[ch:ch + 1, :], red)

    @pl.when(k == pl.num_programs(2) - 1)
    def _finalize():
        acc = acc_ref[...]                # (rows, tm)
        count = acc[F:F + 1, :]           # (1, tm)
        occupied = count > 0.0
        # exact reciprocal: approx=True (EUP) would violate the 1e-5 verification rtol
        inv = pl.reciprocal(jnp.maximum(count, 1.0), approx=False)
        row_id = _row_ids()
        is_mean = row_id == -1            # all-False start
        for ch, code in enumerate(agg_codes):
            if code == AGG_MEAN:
                is_mean = is_mean | (row_id == ch)
        scale = jnp.where(is_mean, inv, 1.0)          # divide only the mean rows
        # count row scales by 1 and is 0 when unoccupied; pad rows stay 0.
        out_ref[0] = jnp.where(occupied, acc * scale, 0.0)   # single (8, tm) store


def van_der_waals_surface(coordinates_radii, features, *, volume=16, voxel_size=1,
                          agg_codes=(AGG_MAX, AGG_MIN, AGG_MEAN, AGG_MAX),
                          tile_m=2048, atom_tile=256):
    """Dense Pallas implementation of VanDerWallsSurface.forward."""
    B, N, _ = coordinates_radii.shape
    F = features.shape[-1]
    assert F == len(agg_codes)
    C = 4 + F
    out_rows = max(8, -(-(F + 1) // 8) * 8)           # F features + count, 8-sublane padded

    # --- voxel grid (make_grid equivalent) ---
    ext = jnp.arange(0, volume, voxel_size, dtype=jnp.float32)
    mx, my, mz = jnp.meshgrid(ext, ext, ext, indexing='ij')
    grid_coords = jnp.stack([mx.ravel(), my.ravel(), mz.ravel()], axis=1)   # (G, 3)
    G = grid_coords.shape[0]
    grid_t = grid_coords.T                                                  # (3, G)

    # --- atom tiling (innermost "arbitrary" grid axis) ---
    np8 = max(8, -(-N // 8) * 8)
    if np8 <= atom_tile:
        tn = np8                               # single tile (any sublane multiple)
    else:
        tn = max(128, (atom_tile // 128) * 128)  # lane multiple required once tiled
    n_at = -(-np8 // tn)
    Np = n_at * tn

    # --- voxel tile: as large as possible (amortizes ~0.35us/step pipeline overhead),
    # capped so ~8 live (tn, tm) f32 temporaries stay well inside VMEM on every
    # generation (v7x: 64 MiB/TC physical).  Sweepable via tile_m {1024, 2048, 4096}. ---
    live_temps = 8
    temp_budget = 20 * 1024 * 1024
    tm_cap = max(128, (temp_budget // (live_temps * tn * 4)) // 128 * 128)
    if G % 128 == 0:
        tm = max(128, (min(tile_m, G, tm_cap) // 128) * 128)
        while G % tm:
            tm -= 128
        # keep at least two (batch, voxel-tile) pairs so both v7x TensorCores get work
        while (B * (G // tm) < 2 and tm >= 256
               and (tm // 2) % 128 == 0 and G % (tm // 2) == 0):
            tm //= 2
    else:
        tm = G

    # --- atom table ---
    coords = coordinates_radii[:, :, :3].astype(jnp.float32)               # (B, N, 3)
    radii = coordinates_radii[:, :, 3].astype(jnp.float32)
    radii = jnp.round(radii * 1e3) / 1e3                                    # torch.round trick
    r2 = (radii * radii)[:, :, None]                                        # (B, N, 1)
    feats = jnp.nan_to_num(features.astype(jnp.float32))                    # (B, N, F)
    atoms = jnp.concatenate([coords, r2, feats], axis=-1)                   # (B, N, C)
    if Np != N:
        atoms = jnp.concatenate(
            [atoms, jnp.full((B, Np - N, C), jnp.nan, jnp.float32)], axis=1)

    # --- MXU lhs: row ch = mean-channel features, row F = ones (count), rest zero.
    # Padded / NaN atoms contribute 0 because their mask column is 0 (and rows are finite).
    mmat = jnp.zeros((B, out_rows, Np), jnp.float32)
    for ch, code in enumerate(agg_codes):
        if code == AGG_MEAN:
            mmat = mmat.at[:, ch, :N].set(feats[:, :, ch])
    mmat = mmat.at[:, F, :N].set(1.0)

    kernel = functools.partial(_vdw_kernel, agg_codes=tuple(agg_codes))

    grid_spec = pltpu.PrefetchScalarGridSpec(
        num_scalar_prefetch=0,
        grid=(B, G // tm, n_at),
        in_specs=[
            pl.BlockSpec((3, tm), lambda b, i, k: (0, i)),            # voxels on lanes
            pl.BlockSpec((1, tn, C), lambda b, i, k: (b, k, 0)),      # atom tile
            pl.BlockSpec((1, out_rows, tn), lambda b, i, k: (b, 0, k)),
        ],
        out_specs=pl.BlockSpec((1, out_rows, tm), lambda b, i, k: (b, 0, i)),
        scratch_shapes=[pltpu.VMEM((out_rows, tm), jnp.float32)],     # running accumulators
    )

    packed = pl.pallas_call(
        kernel,
        out_shape=jax.ShapeDtypeStruct((B, out_rows, G), jnp.float32),
        grid_spec=grid_spec,
        compiler_params=pltpu.CompilerParams(
            dimension_semantics=("parallel", "parallel", "arbitrary"),
            # below v7x's 64 MiB/TC; raises the conservative v5e/v6e scoped defaults
            vmem_limit_bytes=48 * 1024 * 1024),
    )(grid_t, atoms, mmat)

    # layout plumbing back to the (B, G, F) API view (outside the kernel)
    vol_feats = jnp.transpose(packed[:, :F, :], (0, 2, 1))                  # (B, G, F)
    vol_count = jnp.transpose(packed[:, F:F + 1, :], (0, 2, 1))             # (B, G, 1)
    return grid_coords, vol_feats, vol_count


def _reference(grid_coords, coordinates_radii, features, agg_codes):
    """Pure-JAX dense reference (no matmuls, no MXU-precision ambiguity)."""
    coords = coordinates_radii[:, :, :3].astype(jnp.float32)
    radii = jnp.round(coordinates_radii[:, :, 3].astype(jnp.float32) * 1e3) / 1e3
    r2 = (radii * radii)[:, None, :]                                     # (B,1,N)
    feats = jnp.nan_to_num(features.astype(jnp.float32))                 # (B,N,F)

    diff = grid_coords[None, :, None, :] - coords[:, None, :, :]         # (B,G,N,3)
    d2 = diff[..., 0] ** 2 + diff[..., 1] ** 2 + diff[..., 2] ** 2       # (B,G,N)
    mask = d2 <= r2                                                      # (B,G,N)
    maskf = mask.astype(jnp.float32)
    count = jnp.sum(maskf, axis=-1, keepdims=True)                       # (B,G,1)

    fb = feats[:, None, :, :]                                            # (B,1,N,F)
    m4 = mask[:, :, :, None]
    sum_all = jnp.sum(jnp.where(m4, fb, 0.0), axis=2)
    mean_all = sum_all / jnp.maximum(count, 1.0)
    max_all = jnp.max(jnp.where(m4, fb, -jnp.inf), axis=2)
    min_all = jnp.min(jnp.where(m4, fb, jnp.inf), axis=2)

    cols = []
    for ch, code in enumerate(agg_codes):
        if code == AGG_MAX:
            cols.append(max_all[..., ch])
        elif code == AGG_MIN:
            cols.append(min_all[..., ch])
        else:
            cols.append(mean_all[..., ch])
    out = jnp.stack(cols, axis=-1)
    out = jnp.where(count > 0.0, out, 0.0)
    return out, count


if __name__ == "__main__":
    agg_codes = (AGG_MAX, AGG_MIN, AGG_MEAN, AGG_MAX)

    def make_inputs(key, B, N, F, volume, n_nan_last):
        k1, k2, k3 = jax.random.split(key, 3)
        xyz = jax.random.uniform(k1, (B, N, 3), minval=1.5, maxval=float(volume) - 1.5)
        rad = jax.random.choice(k2, jnp.array([1.5, 1.8, 2.0], jnp.float32),
                                shape=(B, N, 1))
        cr = jnp.concatenate([xyz, rad], axis=-1)                        # (B, N, 4)
        feats = jax.random.normal(k3, (B, N, F), dtype=jnp.float32)
        if n_nan_last:  # variable-length structures via NaN padding (as in the module)
            nan_mask = jnp.zeros((B, N, 1), bool).at[-1, -n_nan_last:, 0].set(True)
            cr = jnp.where(nan_mask, jnp.nan, cr)
            feats = jnp.where(nan_mask, jnp.nan, feats)
        return cr, feats

    def check(volume, cr, feats, **kw):
        grid_coords, vol_feats, vol_count = van_der_waals_surface(
            cr, feats, volume=volume, voxel_size=1, agg_codes=agg_codes, **kw)
        jax.block_until_ready((vol_feats, vol_count))
        ref_feats, ref_count = _reference(grid_coords, cr, feats, agg_codes)
        np.testing.assert_allclose(np.asarray(vol_count), np.asarray(ref_count), atol=0)
        np.testing.assert_allclose(np.asarray(vol_feats), np.asarray(ref_feats),
                                   rtol=1e-5, atol=1e-4)

    key = jax.random.PRNGKey(0)
    k1, k2 = jax.random.split(key)

    # Case 1: B=2 structures, N=32 atoms (4 NaN-padded), F=4 channels, 16^3 voxel grid.
    cr, feats = make_inputs(k1, 2, 32, 4, 16, 4)
    check(16, cr, feats, tile_m=2048)

    # Case 2: exercises the atom-tile accumulation axis (N=200 -> two tiles of 128)
    # and the both-TensorCores tile split on an 8^3 grid.
    cr2, feats2 = make_inputs(k2, 1, 200, 4, 8, 8)
    check(8, cr2, feats2, tile_m=2048, atom_tile=128)

    # TODO(synk): the ME.SparseTensor wrapping and the per-atom voxel-index lists
    # (atom2voxels) are host-side sparse bookkeeping with no Pallas equivalent; the
    # dense (features, occupancy-count) grids above carry the same information.
    print("KERNEL_OK")
</pallas_src>

<mosaic_0001>
module attributes {stable_mosaic.version = 11 : i64} {
  func.func @_vdw_kernel(%arg0: i32, %arg1: i32, %arg2: i32, %arg3: memref<3x2048xf32, #tpu.memory_space<vmem>>, %arg4: memref<1x32x8xf32, #tpu.memory_space<vmem>>, %arg5: memref<1x8x32xf32, #tpu.memory_space<vmem>>, %arg6: memref<1x8x2048xf32, #tpu.memory_space<vmem>>, %arg7: memref<8x2048xf32, #tpu.memory_space<vmem>>) attributes {dimension_semantics = [#tpu.dimension_semantics<parallel>, #tpu.dimension_semantics<parallel>, #tpu.dimension_semantics<arbitrary>], iteration_bounds = array<i64: 2, 2, 1>, scalar_prefetch = 0 : i64, scratch_operands = 1 : i64, tpu.core_type = #tpu.core_type<tc>, window_params = [{transform_indices = @transform_0, window_bounds = array<i64: 3, 2048>}, {transform_indices = @transform_1, window_bounds = array<i64: 1, 32, 8>}, {transform_indices = @transform_2, window_bounds = array<i64: 1, 8, 32>}, {transform_indices = @transform_3, window_bounds = array<i64: 1, 8, 2048>}]} {
    %c0_i32 = arith.constant 0 : i32
    %0 = arith.cmpi eq, %arg2, %c0_i32 : i32
    %1 = arith.extui %0 : i1 to i32
    %c0_i32_0 = arith.constant 0 : i32
    %2 = arith.cmpi ne, %1, %c0_i32_0 : i32
    scf.if %2 {
      %70 = tpu.iota {dimensions = array<i32: 0>} : vector<8x2048xi32>
      %cst_30 = arith.constant 0.000000e+00 : f32
      %71 = vector.broadcast %cst_30 : f32 to vector<8x2048xf32>
      %c0_i32_31 = arith.constant 0 : i32
      %72 = vector.broadcast %c0_i32_31 : i32 to vector<8x2048xi32>
      %73 = arith.cmpi eq, %70, %72 : vector<8x2048xi32>
      %cst_32 = arith.constant 0xFF800000 : f32
      %74 = vector.broadcast %cst_32 : f32 to vector<8x2048xf32>
      %75 = arith.select %73, %74, %71 : vector<8x2048xi1>, vector<8x2048xf32>
      %c1_i32 = arith.constant 1 : i32
      %76 = vector.broadcast %c1_i32 : i32 to vector<8x2048xi32>
      %77 = arith.cmpi eq, %70, %76 : vector<8x2048xi32>
      %cst_33 = arith.constant 0x7F800000 : f32
      %78 = vector.broadcast %cst_33 : f32 to vector<8x2048xf32>
      %79 = arith.select %77, %78, %75 : vector<8x2048xi1>, vector<8x2048xf32>
      %c3_i32 = arith.constant 3 : i32
      %80 = vector.broadcast %c3_i32 : i32 to vector<8x2048xi32>
      %81 = arith.cmpi eq, %70, %80 : vector<8x2048xi32>
      %cst_34 = arith.constant 0xFF800000 : f32
      %82 = vector.broadcast %cst_34 : f32 to vector<8x2048xf32>
      %83 = arith.select %81, %82, %79 : vector<8x2048xi1>, vector<8x2048xf32>
      %c0_35 = arith.constant 0 : index
      %c0_36 = arith.constant 0 : index
      %84 = vector.load %arg7[%c0_35, %c0_36] : memref<8x2048xf32, #tpu.memory_space<vmem>>, vector<8x2048xf32>
      tpu.vector_store %arg7[%c0_35, %c0_36], %83 {strides = array<i32>} : memref<8x2048xf32, #tpu.memory_space<vmem>>, vector<8x2048xf32>,
    } else {
    }
    %c0 = arith.constant 0 : index
    %c0_1 = arith.constant 0 : index
    %3 = vector.load %arg3[%c0, %c0_1] : memref<3x2048xf32, #tpu.memory_space<vmem>>, vector<3x2048xf32>
    %c0_2 = arith.constant 0 : index
    %c0_3 = arith.constant 0 : index
    %c0_4 = arith.constant 0 : index
    %4 = vector.load %arg4[%c0_2, %c0_3, %c0_4] : memref<1x32x8xf32, #tpu.memory_space<vmem>>, vector<1x32x8xf32>
    %5 = vector.shape_cast %4 : vector<1x32x8xf32> to vector<32x8xf32>
    %6 = vector.extract_strided_slice %3 {offsets = [0, 0], sizes = [1, 2048], strides = [1, 1]} : vector<3x2048xf32> to vector<1x2048xf32>
    %7 = vector.extract_strided_slice %3 {offsets = [1, 0], sizes = [1, 2048], strides = [1, 1]} : vector<3x2048xf32> to vector<1x2048xf32>
    %8 = vector.extract_strided_slice %3 {offsets = [2, 0], sizes = [1, 2048], strides = [1, 1]} : vector<3x2048xf32> to vector<1x2048xf32>
    %9 = vector.extract_strided_slice %5 {offsets = [0, 0], sizes = [32, 1], strides = [1, 1]} : vector<32x8xf32> to vector<32x1xf32>
    %10 = vector.extract_strided_slice %5 {offsets = [0, 1], sizes = [32, 1], strides = [1, 1]} : vector<32x8xf32> to vector<32x1xf32>
    %11 = vector.extract_strided_slice %5 {offsets = [0, 2], sizes = [32, 1], strides = [1, 1]} : vector<32x8xf32> to vector<32x1xf32>
    %12 = vector.extract_strided_slice %5 {offsets = [0, 3], sizes = [32, 1], strides = [1, 1]} : vector<32x8xf32> to vector<32x1xf32>
    %13 = vector.broadcast %6 : vector<1x2048xf32> to vector<32x2048xf32>
    %14 = vector.broadcast %9 : vector<32x1xf32> to vector<32x2048xf32>
    %15 = arith.subf %13, %14 : vector<32x2048xf32>
    %16 = vector.broadcast %7 : vector<1x2048xf32> to vector<32x2048xf32>
    %17 = vector.broadcast %10 : vector<32x1xf32> to vector<32x2048xf32>
    %18 = arith.subf %16, %17 : vector<32x2048xf32>
    %19 = vector.broadcast %8 : vector<1x2048xf32> to vector<32x2048xf32>
    %20 = vector.broadcast %11 : vector<32x1xf32> to vector<32x2048xf32>
    %21 = arith.subf %19, %20 : vector<32x2048xf32>
    %22 = arith.mulf %15, %15 : vector<32x2048xf32>
    %23 = arith.mulf %18, %18 : vector<32x2048xf32>
    %24 = arith.addf %22, %23 : vector<32x2048xf32>
    %25 = arith.mulf %21, %21 : vector<32x2048xf32>
    %26 = arith.addf %24, %25 : vector<32x2048xf32>
    %27 = vector.broadcast %12 : vector<32x1xf32> to vector<32x2048xf32>
    %28 = arith.cmpf ole, %26, %27 : vector<32x2048xf32>
    %29 = arith.extui %28 : vector<32x2048xi1> to vector<32x2048xi32>
    %30 = arith.sitofp %29 : vector<32x2048xi32> to vector<32x2048xf32>
    %c0_5 = arith.constant 0 : index
    %c0_6 = arith.constant 0 : index
    %c0_7 = arith.constant 0 : index
    %31 = vector.load %arg5[%c0_5, %c0_6, %c0_7] : memref<1x8x32xf32, #tpu.memory_space<vmem>>, vector<1x8x32xf32>
    %32 = vector.shape_cast %31 : vector<1x8x32xf32> to vector<8x32xf32>
    %cst = arith.constant dense<0.000000e+00> : vector<8x2048xf32>
    %33 = tpu.matmul %32, %30, %cst {dimension_numbers = #tpu.dot_dimension_numbers<[1], [0], [0], [1], [0, 0, 1, 1], [], []>, precision = #tpu.contract_precision<fp32>} : vector<8x32xf32>, vector<32x2048xf32>, vector<8x2048xf32> -> vector<8x2048xf32>
    %c0_8 = arith.constant 0 : index
    %c0_9 = arith.constant 0 : index
    %34 = vector.load %arg7[%c0_8, %c0_9] : memref<8x2048xf32, #tpu.memory_space<vmem>>, vector<8x2048xf32>
    %35 = arith.addf %34, %33 : vector<8x2048xf32>
    %c0_10 = arith.constant 0 : index
    %c0_11 = arith.constant 0 : index
    %36 = vector.load %arg7[%c0_10, %c0_11] : memref<8x2048xf32, #tpu.memory_space<vmem>>, vector<8x2048xf32>
    tpu.vector_store %arg7[%c0_10, %c0_11], %35 {strides = array<i32>} : memref<8x2048xf32, #tpu.memory_space<vmem>>, vector<8x2048xf32>,
    %37 = vector.extract_strided_slice %5 {offsets = [0, 4], sizes = [32, 1], strides = [1, 1]} : vector<32x8xf32> to vector<32x1xf32>
    %cst_12 = arith.constant 0xFF800000 : f32
    %38 = vector.shape_cast %37 : vector<32x1xf32> to vector<32x1xf32>
    %39 = vector.broadcast %38 : vector<32x1xf32> to vector<32x2048xf32>
    %40 = vector.broadcast %cst_12 : f32 to vector<32x2048xf32>
    %41 = arith.select %28, %39, %40 : vector<32x2048xi1>, vector<32x2048xf32>
    %cst_13 = arith.constant dense<0xFF800000> : vector<2048xf32>
    %42 = vector.multi_reduction <maximumf>, %41, %cst_13 [0] : vector<32x2048xf32> to vector<2048xf32>
    %43 = vector.shape_cast %42 : vector<2048xf32> to vector<1x2048xf32>
    %c0_14 = arith.constant 0 : index
    %c0_15 = arith.constant 0 : index
    %44 = vector.load %arg7[%c0_14, %c0_15] : memref<8x2048xf32, #tpu.memory_space<vmem>>, vector<1x2048xf32>
    %45 = arith.maximumf %44, %43 : vector<1x2048xf32>
    %c0_16 = arith.constant 0 : index
    %c0_17 = arith.constant 0 : index
    %46 = vector.load %arg7[%c0_16, %c0_17] : memref<8x2048xf32, #tpu.memory_space<vmem>>, vector<1x2048xf32>
    tpu.vector_store %arg7[%c0_16, %c0_17], %45 {strides = array<i32>} : memref<8x2048xf32, #tpu.memory_space<vmem>>, vector<1x2048xf32>,
    %47 = vector.extract_strided_slice %5 {offsets = [0, 5], sizes = [32, 1], strides = [1, 1]} : vector<32x8xf32> to vector<32x1xf32>
    %cst_18 = arith.constant 0x7F800000 : f32
    %48 = vector.shape_cast %47 : vector<32x1xf32> to vector<32x1xf32>
    %49 = vector.broadcast %48 : vector<32x1xf32> to vector<32x2048xf32>
    %50 = vector.broadcast %cst_18 : f32 to vector<32x2048xf32>
    %51 = arith.select %28, %49, %50 : vector<32x2048xi1>, vector<32x2048xf32>
    %cst_19 = arith.constant dense<0x7F800000> : vector<2048xf32>
    %52 = vector.multi_reduction <minimumf>, %51, %cst_19 [0] : vector<32x2048xf32> to vector<2048xf32>
    %53 = vector.shape_cast %52 : vector<2048xf32> to vector<1x2048xf32>
    %c1 = arith.constant 1 : index
    %c0_20 = arith.constant 0 : index
    %54 = vector.load %arg7[%c1, %c0_20] : memref<8x2048xf32, #tpu.memory_space<vmem>>, vector<1x2048xf32>
    %55 = arith.minimumf %54, %53 : vector<1x2048xf32>
    %c1_21 = arith.constant 1 : index
    %c0_22 = arith.constant 0 : index
    %56 = vector.load %arg7[%c1_21, %c0_22] : memref<8x2048xf32, #tpu.memory_space<vmem>>, vector<1x2048xf32>
    tpu.vector_store %arg7[%c1_21, %c0_22], %55 {strides = array<i32>} : memref<8x2048xf32, #tpu.memory_space<vmem>>, vector<1x2048xf32>,
    %57 = vector.extract_strided_slice %5 {offsets = [0, 7], sizes = [32, 1], strides = [1, 1]} : vector<32x8xf32> to vector<32x1xf32>
    %cst_23 = arith.constant 0xFF800000 : f32
    %58 = vector.shape_cast %57 : vector<32x1xf32> to vector<32x1xf32>
    %59 = vector.broadcast %58 : vector<32x1xf32> to vector<32x2048xf32>
    %60 = vector.broadcast %cst_23 : f32 to vector<32x2048xf32>
    %61 = arith.select %28, %59, %60 : vector<32x2048xi1>, vector<32x2048xf32>
    %cst_24 = arith.constant dense<0xFF800000> : vector<2048xf32>
    %62 = vector.multi_reduction <maximumf>, %61, %cst_24 [0] : vector<32x2048xf32> to vector<2048xf32>
    %63 = vector.shape_cast %62 : vector<2048xf32> to vector<1x2048xf32>
    %c3 = arith.constant 3 : index
    %c0_25 = arith.constant 0 : index
    %64 = vector.load %arg7[%c3, %c0_25] : memref<8x2048xf32, #tpu.memory_space<vmem>>, vector<1x2048xf32>
    %65 = arith.maximumf %64, %63 : vector<1x2048xf32>
    %c3_26 = arith.constant 3 : index
    %c0_27 = arith.constant 0 : index
    %66 = vector.load %arg7[%c3_26, %c0_27] : memref<8x2048xf32, #tpu.memory_space<vmem>>, vector<1x2048xf32>
    tpu.vector_store %arg7[%c3_26, %c0_27], %65 {strides = array<i32>} : memref<8x2048xf32, #tpu.memory_space<vmem>>, vector<1x2048xf32>,
    %c0_i32_28 = arith.constant 0 : i32
    %67 = arith.cmpi eq, %arg2, %c0_i32_28 : i32
    %68 = arith.extui %67 : i1 to i32
    %c0_i32_29 = arith.constant 0 : i32
    %69 = arith.cmpi ne, %68, %c0_i32_29 : i32
    scf.if %69 {
      %c0_30 = arith.constant 0 : index
      %c0_31 = arith.constant 0 : index
      %70 = vector.load %arg7[%c0_30, %c0_31] : memref<8x2048xf32, #tpu.memory_space<vmem>>, vector<8x2048xf32>
      %71 = vector.extract_strided_slice %70 {offsets = [4, 0], sizes = [1, 2048], strides = [1, 1]} : vector<8x2048xf32> to vector<1x2048xf32>
      %cst_32 = arith.constant 0.000000e+00 : f32
      %72 = vector.broadcast %cst_32 : f32 to vector<1x2048xf32>
      %73 = arith.cmpf ogt, %71, %72 : vector<1x2048xf32>
      %cst_33 = arith.constant 1.000000e+00 : f32
      %74 = vector.broadcast %cst_33 : f32 to vector<1x2048xf32>
      %75 = arith.maximumf %71, %74 : vector<1x2048xf32>
      %76 = tpu.reciprocal %75 : vector<1x2048xf32> -> vector<1x2048xf32>
      %77 = tpu.iota {dimensions = array<i32: 0>} : vector<8x2048xi32>
      %c-1_i32 = arith.constant -1 : i32
      %78 = vector.broadcast %c-1_i32 : i32 to vector<8x2048xi32>
      %79 = arith.cmpi eq, %77, %78 : vector<8x2048xi32>
      %c2_i32 = arith.constant 2 : i32
      %80 = vector.broadcast %c2_i32 : i32 to vector<8x2048xi32>
      %81 = arith.cmpi eq, %77, %80 : vector<8x2048xi32>
      %82 = arith.ori %79, %81 : vector<8x2048xi1>
      %cst_34 = arith.constant 1.000000e+00 : f32
      %83 = vector.shape_cast %76 : vector<1x2048xf32> to vector<1x2048xf32>
      %84 = vector.broadcast %83 : vector<1x2048xf32> to vector<8x2048xf32>
      %85 = vector.broadcast %cst_34 : f32 to vector<8x2048xf32>
      %86 = arith.select %82, %84, %85 : vector<8x2048xi1>, vector<8x2048xf32>
      %87 = arith.mulf %70, %86 : vector<8x2048xf32>
      %cst_35 = arith.constant 0.000000e+00 : f32
      %88 = vector.shape_cast %73 : vector<1x2048xi1> to vector<1x2048xi1>
      %89 = vector.broadcast %88 : vector<1x2048xi1> to vector<8x2048xi1>
      %90 = vector.broadcast %cst_35 : f32 to vector<8x2048xf32>
      %91 = arith.select %89, %87, %90 : vector<8x2048xi1>, vector<8x2048xf32>
      %c0_36 = arith.constant 0 : index
      %c0_37 = arith.constant 0 : index
      %c0_38 = arith.constant 0 : index
      %92 = vector.load %arg6[%c0_36, %c0_37, %c0_38] : memref<1x8x2048xf32, #tpu.memory_space<vmem>>, vector<1x8x2048xf32>
      %93 = vector.shape_cast %92 : vector<1x8x2048xf32> to vector<8x2048xf32>
      %94 = vector.shape_cast %91 : vector<8x2048xf32> to vector<1x8x2048xf32>
      tpu.vector_store %arg6[%c0_36, %c0_37, %c0_38], %94 {strides = array<i32>} : memref<1x8x2048xf32, #tpu.memory_space<vmem>>, vector<1x8x2048xf32>,
    } else {
    }
    return
  }
  func.func @transform_0(%arg0: i32, %arg1: i32, %arg2: i32) -> (i32, i32) {
    %c0_i32 = arith.constant 0 : i32
    %c0_i32_0 = arith.constant 0 : i32
    return %c0_i32, %arg1 : i32, i32
  }
  func.func @transform_1(%arg0: i32, %arg1: i32, %arg2: i32) -> (i32, i32, i32) {
    %c0_i32 = arith.constant 0 : i32
    %c0_i32_0 = arith.constant 0 : i32
    return %arg0, %arg2, %c0_i32 : i32, i32, i32
  }
  func.func @transform_2(%arg0: i32, %arg1: i32, %arg2: i32) -> (i32, i32, i32) {
    %c0_i32 = arith.constant 0 : i32
    %c0_i32_0 = arith.constant 0 : i32
    return %arg0, %c0_i32, %arg2 : i32, i32, i32
  }
  func.func @transform_3(%arg0: i32, %arg1: i32, %arg2: i32) -> (i32, i32, i32) {
    %c0_i32 = arith.constant 0 : i32
    %c0_i32_0 = arith.constant 0 : i32
    return %arg0, %c0_i32, %arg1 : i32, i32, i32
  }
}

</mosaic_0001>

<bundles_post_ra>
// kernel: tpu_custom_call.1
= control target key start
LH: loop header
LB: loop body
LE: loop exit
PB: predicated region body
PF: predicated region fallthrough
CT: control target
= control target key end

     0   :  { %8 = vsyncpa [#allocation4], 0  ;;  %s12493_s0 = inlined_call_operand.hbm [shape: f32[3,4096], index: 0, kind: input, shape index: {}]   ;;  %s12494_s1 = inlined_call_operand.vmem [shape: f32[2,32,8], index: 1, kind: input, shape index: {}]   ;;  %s12495_s2 = inlined_call_operand.vmem [shape: f32[2,8,32], index: 2, kind: input, shape index: {}]   ;;  %s12496_s3 = inlined_call_operand.hbm [shape: f32[2,8,4096], index: 3, kind: output, shape index: {}]  }
   0x1   :  { %10 = vsyncpa [#allocation4 + $0x1], 0 }
   0x2   :  { %11 = vsyncpa [#allocation5], 0 }
   0x3   :  { %13 = vsyncpa [#allocation5 + $0x1], 0  ;;  %s8506_s12 = smov 0   ;;  %s8508_s13 = smov 0  }
   0x4   :  { %s8510_s14 = smov 0   ;;  %s8512_s15 = smov 0  }
   0x5   :  { %s8514_s16 = smov 0   ;;  %s8516_s17 = smov 0  }
   0x6   :  { %s8518_s18 = smov 0   ;;  %s8520_s19 = smov 0  }
   0x7   :  { %s8522_s20 = smov 0   ;;  %s8524_s21 = smov 0  }
   0x8   :  { %s8526_s22 = smov 0  }
   0x9 LB: > { %s7417_s23 = sadd.s32 4294967295, %s8472_s22   ;;  %s7418_s24 = sadd.s32 4294967294, %s8472_s22   ;;  %s8472_s22 = sphi %s8526_s22, %s19_s22   ;;  %s8468_s21 = sphi %s8524_s21, %s13585_s21   ;;  %s8464_s20 = sphi %s8522_s20, %s13584_s20   ;;  %s8460_s19 = sphi %s8520_s19, %s13583_s19   ;;  %s8456_s18 = sphi %s8518_s18, %s13582_s18   ;;  %s8452_s17 = sphi %s8516_s17, %s13581_s17   ;;  %s8448_s16 = sphi %s8514_s16, %s13580_s16   ;;  %s8444_s15 = sphi %s8512_s15, %s13579_s15   ;;  %s8440_s14 = sphi %s8510_s14, %s13578_s14   ;;  %s8436_s13 = sphi %s8508_s13, %s13577_s13   ;;  %s8432_s12 = sphi %s8506_s12, %s13576_s12  }
   0xa   : > { %s34_s25 = sadd.s32 1, %s8464_s20  ;;  %s38_s26 = sadd.s32 1, %s8468_s21 }
   0xb   : > { %p36_p0 = scmp.ge.s32.totalorder %s34_s25, 2  ;;  %s45_s27 = sadd.s32 1, %s8452_s17 }
   0xc   : > { %p52_p1 = scmp.ne.s32.totalorder %s8452_s17, %s8448_s16  ;;  %p53_p2 = scmp.eq.s32.totalorder %s8472_s22, 0 }
   0xd   : > { %s13587_s25 = smov (%p36_p0, %s34_s25), 0  ;;  %s13589_s26 = smov (!%p36_p0, %s38_s26), %s8468_s21 }
   0xe   : > { %s42_s28 = ssub.s32 %s8464_s20, %s13587_s25  ;;  %p8572_p3 = por %p53_p2, %p52_p1 }
   0xf   : > { %p40_p4 = scmp.ge.s32.totalorder %s13589_s26, 2  ;;  %p43_p5 = scmp.eq.s32.totalorder %s42_s28, 0 }
  0x10   : > { %p58_p6 = scmp.ne.s32.totalorder %s8448_s16, %s8444_s15  ;;  %p59_p7 = scmp.eq.s32.totalorder %s7417_s23, 0 }
  0x11   : > { %s13591_s26 = smov (%p40_p4, %s13589_s26), 0  ;;  %s129_s7 = sadd.s32 1, %s8440_s14 }
  0x12   : > { %12869 = sst [smem:[#allocation9_spill]] %s13591_s26  ;;  %p8582_p8 = por %p59_p7, %p58_p6 }
  0x13   : > { %s8580_s30 = scalar_select %p43_p5, %s8452_s17, %s45_s27  }
  0x14   : > { %s124_s5 = ssub.s32 %s8468_s21, %s13591_s26  ;;  %p139_p10 = scmp.ne.s32.totalorder %s8440_s14, %s8436_s13 }
  0x15   : > { %s126_s6 = sor.u32 %s124_s5, %s42_s28  ;;  %p140_p11 = scmp.eq.s32.totalorder %s7417_s23, 3 }
  0x16   : > { %p127_p9 = scmp.eq.s32.totalorder %s126_s6, 0  ;;  %p145_p12 = scmp.ne.s32.totalorder %s8436_s13, %s8432_s12 }
  0x17   : > { %p8596_p13 = por %p140_p11, %p139_p10  ;;  %p146_p0 = scmp.eq.s32.totalorder %s7418_s24, 3 }
  0x18   : > { %s8594_s8 = scalar_select %p127_p9, %s8440_s14, %s129_s7  }
  0x19   : > { %s12871_s9 = scalar_select %p8596_p13, 1, 0 }
  0x1a   : > { %p8170_p1 = scmp.lt.s32.totalorder %s8472_s22, 4  ;;  %p8601_p2 = por %p146_p0, %p145_p12 }
  0x1b   : > { %s166_s11 = sand.u32 1, %s8452_s17   ;;  %s7692_s27 = sshll.u32 %s8464_s20, 10 }
  0x1c   : > { %s12872_s10 = scalar_select %p8601_p2, 1, 0 }
  0x1d   : > { %s7421_s15 = sshll.u32 %s166_s11, 6  ;;  %s8610_s23 = scalar_lea.hbm %s12493_s0, %s7692_s27 }
  0x1e   : > { %s170_s6 = scalar_lea.vmem [#allocation3], %s7421_s15  ;;  %p8616_p4 = pnand %p8170_p1, %p8572_p3 }
  0x1f   : > { %s178_s7 = sshll.u32 %s170_s6, 4  ;;  %s167_s28 = scalar_lea.sflag [#allocation4], %s166_s11  ;;  %s8612_s7 = int_to_ptr.vmem [resolvable:$true] %s178_s7 }
  0x20   : > { %s8320_s27 = scalar_lea.hbm %s8610_s23, 1024  ;;  %p8322_p9 = pneg %p8616_p4 }
  0x21   : > { %p8321_p7 = scmp.ne.s32.totalorder %s8610_s23, %s8320_s27  ;;  %s8325_s29 = scalar_lea.hbm %s12493_s0, 2048 }
  0x22   : > { %p8326_p3 = scmp.lt.u32.totalorder %s8610_s23, %s12493_s0  ;;  %p8327_p12 = scmp.lt.u32.totalorder %s8325_s29, %s8320_s27 }
  0x23   : > { %p8323_p10 = pnand %p8322_p9, %p8321_p7  ;;  %p8329_p1 = scmp.lt.u32.totalorder %s8320_s27, %s8610_s23 }
  0x24   : > { %p8328_p0 = por %p8327_p12, %p8326_p3 }
  0x25   : > { %p8324_p11 = pneg %p8323_p10 }
  0x26   : > { %p8330_p5 = por %p8329_p1, %p8328_p0 }
  0x28   : > { %p8331_p6 = pnand %p8330_p5, %p8324_p11 }
  0x2a   : > { %8334 = shalt.err (!%p8331_p6)
}
  0x2b   : > { %s8335_s11 = scalar_lea.vmem %s8612_s7, 1024  ;;  %s8474_s15 = smov [#allocation3]  }
  0x2c   : > { %p8336_p7 = scmp.ne.s32.totalorder %s8612_s7, %s8335_s11  ;;  %s8340_s5 = sshll.u32 %s8474_s15, 4  ;;  %s8341_s5 = int_to_ptr.vmem [resolvable:$false] %s8340_s5 }
  0x2d   : > { %s8342_s26 = scalar_lea.vmem %s8341_s5, 2048  ;;  %p8343_p13 = scmp.lt.s32.totalorder %s8612_s7, %s8341_s5 }
  0x2e   : > { %p8338_p10 = pnand %p8336_p7, %p8322_p9  ;;  %p8344_p3 = scmp.lt.s32.totalorder %s8342_s26, %s8335_s11 }
  0x30   : > { %p8339_p2 = pneg %p8338_p10  ;;  %p8345_p12 = por %p8344_p3, %p8343_p13 }
  0x32   : > { %p8346_p0 = pnand %p8345_p12, %p8339_p2 }
  0x34   : > { %8349 = shalt.err (!%p8346_p0)
}
  0x35   : > { %8165 = dma.hbm_to_vmem [thread:$0]  (!%p8616_p4), %s8610_s23, 1024, %s8612_s7, %s167_s28  }
  0x36   : > { %p12874_p5 = scmp.lt.s32.totalorder %s8472_s22, 5  ;;  %p12875_p6 = scmp.ge.s32.totalorder %s8472_s22, 1 }
  0x38   : > { %p207_p9 = pnand %p12875_p6, %p12874_p5 }
  0x3a   : > { %210 = sbr.rel (%p207_p9) target bundleno = 968 (0x3c8), region = 32 }
  0x41   : > { %s212_s27 = sand.u32 1, %s8448_s16  }
  0x42   : > { %s7425_s29 = sshll.u32 %s212_s27, 6  ;;  %s213_s6 = scalar_lea.sflag [#allocation4], %s212_s27 }
  0x43   : > { %s8652_s11 = scalar_lea.vmem [#allocation3], %s7425_s29 }
  0x44   : > { %8423 = dma.done.wait (%p8582_p8), %s213_s6, 1024  }
  0x45   : > { %8425 = vsyncadd (%p8582_p8), %s213_s6, 4294966272  ;;  %p257_p13 = scmp.lt.s32.totalorder %s8460_s19, 1  ;;  %v8475_v0 = vmov 1   ;;  %v12499_v1 = vmov 0   ;;  %v8477_v5 = vmov 2   ;;  %v8478_v7 = vmov 3  }
  0x46   : > { %8271 = vset.pattern.permute.xlu1 %v8475_v0  ;;  %8270 = vset.pattern.permute.xlu0 %v12499_v1  ;;  %v12501_v8 = vmov 0.0   ;;  %v8480_v9 = vmov 5   ;;  %v8481_v10 = vmov 4   ;;  %v8482_v11 = vmov 7   ;;  %v302_v19 = vld [vmem:[%s8652_s11] sm:$0x77] }
  0x47   : > { %s8661_s23 = scalar_select %p257_p13, %s8460_s19, 1  ;;  %1603 = vmatprep.mubr.f32.mxu0 %v12501_v8  ;;  %2146 = vmatprep.mubr.f32.mxu1 %v12501_v8  ;;  %v278_v12 = vlaneseq  ;;  %vm1527_vm0 = vcmask 261120   ;;  %v303_v22 = vld [vmem:[%s8652_s11 + $0x8] sm:$0x77]  ;;  %v8714_v36 = vld [vmem:[%s8652_s11 + $0x10] sm:$0x77] }
  0x48   : > { %v8725_v41 = vld [vmem:[%s8652_s11 + $0x18] sm:$0x77]  ;;  %s252_s29 = sand.u32 1, %s8436_s13   ;;  %p13573_p2 = scmp.ne.s32.totalorder %s12871_s9, 0 }
  0x49   : > { %s7693_s7 = sshll.u32 %s8661_s23, 5  ;;  %s7429_s4 = sshll.u32 %s8661_s23, 3  ;;  %v8674_v15 = vshrl.u32 %v278_v12, 7 }
  0x4a   : > { %s264_s15 = scalar_lea.vmem %s12494_s1, %s7693_s7  ;;  %s272_s27 = scalar_lea.vmem %s12495_s2, %s7429_s4 }
  0x4b   : > { %v310_v2 = vld [vmem:[%s264_s15] sm:$0xff]  ;;  %v311_v3 = vld [vmem:[%s264_s15 + $0x8] sm:$0xff]  ;;  %v313_v4 = vld [vmem:[%s264_s15 + $0x18] sm:$0xff]  ;;  %12876 = vst [vmem:[#allocation10_spill] sm:$0xff] %v8674_v15  ;;  %v8679_v17 = vsub.s32 4, %v8674_v15  ;;  %v8682_v18 = vsub.s32 5, %v8674_v15 }
  0x4c   : > { %695 = vperm.xlu1 %8271, %v310_v2   ;;  %468 = vperm.xlu0 %8270, %v310_v2   ;;  %v312_v6 = vld [vmem:[%s264_s15 + $0x10] sm:$0xff]  ;;  %v1526_v13 = vld [vmem:[%s272_s27] sm:$0xff]  ;;  %v8686_v20 = vsub.s32 0, %v8674_v15  ;;  %v8689_v21 = vsub.s32 1, %v8674_v15  ;;  %v8696_v24 = vsub.s32 6, %v8674_v15  ;;  %v8701_v27 = vsub.s32 2, %v8674_v15 }
  0x4d   : > { %v1529_v14 = vsel %vm1527_vm0, %v1526_v13, 0  ;;  %12878 = vst [vmem:[#allocation12_spill] sm:$0xff] %v8679_v17  ;;  %12879 = vst [vmem:[#allocation13_spill] sm:$0xff] %v8682_v18  ;;  %v329_v25 = vrot.slane %v302_v19, %v8679_v17  ;;  %v557_v26 = vrot.slane %v302_v19, %v8682_v18  ;;  %v337_v28 = vrot.slane %v303_v22, %v8679_v17  ;;  %s12214_s6 = sshll.u32 %s252_s29, 7  ;;  %s7687_s23 = sshll.u32 %s8456_s18, 4 }
  0x4e   : > { %v8676_v16 = vand.u32 4294901760, %v1529_v14  ;;  %12880 = vst [vmem:[#allocation14_spill] sm:$0xff] %v8686_v20  ;;  %12881 = vst [vmem:[#allocation15_spill] sm:$0xff] %v8689_v21  ;;  %v565_v29 = vrot.slane %v303_v22, %v8682_v18  ;;  %v325_v30 = vrot.slane %v302_v19, %v8686_v20  ;;  %v553_v31 = vrot.slane %v302_v19, %v8689_v21  ;;  %s7688_s7 = sshll.u32 %s8460_s19, 5  ;;  %s7281_s5 = scalar_lea.sflag [#allocation5], %s252_s29 }
  0x4f   : > { %12883 = vst [vmem:[#allocation17_spill] sm:$0xff] %v8696_v24  ;;  %12884 = vst [vmem:[#allocation18_spill] sm:$0xff] %v8701_v27  ;;  %v333_v32 = vrot.slane %v303_v22, %v8686_v20  ;;  %v561_v33 = vrot.slane %v303_v22, %v8689_v21  ;;  %v781_v34 = vrot.slane %v302_v19, %v8696_v24  ;;  %s12393_s18 = sadd.s32 %s7688_s7, %s7687_s23  ;;  %s8485_s27 = smov [#allocation6]  }
  0x50   : > { %699 = vperm.xlu1 %8271, %v311_v3   ;;  %473 = vperm.xlu0 %8270, %v311_v3   ;;  %12877 = vst [vmem:[#allocation11_spill] sm:$0xff] %v8676_v16  ;;  %v8693_v23 = vsub.f32 %v1529_v14, %v8676_v16  ;;  %v8717_v37 = vrot.slane %v329_v25, %v8686_v20  ;;  %s7689_s19 = sshll.u32 %s12393_s18, 7 }
  0x51   : > { %v8720_v38 = vrot.slane %v557_v26, %v8689_v21  ;;  %v789_v39 = vrot.slane %v303_v22, %v8696_v24  ;;  %v777_v40 = vrot.slane %v302_v19, %v8701_v27  ;;  %v8728_v42 = vrot.slane %v337_v28, %v8686_v20  ;;  %s12427_s4 = scalar_lea.hbm %s12496_s3, %s7689_s19 }
  0x52   : > { %12882 = vst [vmem:[#allocation16_spill] sm:$0xff] %v8693_v23  ;;  %v8711_v35 = vand.u32 4294901760, %v8693_v23  ;;  %v8731_v43 = vrot.slane %v565_v29, %v8689_v21  ;;  %v8734_v44 = vrot.slane %v325_v30, %v8686_v20  ;;  %v785_v45 = vrot.slane %v303_v22, %v8701_v27 }
  0x53   : > { %v8738_v46 = vrot.slane %v553_v31, %v8689_v21  ;;  %v8741_v47 = vrot.slane %v333_v32, %v8686_v20  ;;  %v8744_v48 = vrot.slane %v561_v33, %v8689_v21  ;;  %v345_v49 = vrot.slane %v8714_v36, %v8679_v17 }
  0x54   : > { %8272 = vset.pattern.permute.xlu1 %v8477_v5  ;;  %483 = vperm.xlu0 %8270, %v313_v4   ;;  %12885 = vst [vmem:[#allocation19_spill] sm:$0xff] %v8711_v35  ;;  %v8749_v50 = vrot.slane %v781_v34, %v8701_v27  ;;  %v1607_v51 = vsub.f32 %v8693_v23, %v8711_v35 }
  0x55   : > { %923 = vperm.xlu1 %8272, %v311_v3   ;;  %v573_v52 = vrot.slane %v8714_v36, %v8682_v18  ;;  %v353_v53 = vrot.slane %v8725_v41, %v8679_v17  ;;  %v8758_v54 = vrot.slane %v789_v39, %v8701_v27  ;;  %v8761_v55 = vrot.slane %v777_v40, %v8701_v27 }
  0x56   : > { %v581_v56 = vrot.slane %v8725_v41, %v8682_v18  ;;  %v341_v57 = vrot.slane %v8714_v36, %v8686_v20  ;;  %v8772_v60 = vrot.slane %v785_v45, %v8701_v27  ;;  %v797_v61 = vrot.slane %v8714_v36, %v8696_v24 }
  0x57   : > { %v805_v62 = vrot.slane %v8725_v41, %v8696_v24  ;;  %v569_v63 = vrot.slane %v8714_v36, %v8689_v21 }
  0x58   : > { %8274 = vset.pattern.permute.xlu0 %v8477_v5  ;;  %v8805_v12 = vrot.slane %v341_v57, %v8686_v20  ;;  %v8814_v22 = vrot.slane %v797_v61, %v8701_v27 }
  0x59   : > { %8273 = vset.pattern.permute.xlu1 %v12499_v1  ;;  %919 = vperm.xlu0 %8274, %v310_v2   ;;  %v8817_v25 = vrot.slane %v805_v62, %v8701_v27  ;;  %v8820_v26 = vrot.slane %v569_v63, %v8689_v21 }
  0x5a   : > { %478 = vperm.xlu1 %8273, %v312_v6   ;;  %12890 = vst [vmem:[#allocation24_spill] sm:$0xff] %v8805_v12 }
  0x5b   : > { %12893 = vst [vmem:[#allocation27_spill] sm:$0xff] %v8817_v25  ;;  %12894 = vst [vmem:[#allocation28_spill] sm:$0xff] %v8820_v26 }
  0x5d   : > { %927 = vperm.xlu0 %8274, %v312_v6  }
  0x5e   : > { %8275 = vset.pattern.permute.xlu1 %v8475_v0  ;;  %v8781_v0 = vrot.slane %v345_v49, %v8686_v20 }
  0x5f   : > { %703 = vperm.xlu1 %8275, %v312_v6  }
  0x61   : > { %8278 = vset.pattern.permute.xlu0 %v8478_v7 }
  0x62   : > { %1323 = vperm.xlu0 %8278, %v311_v3  }
  0x63   : > { %707 = vperm.xlu1 %8275, %v313_v4  }
  0x66   : > { %8281 = vset.pattern.permute.xlu0 %v8480_v9 }
  0x67   : > { %8276 = vset.pattern.permute.xlu1 %v8477_v5  ;;  %6281 = vperm.xlu0 %8281, %v311_v3   ;;  %v8789_v5 = vand.u32 4294901760, %v1607_v51 }
  0x68   : > { %931 = vperm.xlu1 %8276, %v313_v4  }
  0x69   : > { %12888 = vst [vmem:[#allocation22_spill] sm:$0xff] %v8789_v5 }
  0x6b   : > { %8282 = vset.pattern.permute.xlu0 %v8481_v10 }
  0x6c   : > { %8277 = vset.pattern.permute.xlu1 %v8478_v7  ;;  %5924 = vperm.xlu0 %8282, %v310_v2   ;;  %v8795_v7 = vrot.slane %v353_v53, %v8686_v20 }
  0x6d   : > { %1319 = vperm.xlu1 %8277, %v310_v2  }
  0x70   : > { %5932 = vperm.xlu0 %8282, %v312_v6  }
  0x71   : > { %1327 = vperm.xlu1 %8277, %v312_v6  }
  0x74   : > { %5936 = vperm.xlu0 %8282, %v313_v4  }
  0x75   : > { %1331 = vperm.xlu1 %8277, %v313_v4  }
  0x78   : > { %8287 = vset.pattern.permute.xlu0 %v8482_v11 }
  0x79   : > { %8279 = vset.pattern.permute.xlu1 %v8481_v10  ;;  %6643 = vperm.xlu0 %8287, %v313_v4  }
  0x7a   : > { %5928 = vperm.xlu1 %8279, %v311_v3  }
  0x7e   : > { %8280 = vset.pattern.permute.xlu1 %v8480_v9 }
  0x7f   : > { %6277 = vperm.xlu1 %8280, %v310_v2  }
  0x83   : > { %8283 = vset.pattern.permute.xlu1 %v8482_v11 }
  0x84   : > { %6631 = vperm.xlu1 %8283, %v310_v2   ;;  %v349_v2 = vrot.slane %v8725_v41, %v8686_v20 }
  0x86   : > { %v8827_v30 = vrot.slane %v349_v2, %v8686_v20 }
  0x88   : > { %6635 = vperm.xlu1 %8283, %v311_v3   ;;  %v577_v3 = vrot.slane %v8725_v41, %v8689_v21  ;;  %12895 = vst [vmem:[#allocation29_spill] sm:$0xff] %v8827_v30 }
  0x8a   : > { %v8830_v31 = vrot.slane %v577_v3, %v8689_v21 }
  0x8c   : > { %8284 = vset.pattern.permute.xlu1 %v8480_v9  ;;  %12896 = vst [vmem:[#allocation30_spill] sm:$0xff] %v8830_v31 }
  0x8d   : > { %6285 = vperm.xlu1 %8284, %v312_v6  }
  0x91   : > { %8285 = vset.pattern.permute.xlu1 %v8482_v11  ;;  %v8802_v11 = vrot.slane %v581_v56, %v8689_v21 }
  0x92   : > { %6639 = vperm.xlu1 %8285, %v312_v6   ;;  %v8792_v6 = vrot.slane %v573_v52, %v8689_v21 }
  0x93   : > { %12889 = vst [vmem:[#allocation23_spill] sm:$0xff] %v8802_v11 }
  0x96   : > { %8286 = vset.pattern.permute.xlu1 %v8480_v9 }
  0x97   : > { %6289 = vperm.xlu1 %8286, %v313_v4  }
  0xcb   : > { %v8767_v58 = vpop.permute.xlu1 %695  ;;  %v8769_v59 = vpop.permute.xlu0 %468 }
  0xcc   : > { %12886 = vst [vmem:[#allocation20_spill] sm:$0xff] %v8767_v58  ;;  %12887 = vst [vmem:[#allocation21_spill] sm:$0xff] %v8769_v59  ;;  %v487_v4 = vsub.f32 %v8717_v37, %v8769_v59  ;;  %v711_v9 = vsub.f32 %v8720_v38, %v8767_v58  ;;  %v489_v10 = vsub.f32 %v8728_v42, %v8769_v59 }
  0xcd   : > { %v713_v19 = vsub.f32 %v8731_v43, %v8767_v58  ;;  %v486_v28 = vsub.f32 %v8734_v44, %v8769_v59  ;;  %v710_v29 = vsub.f32 %v8738_v46, %v8767_v58  ;;  %v488_v33 = vsub.f32 %v8741_v47, %v8769_v59 }
  0xce   : > { %v999_v32 = vmul.f32 %v487_v4, %v487_v4  ;;  %v712_v34 = vsub.f32 %v8744_v48, %v8767_v58  ;;  %v1063_v49 = vmul.f32 %v711_v9, %v711_v9  ;;  %v1001_v51 = vmul.f32 %v489_v10, %v489_v10 }
  0xcf   : > { %v8807_v13 = vpop.permute.xlu1 %699  ;;  %v8809_v14 = vpop.permute.xlu0 %473  ;;  %v1065_v57 = vmul.f32 %v713_v19, %v713_v19  ;;  %v998_v2 = vmul.f32 %v486_v28, %v486_v28  ;;  %v1062_v3 = vmul.f32 %v710_v29, %v710_v29  ;;  %v1000_v19 = vmul.f32 %v488_v33, %v488_v33 }
  0xd0   : > { %12891 = vst [vmem:[#allocation25_spill] sm:$0xff] %v8807_v13  ;;  %12892 = vst [vmem:[#allocation26_spill] sm:$0xff] %v8809_v14  ;;  %v503_v40 = vsub.f32 %v8717_v37, %v8809_v14  ;;  %v727_v45 = vsub.f32 %v8720_v38, %v8807_v13  ;;  %v505_v53 = vsub.f32 %v8728_v42, %v8809_v14 }
  0xd1   : > { %v729_v56 = vsub.f32 %v8731_v43, %v8807_v13  ;;  %v502_v61 = vsub.f32 %v8734_v44, %v8809_v14  ;;  %v726_v63 = vsub.f32 %v8738_v46, %v8807_v13  ;;  %v504_v9 = vsub.f32 %v8741_v47, %v8809_v14 }
  0xd2   : > { %v728_v10 = vsub.f32 %v8744_v48, %v8807_v13  ;;  %v1064_v1 = vmul.f32 %v712_v34, %v712_v34  ;;  %v1015_v8 = vmul.f32 %v503_v40, %v503_v40  ;;  %v1079_v21 = vmul.f32 %v727_v45, %v727_v45 }
  0xd3   : > { %v8842_v52 = vpop.permute.xlu0 %483  ;;  %v1127_v20 = vadd.f32 %v1063_v49, %v999_v32  ;;  %v1017_v24 = vmul.f32 %v505_v53, %v505_v53  ;;  %v1081_v28 = vmul.f32 %v729_v56, %v729_v56  ;;  %v1129_v29 = vadd.f32 %v1065_v57, %v1001_v51 }
  0xd4   : > { %12897 = vst [vmem:[#allocation31_spill] sm:$0xff] %v8842_v52  ;;  %v8850_v62 = vpop.permute.xlu1 %923  ;;  %v1014_v18 = vmul.f32 %v502_v61, %v502_v61  ;;  %v1078_v33 = vmul.f32 %v726_v63, %v726_v63  ;;  %v535_v34 = vsub.f32 %v8717_v37, %v8842_v52  ;;  %v1126_v40 = vadd.f32 %v1062_v3, %v998_v2 }
  0xd5   : > { %12898 = vst [vmem:[#allocation32_spill] sm:$0xff] %v8850_v62  ;;  %v951_v39 = vsub.f32 %v8749_v50, %v8850_v62  ;;  %v953_v4 = vsub.f32 %v8758_v54, %v8850_v62  ;;  %v950_v15 = vsub.f32 %v8761_v55, %v8850_v62  ;;  %v952_v32 = vsub.f32 %v8772_v60, %v8850_v62 }
  0xd6   : > { %v1016_v45 = vmul.f32 %v504_v9, %v504_v9  ;;  %v1080_v49 = vmul.f32 %v728_v10, %v728_v10  ;;  %v1143_v53 = vadd.f32 %v1079_v21, %v1015_v8  ;;  %v1145_v61 = vadd.f32 %v1081_v28, %v1017_v24 }
  0xd7   : > { %v1207_v56 = vmul.f32 %v951_v39, %v951_v39  ;;  %v1128_v3 = vadd.f32 %v1064_v1, %v1000_v19  ;;  %v1209_v9 = vmul.f32 %v953_v4, %v953_v4  ;;  %v1142_v10 = vadd.f32 %v1078_v33, %v1014_v18 }
  0xd8   : > { %v8862_v17 = vpop.permute.xlu0 %919  ;;  %v1206_v30 = vmul.f32 %v950_v15, %v950_v15  ;;  %v8884_v26 = vmul.f32 %v535_v34, %v535_v34  ;;  %v1144_v8 = vadd.f32 %v1080_v49, %v1016_v45  ;;  %v1208_v21 = vmul.f32 %v952_v32, %v952_v32 }
  0xd9   : > { %12899 = vst [vmem:[#allocation33_spill] sm:$0xff] %v8862_v17  ;;  %v8870_v31 = vpop.permute.xlu1 %478  ;;  %v935_v51 = vsub.f32 %v8749_v50, %v8862_v17  ;;  %v937_v57 = vsub.f32 %v8758_v54, %v8862_v17  ;;  %v934_v63 = vsub.f32 %v8761_v55, %v8862_v17  ;;  %v936_v2 = vsub.f32 %v8772_v60, %v8862_v17 }
  0xda   : > { %12900 = vst [vmem:[#allocation34_spill] sm:$0xff] %v8870_v31  ;;  %v537_v39 = vsub.f32 %v8728_v42, %v8842_v52  ;;  %v534_v24 = vsub.f32 %v8734_v44, %v8842_v52  ;;  %v1271_v12 = vadd.f32 %v1207_v56, %v1143_v53  ;;  %v519_v4 = vsub.f32 %v8717_v37, %v8870_v31 }
  0xdb   : > { %v1191_v23 = vmul.f32 %v935_v51, %v935_v51  ;;  %v1193_v1 = vmul.f32 %v937_v57, %v937_v57  ;;  %v1190_v18 = vmul.f32 %v934_v63, %v934_v63  ;;  %v1192_v15 = vmul.f32 %v936_v2, %v936_v2 }
  0xdc   : > { %v8882_v35 = vpop.permute.xlu0 %927  ;;  %v521_v33 = vsub.f32 %v8728_v42, %v8870_v31  ;;  %v1273_v34 = vadd.f32 %v1209_v9, %v1145_v61  ;;  %v1270_v32 = vadd.f32 %v1206_v30, %v1142_v10  ;;  %v1272_v51 = vadd.f32 %v1208_v21, %v1144_v8 }
  0xdd   : > { %12901 = vst [vmem:[#allocation35_spill] sm:$0xff] %v8882_v35  ;;  %v967_v45 = vsub.f32 %v8749_v50, %v8882_v35  ;;  %v969_v49 = vsub.f32 %v8758_v54, %v8882_v35  ;;  %v1255_v42 = vadd.f32 %v1191_v23, %v1127_v20  ;;  %v1257_v30 = vadd.f32 %v1193_v1, %v1129_v29 }
  0xde   : > { %v8890_v28 = vpop.permute.xlu1 %703  ;;  %v1049_v61 = vmul.f32 %v537_v39, %v537_v39  ;;  %v518_v2 = vsub.f32 %v8734_v44, %v8870_v31  ;;  %v1254_v9 = vadd.f32 %v1190_v18, %v1126_v40  ;;  %v1256_v10 = vadd.f32 %v1192_v15, %v1128_v3 }
  0xdf   : > { %12902 = vst [vmem:[#allocation36_spill] sm:$0xff] %v8890_v28  ;;  %v743_v19 = vsub.f32 %v8720_v38, %v8890_v28  ;;  %v745_v37 = vsub.f32 %v8731_v43, %v8890_v28  ;;  %v742_v56 = vsub.f32 %v8738_v46, %v8890_v28  ;;  %v1031_v8 = vmul.f32 %v519_v4, %v519_v4 }
  0xe0   : > { %v1033_v21 = vmul.f32 %v521_v33, %v521_v33  ;;  %v1223_v25 = vmul.f32 %v967_v45, %v967_v45  ;;  %v8914_v11 = vmul.f32 %v969_v49, %v969_v49  ;;  %v966_v16 = vsub.f32 %v8761_v55, %v8882_v35 }
  0xe1   : > { %v1095_v53 = vmul.f32 %v743_v19, %v743_v19  ;;  %v8906_v57 = vpop.permute.xlu0 %1323  ;;  %v12905_v20 = vmov 0  ;;  %v1097_v44 = vmul.f32 %v745_v37, %v745_v37  ;;  %v1094_v29 = vmul.f32 %v742_v56, %v742_v56 }
  0xe2   : > { %12903 = vst [vmem:[#allocation37_spill] sm:$0xff] %v8906_v57  ;;  %v8908_v63 = vpop.permute.xlu1 %707  ;;  %vm8919_vm1 = vcmp.le.f32.partialorder %v1270_v32, %v8906_v57  ;;  %vm8924_vm2 = vcmp.le.f32.partialorder %v1272_v51, %v8906_v57  ;;  %v12908_v40 = vmov 0  ;;  %v1046_v3 = vmul.f32 %v534_v24, %v534_v24 }
  0xe3   : > { %12904 = vst [vmem:[#allocation38_spill] sm:$0xff] %v8908_v63  ;;  %v759_v19 = vsub.f32 %v8720_v38, %v8908_v63  ;;  %v12906_v20 = vsel %vm8919_vm1, 4294967295, %v12905_v20  ;;  %v1159_v23 = vadd.f32 %v1095_v53, %v1031_v8  ;;  %v12909_v40 = vsel %vm8924_vm2, 4294967295, %v12908_v40 }
  0xe4   : > { %12907 = vst [vmem:[#allocation39_spill] sm:$0xff] %v12906_v20  ;;  %12910 = vst [vmem:[#allocation40_spill] sm:$0xff] %v12909_v40  ;;  %v1030_v38 = vmul.f32 %v518_v2, %v518_v2  ;;  %v520_v39 = vsub.f32 %v8741_v47, %v8870_v31  ;;  %vm8933_vm3 = vcmp.le.f32.partialorder %v1271_v12, %v8906_v57  ;;  %v12912_v4 = vmov 0 }
  0xe5   : > { %v12913_v4 = vsel %vm8933_vm3, 4294967295, %v12912_v4  ;;  %v761_v18 = vsub.f32 %v8731_v43, %v8908_v63  ;;  %v758_v15 = vsub.f32 %v8738_v46, %v8908_v63  ;;  %v744_v33 = vsub.f32 %v8744_v48, %v8890_v28 }
  0xe6   : > { %12914 = vst [vmem:[#allocation42_spill] sm:$0xff] %v12913_v4  ;;  %vm8944_vm4 = vcmp.le.f32.partialorder %v1273_v34, %v8906_v57  ;;  %v12915_v24 = vmov 0  ;;  %v12918_v32 = vmov 0.0   ;;  %v1111_v43 = vmul.f32 %v759_v19, %v759_v19 }
  0xe7   : > { %v8930_v1 = vpop.permute.xlu1 %931  ;;  %v12916_v24 = vsel %vm8944_vm4, 4294967295, %v12915_v24  ;;  %v8951_v12 = vsel %vm8919_vm1, 1.0, %v12918_v32  ;;  %v8958_v46 = vsel %vm8924_vm2, 1.0, %v12918_v32  ;;  %v1287_v49 = vadd.f32 %v1223_v25, %v1159_v23 }
  0xe8   : > { %12911 = vst [vmem:[#allocation41_spill] sm:$0xff] %v8930_v1  ;;  %12917 = vst [vmem:[#allocation43_spill] sm:$0xff] %v12916_v24  ;;  %v983_v45 = vsub.f32 %v8749_v50, %v8930_v1  ;;  %v1161_v51 = vadd.f32 %v1097_v44, %v1033_v21  ;;  %v1158_v34 = vadd.f32 %v1094_v29, %v1030_v38  ;;  %v12559_v44 = vmov 1.0|1.0  }
  0xe9   : > { %v985_v53 = vsub.f32 %v8758_v54, %v8930_v1  ;;  %v982_v37 = vsub.f32 %v8761_v55, %v8930_v1  ;;  %v1222_v56 = vmul.f32 %v966_v16, %v966_v16  ;;  %v760_v2 = vsub.f32 %v8744_v48, %v8908_v63 }
  0xea   : > { %v1113_v50 = vmul.f32 %v761_v18, %v761_v18  ;;  %v1110_v8 = vmul.f32 %v758_v15, %v758_v15  ;;  %v968_v19 = vsub.f32 %v8772_v60, %v8882_v35  ;;  %v1096_v28 = vmul.f32 %v744_v33, %v744_v33  ;;  %v13045_v33 = vld [vmem:[#allocation35_spill] sm:$0xff] }
  0xeb   : > { %v1175_v25 = vadd.f32 %v1111_v43, %v8884_v26  ;;  %v1239_v21 = vmul.f32 %v983_v45, %v983_v45  ;;  %v536_v54 = vsub.f32 %v8741_v47, %v8842_v52  ;;  %v984_v16 = vsub.f32 %v8772_v60, %v8930_v1 }
  0xec   : > { %v8968_v31 = vpop.permute.xlu1 %1319  ;;  %v12920_v48 = vmov 0  ;;  %v12923_v55 = vmov 0  ;;  %v12926_v26 = vmov 0  ;;  %v1032_v23 = vmul.f32 %v520_v39, %v520_v39 }
  0xed   : > { %12919 = vst [vmem:[#allocation44_spill] sm:$0xff] %v8968_v31  ;;  %vm8976_vm5 = vcmp.le.f32.partialorder %v1255_v42, %v8968_v31  ;;  %vm8981_vm6 = vcmp.le.f32.partialorder %v1257_v30, %v8968_v31  ;;  %vm8986_vm7 = vcmp.le.f32.partialorder %v1254_v9, %v8968_v31  ;;  %vm8999_vm9 = vcmp.le.f32.partialorder %v1256_v10, %v8968_v31 }
  0xee   : > { %v12921_v48 = vsel %vm8976_vm5, 4294967295, %v12920_v48  ;;  %v12924_v55 = vsel %vm8981_vm6, 4294967295, %v12923_v55  ;;  %v12927_v26 = vsel %vm8986_vm7, 4294967295, %v12926_v26  ;;  %vm8994_vm8 = vmpackc.low %vm8933_vm3, %vm8976_vm5  ;;  %v12931_v60 = vmov 0 }
  0xef   : > { %12922 = vst [vmem:[#allocation45_spill] sm:$0xff] %v12921_v48  ;;  %12925 = vst [vmem:[#allocation46_spill] sm:$0xff] %v12924_v55  ;;  %v12932_v60 = vsel %vm8999_vm9, 4294967295, %v12931_v60  ;;  %v1241_v42 = vmul.f32 %v985_v53, %v985_v53  ;;  %v1238_v30 = vmul.f32 %v982_v37, %v982_v37  ;;  %v1112_v9 = vmul.f32 %v760_v2, %v760_v2 }
  0xf0   : > { %12928 = vst [vmem:[#allocation47_spill] sm:$0xff] %v12927_v26  ;;  %12933 = vst [vmem:[#allocation48_spill] sm:$0xff] %v12932_v60  ;;  %7695 = vmatprep.subr.msk.bf16.mxu0 %vm8994_vm8, %v12559_v44  ;;  %v1177_v10 = vadd.f32 %v1113_v50, %v1049_v61  ;;  %v1174_v38 = vadd.f32 %v1110_v8, %v1046_v3  ;;  %v1160_v39 = vadd.f32 %v1096_v28, %v1032_v23  ;;  %v9017_v15 = vpop.permute.xlu1 %1327  ;;  %v12939_v53 = vmov 0 }
  0xf1   : > { %vm9010_vm10 = vmpackc.low %vm8944_vm4, %vm8981_vm6  ;;  %v1224_v18 = vmul.f32 %v968_v19, %v968_v19  ;;  %12936 = vst [vmem:[#allocation49_spill] sm:$0xff] %v9017_v15  ;;  %v1048_v45 = vmul.f32 %v536_v54, %v536_v54  ;;  %v1240_v43 = vmul.f32 %v984_v16, %v984_v16  ;;  %v7431_v28 = vsel %vm8976_vm5, 1.0, %v12918_v32 }
  0xf2   : > { %7743 = vmatprep.subr.msk.bf16.mxu1 %vm9010_vm10, %v12559_v44  ;;  %vm9023_vm11 = vmpackc.low %vm8919_vm1, %vm8986_vm7  ;;  %v7447_v61 = vsel %vm8933_vm3, 1.0, %v12918_v32  ;;  %v7430_v3 = vsel %vm8986_vm7, 1.0, %v12918_v32  ;;  %v1303_v37 = vadd.f32 %v1239_v21, %v1175_v25  ;;  %v1289_v2 = vadd.f32 %v8914_v11, %v1161_v51 }
  0xf3   : > { %7697 = vmatpush1.bf16.msk.msra.mxu0 %vm9023_vm11, %v12559_v44  ;;  %vm9043_vm12 = vmpackc.low %vm8924_vm2, %vm8999_vm9  ;;  %v1286_v50 = vadd.f32 %v1222_v56, %v1158_v34  ;;  %v7432_v8 = vsel %vm8999_vm9, 1.0, %v12918_v32  ;;  %v1305_v19 = vadd.f32 %v1241_v42, %v1177_v10  ;;  %v1302_v54 = vadd.f32 %v1238_v30, %v1174_v38 }
  0xf4   : > { %v12940_v53 = vsel %vm9043_vm12, 4294967295, %v12939_v53  ;;  %7745 = vmatpush1.bf16.msk.msra.mxu1 %vm9043_vm12, %v12559_v44  ;;  %v1176_v16 = vadd.f32 %v1112_v9, %v1048_v45  ;;  %v1288_v23 = vadd.f32 %v1224_v18, %v1160_v39  ;;  %v9054_v26 = vsub.f32 %v7431_v28, %v7431_v28  ;;  %v9061_v51 = vpop.permute.xlu1 %1331 }
  0xf5   : > { %12941 = vst [vmem:[#allocation50_spill] sm:$0xff] %v12940_v53  ;;  %v9056_v48 = vsub.f32 %v7447_v61, %v7447_v61  ;;  %v7433_v11 = vsel %vm8981_vm6, 1.0, %v12918_v32  ;;  %12942 = vst [vmem:[#allocation51_spill] sm:$0xff] %v9061_v51  ;;  %v7449_v56 = vsel %vm8944_vm4, 1.0, %v12918_v32  ;;  %v9068_v21 = vsub.f32 %v7430_v3, %v7430_v3 }
  0xf6   : > { %v1304_v34 = vadd.f32 %v1240_v43, %v1176_v16  ;;  %v9066_v25 = vsub.f32 %v7433_v11, %v7433_v11  ;;  %vm9071_vm13 = vcmp.le.f32.partialorder %v1287_v49, %v9017_v15  ;;  %v12943_v42 = vmov 0 }
  0xf7   : > { %v12944_v42 = vsel %vm9071_vm13, 4294967295, %v12943_v42  ;;  %vm9076_vm14 = vcmp.le.f32.partialorder %v1303_v37, %v9061_v51  ;;  %v12946_v30 = vmov 0  ;;  %vm9081_vm15 = vcmp.le.f32.partialorder %v1305_v19, %v9061_v51 }
  0xf8   : > { %12945 = vst [vmem:[#allocation52_spill] sm:$0xff] %v12944_v42  ;;  %v12947_v30 = vsel %vm9076_vm14, 4294967295, %v12946_v30  ;;  %v12949_v9 = vmov 0  ;;  %vm9086_vm0 = vcmp.le.f32.partialorder %v1302_v54, %v9061_v51  ;;  %v12952_v10 = vmov 0  ;;  %vm9094_vm9 = vmpackc.low %vm9076_vm14, %vm9071_vm13 }
  0xf9   : > { %12948 = vst [vmem:[#allocation53_spill] sm:$0xff] %v12947_v30  ;;  %v12950_v9 = vsel %vm9081_vm15, 4294967295, %v12949_v9  ;;  %v12953_v10 = vsel %vm9086_vm0, 4294967295, %v12952_v10  ;;  %v12955_v49 = vmov 0  ;;  %vm9099_vm7 = vcmp.le.f32.partialorder %v1289_v2, %v9017_v15  ;;  %7699 = vmatprep.subr.msk.bf16.mxu0 %vm9094_vm9, %v12559_v44 }
  0xfa   : > { %12951 = vst [vmem:[#allocation54_spill] sm:$0xff] %v12950_v9  ;;  %12954 = vst [vmem:[#allocation55_spill] sm:$0xff] %v12953_v10  ;;  %v12956_v49 = vsel %vm9094_vm9, 4294967295, %v12955_v49  ;;  %v12958_v38 = vmov 0  ;;  %vm9104_vm6 = vcmp.le.f32.partialorder %v1286_v50, %v9017_v15  ;;  %v12961_v39 = vmov 0 }
  0xfb   : > { %12957 = vst [vmem:[#allocation56_spill] sm:$0xff] %v12956_v49  ;;  %v12959_v38 = vsel %vm9099_vm7, 4294967295, %v12958_v38  ;;  %v12962_v39 = vsel %vm9104_vm6, 4294967295, %v12961_v39  ;;  %vm9109_vm5 = vcmp.le.f32.partialorder %v1288_v23, %v9017_v15  ;;  %v12964_v18 = vmov 0  ;;  %vm9125_vm2 = vmpackc.low %vm9081_vm15, %vm9099_vm7 }
  0xfc   : > { %12960 = vst [vmem:[#allocation57_spill] sm:$0xff] %v12959_v38  ;;  %12963 = vst [vmem:[#allocation58_spill] sm:$0xff] %v12962_v39  ;;  %v12965_v18 = vsel %vm9109_vm5, 4294967295, %v12964_v18  ;;  %vm9114_vm12 = vcmp.le.f32.partialorder %v1304_v34, %v9061_v51  ;;  %v12967_v45 = vmov 0  ;;  %v12970_v43 = vmov 0  ;;  %7747 = vmatprep.subr.msk.bf16.mxu1 %vm9125_vm2, %v12559_v44 }
  0xfd   : > { %12966 = vst [vmem:[#allocation59_spill] sm:$0xff] %v12965_v18  ;;  %v12968_v45 = vsel %vm9114_vm12, 4294967295, %v12967_v45  ;;  %v12971_v43 = vsel %vm9125_vm2, 4294967295, %v12970_v43  ;;  %v12552_v28 = vand.u32 4294901760, %v9054_v26  ;;  %v12551_v61 = vand.u32 4294901760, %v9056_v48  ;;  %vm9141_vm9 = vmpackc.low %vm9086_vm0, %vm9104_vm6 }
  0xfe   : > { %12969 = vst [vmem:[#allocation60_spill] sm:$0xff] %v12968_v45  ;;  %12972 = vst [vmem:[#allocation61_spill] sm:$0xff] %v12971_v43  ;;  %v12561_v3 = vand.u32 4294901760, %v9066_v25  ;;  %v9132_v37 = vsub.f32 %v7449_v56, %v7449_v56  ;;  %v12973_v2 = vmov 0  ;;  %v12562_v50 = vand.u32 4294901760, %v9068_v21  ;;  %7701 = vmatpush1.bf16.msk.msra.mxu0 %vm9141_vm9, %v12559_v44 }
  0xff   : > { %v12974_v2 = vsel %vm9141_vm9, 4294967295, %v12973_v2  ;;  %v9148_v19 = vsub.f32 %v8951_v12, %v8951_v12  ;;  %v9150_v54 = vsub.f32 %v7432_v8, %v7432_v8  ;;  %v9154_v16 = vsub.f32 %v8958_v46, %v8958_v46  ;;  %vm9163_vm2 = vmpackc.low %vm9114_vm12, %vm9109_vm5 }
 0x100   : > { %12975 = vst [vmem:[#allocation62_spill] sm:$0xff] %v12974_v2  ;;  %v12976_v23 = vmov 0  ;;  %v1618_v12 = vsub.f32 %v9054_v26, %v12552_v28  ;;  %v1630_v46 = vsub.f32 %v9056_v48, %v12551_v61  ;;  %v12979_v8 = vrot.slane %v8714_v36, %v8701_v27  ;;  %7749 = vmatpush1.bf16.msk.msra.mxu1 %vm9163_vm2, %v12559_v44 }
 0x101   : > { %v12977_v23 = vsel %vm9163_vm2, 4294967295, %v12976_v23  ;;  %v12981_v34 = vrot.slane %v8725_v41, %v8701_v27  ;;  %v2161_v61 = vsub.f32 %v9066_v25, %v12561_v3  ;;  %v12565_v28 = vand.u32 4294901760, %v9132_v37  ;;  %1609 = vmatmul.mubr.f32.vlgmr.msra.gmra.mrb[0].mxu0 %v8789_v5 }
 0x102   : > { %12978 = vst [vmem:[#allocation63_spill] sm:$0xff] %v12977_v23  ;;  %v9177_v11 = vrot.slane %v12979_v8, %v8701_v27  ;;  %v1624_v36 = vsub.f32 %v9068_v21, %v12562_v50  ;;  %v12567_v8 = vand.u32 4294901760, %v9148_v19  ;;  %v1619_v60 = vand.u32 4294901760, %v1618_v12  ;;  %1719 = vmatprep.mubr.f32.mxu0 %v12918_v32 }
 0x103   : > { %v9183_v56 = vrot.slane %v12981_v34, %v8701_v27  ;;  %v1631_v41 = vand.u32 4294901760, %v1630_v46  ;;  %v12566_v34 = vand.u32 4294901760, %v9150_v54  ;;  %v12568_v55 = vand.u32 4294901760, %v9154_v16  ;;  %2152 = vmatmul.mubr.f32.vlgmr.msra.gmra.mrb[0].mxu1 %v8789_v5 }
 0x104   : > { %12980 = vst [vmem:[#allocation64_spill] sm:$0xff] %v9177_v11  ;;  %v2162_v27 = vand.u32 4294901760, %v2161_v61  ;;  %v2173_v44 = vsub.f32 %v9132_v37, %v12565_v28  ;;  %v1625_v3 = vand.u32 4294901760, %v1624_v36  ;;  %v1636_v50 = vsub.f32 %v9148_v19, %v12567_v8  ;;  %2262 = vmatprep.mubr.f32.mxu1 %v12918_v32 }
 0x105   : > { %12982 = vst [vmem:[#allocation65_spill] sm:$0xff] %v9183_v56  ;;  %v7702_v51 = vpack.c.bf16 %v1631_v41, %v1619_v60  ;;  %v2167_v12 = vsub.f32 %v9150_v54, %v12566_v34  ;;  %v2179_v61 = vsub.f32 %v9154_v16, %v12568_v55  ;;  %v7463_v46 = vsel %vm9071_vm13, 1.0, %v12918_v32 }
 0x106   : > { %v2174_v36 = vand.u32 4294901760, %v2173_v44  ;;  %v1637_v28 = vand.u32 4294901760, %v1636_v50  ;;  %v7479_v60 = vsel %vm9076_vm14, 1.0, %v12918_v32  ;;  %v9219_v41 = vsub.f32 %v7463_v46, %v7463_v46 }
 0x107   : > { %7703 = vmatprep.subr.bf16.mxu0 %v7702_v51  ;;  %v2168_v34 = vand.u32 4294901760, %v2167_v12  ;;  %v2180_v8 = vand.u32 4294901760, %v2179_v61  ;;  %v9222_v55 = vsub.f32 %v7479_v60, %v7479_v60  ;;  %v7465_v42 = vsel %vm9099_vm7, 1.0, %v12918_v32 }
 0x108   : > { %v7750_v5 = vpack.c.bf16 %v2174_v36, %v2162_v27  ;;  %v7704_v44 = vpack.c.bf16 %v1637_v28, %v1625_v3  ;;  %v1641_v50 = vand.u32 4294901760, %v9219_v41  ;;  %v7481_v46 = vsel %vm9081_vm15, 1.0, %v12918_v32  ;;  %v9251_v36 = vpop.permute.xlu1 %5928 }
 0x109   : > { %v7752_v30 = vpack.c.bf16 %v2180_v8, %v2168_v34  ;;  %v1653_v15 = vand.u32 4294901760, %v9222_v55  ;;  %v9232_v51 = vsub.f32 %v7465_v42, %v7465_v42  ;;  %v9234_v12 = vsub.f32 %v7481_v46, %v7481_v46  ;;  %12983 = vst [vmem:[#allocation66_spill] sm:$0xff] %v9251_v36 }
 0x10a   : > { %7751 = vmatprep.subr.bf16.mxu1 %v7750_v5  ;;  %7705 = vmatpush1.bf16.msra.mxu0 %v7704_v44  ;;  %v1642_v61 = vsub.f32 %v9219_v41, %v1641_v50  ;;  %v7462_v27 = vsel %vm9104_vm6, 1.0, %v12918_v32  ;;  %v7478_v28 = vsel %vm9086_vm0, 1.0, %v12918_v32  ;;  %v7464_v3 = vsel %vm9109_vm5, 1.0, %v12918_v32 }
 0x10b   : > { %7753 = vmatpush1.bf16.msra.mxu1 %v7752_v30  ;;  %v1654_v42 = vsub.f32 %v9222_v55, %v1653_v15  ;;  %v2184_v5 = vand.u32 4294901760, %v9232_v51  ;;  %v2196_v8 = vand.u32 4294901760, %v9234_v12  ;;  %v9249_v34 = vsub.f32 %v7462_v27, %v7462_v27 }
 0x10c   : > { %v1643_v60 = vand.u32 4294901760, %v1642_v61  ;;  %v9253_v44 = vsub.f32 %v7478_v28, %v7478_v28  ;;  %v7480_v46 = vsel %vm9114_vm12, 1.0, %v12918_v32  ;;  %v9258_v10 = vsub.f32 %v7464_v3, %v7464_v3 }
 0x10d   : > { %v1655_v30 = vand.u32 4294901760, %v1654_v42  ;;  %v2185_v9 = vsub.f32 %v9232_v51, %v2184_v5  ;;  %v2197_v18 = vsub.f32 %v9234_v12, %v2196_v8  ;;  %v1647_v39 = vand.u32 4294901760, %v9249_v34 }
 0x10e   : > { %v1659_v27 = vand.u32 4294901760, %v9253_v44  ;;  %v2190_v38 = vand.u32 4294901760, %v9258_v10  ;;  %v9265_v61 = vsub.f32 %v7480_v46, %v7480_v46  ;;  %v7710_v28 = vpack.c.bf16 %v9056_v48, %v9054_v26 }
 0x10f   : > { %v7706_v45 = vpack.c.bf16 %v1655_v30, %v1643_v60  ;;  %v2186_v1 = vand.u32 4294901760, %v2185_v9  ;;  %v2198_v3 = vand.u32 4294901760, %v2197_v18  ;;  %v1648_v42 = vsub.f32 %v9249_v34, %v1647_v39  ;;  %v9279_v18 = vpop.permute.xlu1 %6277 }
 0x110   : > { %v1660_v35 = vsub.f32 %v9253_v44, %v1659_v27  ;;  %v2191_v63 = vsub.f32 %v9258_v10, %v2190_v38  ;;  %v2202_v52 = vand.u32 4294901760, %v9265_v61  ;;  %v7758_v56 = vpack.c.bf16 %v9132_v37, %v9066_v25  ;;  %12984 = vst [vmem:[#allocation67_spill] sm:$0xff] %v9279_v18 }
 0x111   : > { %7707 = vmatprep.subr.bf16.mxu0 %v7706_v45  ;;  %v7754_v46 = vpack.c.bf16 %v2198_v3, %v2186_v1  ;;  %v1649_v23 = vand.u32 4294901760, %v1648_v42  ;;  %v7712_v2 = vpack.c.bf16 %v9148_v19, %v9068_v21  ;;  %v7760_v9 = vpack.c.bf16 %v9154_v16, %v9150_v54 }
 0x112   : > { %v1661_v60 = vand.u32 4294901760, %v1660_v35  ;;  %v2192_v30 = vand.u32 4294901760, %v2191_v63  ;;  %v2203_v43 = vsub.f32 %v9265_v61, %v2202_v52  ;;  %v7714_v53 = vpack.c.bf16 %v9222_v55, %v9219_v41 }
 0x113   : > { %7755 = vmatprep.subr.bf16.mxu1 %v7754_v46  ;;  %v7762_v1 = vpack.c.bf16 %v9234_v12, %v9232_v51  ;;  %v7716_v45 = vpack.c.bf16 %v9253_v44, %v9249_v34  ;;  %v7764_v3 = vpack.c.bf16 %v9265_v61, %v9258_v10  ;;  %v12985_v42 = vand.u32 4294901760, %v9054_v26  ;;  %v13006_v10 = vld [vmem:[#allocation16_spill] sm:$0xff] }
 0x114   : > { %v12986_v35 = vand.u32 4294901760, %v9056_v48  ;;  %v7708_v11 = vpack.c.bf16 %v1661_v60, %v1649_v23  ;;  %v2204_v49 = vand.u32 4294901760, %v2203_v43  ;;  %v12987_v55 = vand.u32 4294901760, %v9066_v25 }
 0x115   : > { %v12988_v41 = vand.u32 4294901760, %v9132_v37  ;;  %v12989_v51 = vand.u32 4294901760, %v9068_v21  ;;  %v12990_v12 = vand.u32 4294901760, %v9148_v19  ;;  %v12991_v26 = vand.u32 4294901760, %v9150_v54  ;;  %v9326_v54 = vpop.permute.xlu0 %6281 }
 0x116   : > { %v9294_v63 = vpack.c.bf16 %v12986_v35, %v12985_v42  ;;  %v12992_v48 = vand.u32 4294901760, %v9154_v16  ;;  %v9314_v23 = vpack.c.bf16 %v1653_v15, %v1641_v50  ;;  %v9316_v43 = vpack.c.bf16 %v2196_v8, %v2184_v5  ;;  %7709 = vmatpush1.bf16.msra.mxu0 %v7708_v11  ;;  %12993 = vst [vmem:[#allocation68_spill] sm:$0xff] %v9326_v54  ;;  %v12995_v8 = vld [vmem:[#allocation11_spill] sm:$0xff] }
 0x117   : > { %v9300_v46 = vpack.c.bf16 %v12988_v41, %v12987_v55  ;;  %v9306_v34 = vpack.c.bf16 %v12990_v12, %v12989_v51  ;;  %v9318_v25 = vpack.c.bf16 %v1659_v27, %v1647_v39  ;;  %v7756_v37 = vpack.c.bf16 %v2204_v49, %v2192_v30  ;;  %7711 = vmatprep.subr.bf16.mxu0 %v7710_v28  ;;  %v12996_v55 = vld [vmem:[#allocation23_spill] sm:$0xff] }
 0x118   : > { %v9312_v44 = vpack.c.bf16 %v12992_v48, %v12991_v26  ;;  %v9320_v60 = vpack.c.bf16 %v2202_v52, %v2190_v38  ;;  %v491_v21 = vsub.f32 %v8781_v0, %v8769_v59  ;;  %v507_v19 = vsub.f32 %v8781_v0, %v8809_v14  ;;  %v9336_v38 = vpop.permute.xlu1 %6631 }
 0x119   : > { %v715_v15 = vsub.f32 %v8792_v6, %v8767_v58  ;;  %v731_v39 = vsub.f32 %v8792_v6, %v8807_v13  ;;  %v939_v49 = vsub.f32 %v8814_v22, %v8862_v17  ;;  %v955_v52 = vsub.f32 %v8814_v22, %v8850_v62  ;;  %7757 = vmatpush1.bf16.msra.mxu1 %v7756_v37 }
 0x11a   : > { %12994 = vst [vmem:[#allocation69_spill] sm:$0xff] %v9336_v38  ;;  %v1003_v16 = vmul.f32 %v491_v21, %v491_v21  ;;  %v1019_v11 = vmul.f32 %v507_v19, %v507_v19  ;;  %v493_v50 = vsub.f32 %v8795_v7, %v8769_v59  ;;  %v509_v5 = vsub.f32 %v8795_v7, %v8809_v14 }
 0x11b   : > { %7759 = vmatprep.subr.bf16.mxu1 %v7758_v56  ;;  %1721 = vmatmul.mubr.f32.vlgmr.msra.gmra.mrb[0].mxu0 %v12995_v8  ;;  %v1067_v27 = vmul.f32 %v715_v15, %v715_v15  ;;  %v1083_v28 = vmul.f32 %v731_v39, %v731_v39  ;;  %v1195_v30 = vmul.f32 %v939_v49, %v939_v49  ;;  %v9360_v15 = vpop.permute.xlu0 %5924 }
 0x11c   : > { %7713 = vmatpush1.bf16.msra.mxu0 %v7712_v2  ;;  %1807 = vmatprep.mubr.f32.mxu0 %v12918_v32  ;;  %v1211_v35 = vmul.f32 %v955_v52, %v955_v52  ;;  %v717_v41 = vsub.f32 %v12996_v55, %v8767_v58  ;;  %v733_v51 = vsub.f32 %v12996_v55, %v8807_v13  ;;  %v12997_v2 = vld [vmem:[#allocation27_spill] sm:$0xff] }
 0x11d   : > { %2264 = vmatmul.mubr.f32.vlgmr.msra.gmra.mrb[0].mxu1 %v12995_v8  ;;  %7715 = vmatprep.subr.bf16.mxu0 %v7714_v53  ;;  %v1131_v12 = vadd.f32 %v1067_v27, %v1003_v16  ;;  %v1147_v26 = vadd.f32 %v1083_v28, %v1019_v11  ;;  %v941_v48 = vsub.f32 %v12997_v2, %v8862_v17  ;;  %v9362_v16 = vpop.permute.xlu1 %6635 }
 0x11e   : > { %7761 = vmatpush1.bf16.msra.mxu1 %v7760_v9  ;;  %2350 = vmatprep.mubr.f32.mxu1 %v12918_v32  ;;  %v957_v37 = vsub.f32 %v12997_v2, %v8850_v62  ;;  %v1005_v21 = vmul.f32 %v493_v50, %v493_v50  ;;  %v1021_v19 = vmul.f32 %v509_v5, %v509_v5  ;;  %v13000_v9 = vld [vmem:[#allocation24_spill] sm:$0xff]  ;;  %v13001_v50 = vmov 1.0|1.0  }
 0x11f   : > { %12998 = vst [vmem:[#allocation23_spill] sm:$0xff] %v9360_v15  ;;  %7763 = vmatprep.subr.bf16.mxu1 %v7762_v1  ;;  %v1259_v39 = vadd.f32 %v1195_v30, %v1131_v12  ;;  %v1275_v49 = vadd.f32 %v1211_v35, %v1147_v26  ;;  %v1069_v52 = vmul.f32 %v717_v41, %v717_v41  ;;  %12999 = vst [vmem:[#allocation27_spill] sm:$0xff] %v9362_v16 }
 0x120   : > { %v1085_v53 = vmul.f32 %v733_v51, %v733_v51  ;;  %7717 = vmatpush1.bf16.msra.mxu0 %v7716_v45  ;;  %v1197_v11 = vmul.f32 %v941_v48, %v941_v48  ;;  %v1213_v27 = vmul.f32 %v957_v37, %v957_v37  ;;  %v490_v28 = vsub.f32 %v13000_v9, %v8769_v59 }
 0x121   : > { %v506_v56 = vsub.f32 %v13000_v9, %v8809_v14  ;;  %7719 = vmatprep.subr.msk.bf16.mxu0 %vm8994_vm8, %v13001_v50  ;;  %vm9372_vm4 = vcmp.le.f32.partialorder %v1259_v39, %v8968_v31  ;;  %vm9377_vm3 = vcmp.le.f32.partialorder %v1275_v49, %v8906_v57  ;;  %v1133_v5 = vadd.f32 %v1069_v52, %v1005_v21  ;;  %v13011_v52 = vld [vmem:[#allocation56_spill] sm:$0xff]  ;;  %v13021_v49 = vld [vmem:[#allocation61_spill] sm:$0xff] }
 0x122   : > { %v1149_v30 = vadd.f32 %v1085_v53, %v1021_v19  ;;  %7765 = vmatpush1.bf16.msra.mxu1 %v7764_v3  ;;  %v5944_v35 = vsel %vm9372_vm4, %v9360_v15, -inf  ;;  %v5960_v41 = vsel %vm9377_vm3, %v9251_v36, -inf  ;;  %v6297_v51 = vsel %vm9372_vm4, %v9279_v18, inf  ;;  %v13013_v53 = vld [vmem:[#allocation28_spill] sm:$0xff] }
 0x123   : > { %v6313_v12 = vsel %vm9377_vm3, %v9326_v54, inf  ;;  %7767 = vmatprep.subr.msk.bf16.mxu1 %vm9010_vm10, %v13001_v50  ;;  %1810 = vmatmul.mubr.f32.vlgmr.msra.gmra.mrb[0].mxu0 %v13006_v10  ;;  %v9400_v61 = vmax.f32 %v5944_v35, %v5960_v41  ;;  %v6651_v26 = vsel %vm9372_vm4, %v9336_v38, -inf  ;;  %v6667_v48 = vsel %vm9377_vm3, %v9362_v16, -inf }
 0x124   : > { %v9402_v3 = vmin.f32 %v6297_v51, %v6313_v12  ;;  %7721 = vmatpush1.bf16.msk.msra.mxu0 %vm9023_vm11, %v13001_v50  ;;  %1888 = vmatprep.mubr.f32.mxu0 %v12918_v32  ;;  %v9417_v21 = vmax.f32 %v6651_v26, %v6667_v48  ;;  %v1261_v19 = vadd.f32 %v1197_v11, %v1133_v5  ;;  %v13014_v51 = vld [vmem:[#allocation64_spill] sm:$0xff]  ;;  %v8484_v26 = vmov 1966171168  }
 0x125   : > { %13007 = vst [vmem:[#allocation24_spill] sm:$0xff] %v9400_v61  ;;  %v1277_v39 = vadd.f32 %v1213_v27, %v1149_v30  ;;  %2353 = vmatmul.mubr.f32.vlgmr.msra.gmra.mrb[0].mxu1 %v13006_v10  ;;  %vm13012_vm0 = vnez %v13011_v52  ;;  %v714_v35 = vsub.f32 %v13013_v53, %v8767_v58  ;;  %v730_v41 = vsub.f32 %v13013_v53, %v8807_v13  ;;  %v13015_v27 = vld [vmem:[#allocation50_spill] sm:$0xff]  ;;  %v13028_v61 = vld [vmem:[#allocation19_spill] sm:$0xff] }
 0x126   : > { %13008 = vst [vmem:[#allocation70_spill] sm:$0xff] %v9402_v3  ;;  %13009 = vst [vmem:[#allocation71_spill] sm:$0xff] %v9417_v21  ;;  %7723 = vmatprep.subr.msk.bf16.mxu0 %vm13012_vm0, %v13001_v50  ;;  %v938_v11 = vsub.f32 %v13014_v51, %v8862_v17  ;;  %vm13016_vm1 = vnez %v13015_v27  ;;  %2431 = vmatprep.mubr.f32.mxu1 %v12918_v32  ;;  %vm9437_vm12 = vcmp.le.f32.partialorder %v1261_v19, %v8968_v31  ;;  %v13057_v45 = vmov 0 }
 0x127   : > { %7769 = vmatpush1.bf16.msk.msra.mxu1 %vm13016_vm1, %v13001_v50  ;;  %vm9442_vm15 = vcmp.le.f32.partialorder %v1277_v39, %v8906_v57  ;;  %v954_v12 = vsub.f32 %v13014_v51, %v8850_v62  ;;  %v9448_v48 = vunpack.c.l.s4 %v8484_v26  ;;  %vm13022_vm14 = vnez %v13021_v49 }
 0x128   : > { %7771 = vmatprep.subr.msk.bf16.mxu1 %vm13022_vm14, %v13001_v50  ;;  %v5946_v19 = vsel %vm9437_vm12, %v9360_v15, -inf  ;;  %v5962_v39 = vsel %vm9442_vm15, %v9251_v36, -inf  ;;  %v6299_v42 = vsel %vm9437_vm12, %v9279_v18, inf  ;;  %v6315_v26 = vsel %vm9442_vm15, %v9326_v54, inf  ;;  %7725 = vmatpush1.bf16.msk.msra.mxu0 %vm9141_vm9, %v13001_v50 }
 0x129   : > { %v9468_v24 = vmax.f32 %v5946_v19, %v5962_v39  ;;  %v9470_v40 = vmin.f32 %v6299_v42, %v6315_v26  ;;  %v6653_v4 = vsel %vm9437_vm12, %v9336_v38, -inf  ;;  %v6669_v20 = vsel %vm9442_vm15, %v9362_v16, -inf  ;;  %7727 = vmatprep.subr.bf16.mxu0 %v9294_v63 }
 0x12a   : > { %v9479_v10 = vmax.f32 %v6653_v4, %v6669_v20  ;;  %v1002_v51 = vmul.f32 %v490_v28, %v490_v28  ;;  %v1018_v21 = vmul.f32 %v506_v56, %v506_v56  ;;  %v1066_v3 = vmul.f32 %v714_v35, %v714_v35  ;;  %v13029_v4 = vld [vmem:[#allocation30_spill] sm:$0xff] }
 0x12b   : > { %13024 = vst [vmem:[#allocation56_spill] sm:$0xff] %v9468_v24  ;;  %13025 = vst [vmem:[#allocation28_spill] sm:$0xff] %v9470_v40  ;;  %7773 = vmatpush1.bf16.msk.msra.mxu1 %vm9163_vm2, %v13001_v50  ;;  %v1082_v42 = vmul.f32 %v730_v41, %v730_v41  ;;  %v1194_v39 = vmul.f32 %v938_v11, %v938_v11  ;;  %v1210_v26 = vmul.f32 %v954_v12, %v954_v12  ;;  %v13027_v40 = vld [vmem:[#allocation29_spill] sm:$0xff]  ;;  %v13053_v49 = vmov 0 }
 0x12c   : > { %v492_v24 = vsub.f32 %v13027_v40, %v8769_v59  ;;  %7775 = vmatprep.subr.bf16.mxu1 %v9300_v46  ;;  %1892 = vmatmul.mubr.f32.vlgmr.msra.gmra.mrb[0].mxu0 %v13028_v61  ;;  %v1130_v63 = vadd.f32 %v1066_v3, %v1002_v51  ;;  %v508_v20 = vsub.f32 %v13027_v40, %v8809_v14  ;;  %v13030_v46 = vld [vmem:[#allocation65_spill] sm:$0xff]  ;;  %v9502_v3 = vsel %vm9372_vm4, 1.0, %v12918_v32 }
 0x12d   : > { %v716_v56 = vsub.f32 %v13029_v4, %v8767_v58  ;;  %7729 = vmatpush1.bf16.msra.mxu0 %v9306_v34  ;;  %1986 = vmatprep.mubr.f32.mxu0 %v12918_v32  ;;  %v1146_v35 = vadd.f32 %v1082_v42, %v1018_v21  ;;  %v732_v41 = vsub.f32 %v13029_v4, %v8807_v13  ;;  %v9511_v12 = vsel %vm9377_vm3, 1.0, %v12918_v32  ;;  %v13037_v58 = vld [vmem:[#allocation34_spill] sm:$0xff] }
 0x12e   : > { %v940_v11 = vsub.f32 %v13030_v46, %v8862_v17  ;;  %2435 = vmatmul.mubr.f32.vlgmr.msra.gmra.mrb[0].mxu1 %v13028_v61  ;;  %7731 = vmatprep.subr.bf16.mxu0 %v9314_v23  ;;  %v1258_v51 = vadd.f32 %v1194_v39, %v1130_v63  ;;  %v956_v34 = vsub.f32 %v13030_v46, %v8850_v62  ;;  %v9518_v23 = vsel %vm9437_vm12, 1.0, %v12918_v32 }
 0x12f   : > { %v1004_v21 = vmul.f32 %v492_v24, %v492_v24  ;;  %7777 = vmatpush1.bf16.msra.mxu1 %v9312_v44  ;;  %2529 = vmatprep.mubr.f32.mxu1 %v12918_v32  ;;  %v1274_v42 = vadd.f32 %v1210_v26, %v1146_v35  ;;  %v1020_v28 = vmul.f32 %v508_v20, %v508_v20  ;;  %v9541_v35 = vpop.permute.xlu1 %6285  ;;  %v13060_v5 = vmov 0 }
 0x130   : > { %v1068_v17 = vmul.f32 %v716_v56, %v716_v56  ;;  %7779 = vmatprep.subr.bf16.mxu1 %v9316_v43  ;;  %vm9522_vm5 = vcmp.le.f32.partialorder %v1258_v51, %v8968_v31  ;;  %v1084_v39 = vmul.f32 %v732_v41, %v732_v41  ;;  %v1196_v63 = vmul.f32 %v940_v11, %v940_v11 }
 0x131   : > { %v1212_v44 = vmul.f32 %v956_v34, %v956_v34  ;;  %7733 = vmatpush1.bf16.msra.mxu0 %v9318_v25  ;;  %vm9528_vm6 = vcmp.le.f32.partialorder %v1274_v42, %v8906_v57  ;;  %v5943_v20 = vsel %vm9522_vm5, %v9360_v15, -inf  ;;  %v6296_v43 = vsel %vm9522_vm5, %v9279_v18, inf  ;;  %13035 = vst [vmem:[#allocation50_spill] sm:$0xff] %v9541_v35  ;;  %v9555_v34 = vpop.permute.xlu0 %5932 }
 0x132   : > { %v6650_v56 = vsel %vm9522_vm5, %v9336_v38, -inf  ;;  %7735 = vmatprep.subr.msk.bf16.mxu0 %vm8994_vm8, %v13001_v50  ;;  %v5959_v25 = vsel %vm9528_vm6, %v9251_v36, -inf  ;;  %v6312_v41 = vsel %vm9528_vm6, %v9326_v54, inf  ;;  %v6666_v11 = vsel %vm9528_vm6, %v9362_v16, -inf  ;;  %13036 = vst [vmem:[#allocation61_spill] sm:$0xff] %v9555_v34 }
 0x133   : > { %v1132_v51 = vadd.f32 %v1068_v17, %v1004_v21  ;;  %7781 = vmatpush1.bf16.msra.mxu1 %v9320_v60  ;;  %v9558_v42 = vmax.f32 %v5943_v20, %v5959_v25  ;;  %v9560_v47 = vmin.f32 %v6296_v43, %v6312_v41  ;;  %v9562_v61 = vmax.f32 %v6650_v56, %v6666_v11  ;;  %v13038_v21 = vld [vmem:[#allocation31_spill] sm:$0xff]  ;;  %v9626_v41 = vpop.permute.xlu1 %6639 }
 0x134   : > { %v1148_v62 = vadd.f32 %v1084_v39, %v1020_v28  ;;  %7783 = vmatprep.subr.msk.bf16.mxu1 %vm9010_vm10, %v13001_v50  ;;  %1988 = vmatmul.mubr.f32.vlgmr.msra.gmra.mrb[0].mxu0 %v12995_v8  ;;  %v523_v17 = vsub.f32 %v8781_v0, %v13037_v58  ;;  %v539_v60 = vsub.f32 %v8781_v0, %v13038_v21  ;;  %v9575_v20 = vsel %vm9442_vm15, 1.0, %v12918_v32  ;;  %v13040_v28 = vld [vmem:[#allocation36_spill] sm:$0xff] }
 0x135   : > { %v1260_v13 = vadd.f32 %v1196_v63, %v1132_v51  ;;  %13039 = vst [vmem:[#allocation62_spill] sm:$0xff] %v9575_v20  ;;  %7737 = vmatpush1.bf16.msk.msra.mxu0 %vm9023_vm11, %v13001_v50  ;;  %2066 = vmatprep.mubr.f32.mxu0 %v12918_v32  ;;  %v747_v39 = vsub.f32 %v8792_v6, %v13040_v28  ;;  %v13041_v63 = vld [vmem:[#allocation38_spill] sm:$0xff]  ;;  %v9588_v0 = vsel %vm9522_vm5, 1.0, %v12918_v32  ;;  %v9606_v25 = vsel %vm9528_vm6, 1.0, %v12918_v32 }
 0x136   : > { %v1276_v29 = vadd.f32 %v1212_v44, %v1148_v62  ;;  %v763_v43 = vsub.f32 %v8792_v6, %v13041_v63  ;;  %13042 = vst [vmem:[#allocation63_spill] sm:$0xff] %v9588_v0  ;;  %2531 = vmatmul.mubr.f32.vlgmr.msra.gmra.mrb[0].mxu1 %v12995_v8  ;;  %7739 = vmatprep.subr.msk.bf16.mxu0 %vm13012_vm0, %v13001_v50  ;;  %v13046_v6 = vld [vmem:[#allocation41_spill] sm:$0xff]  ;;  %13047 = vst [vmem:[#allocation29_spill] sm:$0xff] %v9606_v25 }
 0x137   : > { %vm9595_vm8 = vcmp.le.f32.partialorder %v1260_v13, %v8968_v31  ;;  %v971_v44 = vsub.f32 %v8814_v22, %v13045_v33  ;;  %v987_v56 = vsub.f32 %v8814_v22, %v13046_v6  ;;  %7785 = vmatpush1.bf16.msk.msra.mxu1 %vm13016_vm1, %v13001_v50  ;;  %2609 = vmatprep.mubr.f32.mxu1 %v12918_v32  ;;  %v13048_v13 = vmov 0  ;;  %vm9649_vm1 = vmpackc.low %vm9377_vm3, %vm9372_vm4 }
 0x138   : > { %vm9613_vm10 = vcmp.le.f32.partialorder %v1276_v29, %v8906_v57  ;;  %v5945_v22 = vsel %vm9595_vm8, %v9360_v15, -inf  ;;  %v6298_v52 = vsel %vm9595_vm8, %v9279_v18, inf  ;;  %v6652_v27 = vsel %vm9595_vm8, %v9336_v38, -inf  ;;  %13051 = vst [vmem:[#allocation65_spill] sm:$0xff] %v9626_v41  ;;  %7787 = vmatprep.subr.msk.bf16.mxu1 %vm13022_vm14, %v13001_v50  ;;  %v9640_v38 = vpop.permute.xlu0 %5936  ;;  %vm9669_vm3 = vmpackc.low %vm9442_vm15, %vm9437_vm12 }
 0x139   : > { %v13049_v13 = vsel %vm9613_vm10, 4294967295, %v13048_v13  ;;  %v5961_v11 = vsel %vm9613_vm10, %v9251_v36, -inf  ;;  %v6314_v51 = vsel %vm9613_vm10, %v9326_v54, inf  ;;  %v6668_v29 = vsel %vm9613_vm10, %v9362_v16, -inf  ;;  %13052 = vst [vmem:[#allocation34_spill] sm:$0xff] %v9640_v38  ;;  %7741 = vmatpush1.bf16.msk.msra.mxu0 %vm9141_vm9, %v13001_v50  ;;  %vm9712_vm4 = vmpackc.low %vm9613_vm10, %vm9595_vm8 }
 0x13a   : > { %13050 = vst [vmem:[#allocation30_spill] sm:$0xff] %v13049_v13  ;;  %v1035_v18 = vmul.f32 %v523_v17, %v523_v17  ;;  %v13054_v49 = vsel %vm9649_vm1, 4294967295, %v13053_v49  ;;  %v9653_v54 = vmax.f32 %v5945_v22, %v5961_v11  ;;  %v9655_v36 = vmin.f32 %v6298_v52, %v6314_v51  ;;  %7791 = vmatprep.subr.msk.bf16.mxu0 %vm9649_vm1, %v13001_v50 }
 0x13b   : > { %13055 = vst [vmem:[#allocation31_spill] sm:$0xff] %v13054_v49  ;;  %v9657_v16 = vmax.f32 %v6652_v27, %v6668_v29  ;;  %v1051_v17 = vmul.f32 %v539_v60, %v539_v60  ;;  %v1099_v37 = vmul.f32 %v747_v39, %v747_v39  ;;  %v1115_v57 = vmul.f32 %v763_v43, %v763_v43 }
 0x13c   : > { %v1227_v1 = vmul.f32 %v971_v44, %v971_v44  ;;  %v1243_v31 = vmul.f32 %v987_v56, %v987_v56  ;;  %7789 = vmatpush1.bf16.msk.msra.mxu1 %vm9163_vm2, %v13001_v50  ;;  %v13058_v45 = vsel %vm9669_vm3, 4294967295, %v13057_v45  ;;  %v525_v60 = vsub.f32 %v8795_v7, %v13037_v58  ;;  %2068 = vmatmul.mubr.f32.vlgmr.msra.gmra.mrb[0].mxu0 %v12995_v8  ;;  %vm9689_vm2 = vmpackc.low %vm9528_vm6, %vm9522_vm5 }
 0x13d   : > { %13056 = vst [vmem:[#allocation36_spill] sm:$0xff] %v9657_v16  ;;  %13059 = vst [vmem:[#allocation72_spill] sm:$0xff] %v13058_v45  ;;  %v541_v39 = vsub.f32 %v8795_v7, %v13038_v21  ;;  %v749_v43 = vsub.f32 %v12996_v55, %v13040_v28  ;;  %v765_v19 = vsub.f32 %v12996_v55, %v13041_v63  ;;  %7839 = vmatprep.subr.msk.bf16.mxu1 %vm9669_vm3, %v13001_v50 }
 0x13e   : > { %v13061_v5 = vsel %vm9689_vm2, 4294967295, %v13060_v5  ;;  %v1163_v7 = vadd.f32 %v1099_v37, %v1035_v18  ;;  %v1179_v30 = vadd.f32 %v1115_v57, %v1051_v17  ;;  %v973_v44 = vsub.f32 %v12997_v2, %v13045_v33  ;;  %7793 = vmatpush1.bf16.msk.msra.mxu0 %vm9689_vm2, %v13001_v50  ;;  %v9705_v18 = vpop.permute.xlu1 %6289  ;;  %2689 = vmatprep.mubr.f32.mxu0 %v12918_v32 }
 0x13f   : > { %13062 = vst [vmem:[#allocation73_spill] sm:$0xff] %v13061_v5  ;;  %v9698_v55 = vsel %vm9595_vm8, 1.0, %v12918_v32  ;;  %v989_v24 = vsub.f32 %v12997_v2, %v13046_v6  ;;  %v1037_v26 = vmul.f32 %v525_v60, %v525_v60  ;;  %v1053_v56 = vmul.f32 %v541_v39, %v541_v39  ;;  %13064 = vst [vmem:[#allocation75_spill] sm:$0xff] %v9705_v18  ;;  %v9716_v2 = vpop.permute.xlu0 %6643  ;;  %v13069_v60 = vld [vmem:[#allocation49_spill] sm:$0xff] }
 0x140   : > { %13063 = vst [vmem:[#allocation74_spill] sm:$0xff] %v9698_v55  ;;  %v1101_v22 = vmul.f32 %v749_v43, %v749_v43  ;;  %2611 = vmatmul.mubr.f32.vlgmr.msra.gmra.mrb[0].mxu1 %v12995_v8  ;;  %v13065_v57 = vmov 0  ;;  %v1291_v52 = vadd.f32 %v1227_v1, %v1163_v7  ;;  %v1307_v27 = vadd.f32 %v1243_v31, %v1179_v30  ;;  %13068 = vst [vmem:[#allocation77_spill] sm:$0xff] %v9716_v2  ;;  %v13073_v31 = vld [vmem:[#allocation51_spill] sm:$0xff] }
 0x141   : > { %v13066_v57 = vsel %vm9712_vm4, 4294967295, %v13065_v57  ;;  %v1117_v11 = vmul.f32 %v765_v19, %v765_v19  ;;  %v1229_v51 = vmul.f32 %v973_v44, %v973_v44  ;;  %7841 = vmatpush1.bf16.msk.msra.mxu1 %vm9712_vm4, %v13001_v50  ;;  %v1245_v17 = vmul.f32 %v989_v24, %v989_v24  ;;  %3232 = vmatprep.mubr.f32.mxu1 %v12918_v32 }
 0x142   : > { %13067 = vst [vmem:[#allocation76_spill] sm:$0xff] %v13066_v57  ;;  %v1165_v29 = vadd.f32 %v1101_v22, %v1037_v26  ;;  %v522_v62 = vsub.f32 %v13000_v9, %v13037_v58  ;;  %v538_v37 = vsub.f32 %v13000_v9, %v13038_v21  ;;  %vm9726_vm5 = vcmp.le.f32.partialorder %v1291_v52, %v13069_v60  ;;  %v13080_v26 = vld [vmem:[#allocation24_spill] sm:$0xff]  ;;  %v13081_v22 = vld [vmem:[#allocation70_spill] sm:$0xff]  ;;  %v13082_v57 = vld [vmem:[#allocation71_spill] sm:$0xff] }
 0x143   : > { %v13070_v1 = vmov 0  ;;  %vm9731_vm6 = vcmp.le.f32.partialorder %v1307_v27, %v13073_v31  ;;  %v13074_v39 = vmov 0  ;;  %v1181_v43 = vadd.f32 %v1117_v11, %v1053_v56 }
 0x144   : > { %v13071_v1 = vsel %vm9726_vm5, 4294967295, %v13070_v1  ;;  %v13075_v39 = vsel %vm9731_vm6, 4294967295, %v13074_v39  ;;  %v746_v19 = vsub.f32 %v13013_v53, %v13040_v28  ;;  %vm9742_vm9 = vmpackc.low %vm9731_vm6, %vm9726_vm5  ;;  %v13077_v9 = vmov 0 }
 0x145   : > { %13072 = vst [vmem:[#allocation78_spill] sm:$0xff] %v13071_v1  ;;  %13076 = vst [vmem:[#allocation79_spill] sm:$0xff] %v13075_v39  ;;  %v13078_v9 = vsel %vm9742_vm9, 4294967295, %v13077_v9  ;;  %v5976_v7 = vsel %vm9726_vm5, %v9555_v34, -inf  ;;  %v5992_v30 = vsel %vm9731_vm6, %v9640_v38, -inf  ;;  %v6329_v44 = vsel %vm9726_vm5, %v9541_v35, inf  ;;  %7795 = vmatprep.subr.msk.bf16.mxu0 %vm9742_vm9, %v13001_v50 }
 0x146   : > { %13079 = vst [vmem:[#allocation80_spill] sm:$0xff] %v13078_v9  ;;  %v6345_v24 = vsel %vm9731_vm6, %v9705_v18, inf  ;;  %v6049_v56 = vmax.f32 %v13080_v26, %v5976_v7  ;;  %v6402_v52 = vmin.f32 %v13081_v22, %v6329_v44  ;;  %v6683_v27 = vsel %vm9726_vm5, %v9626_v41, -inf  ;;  %v13083_v7 = vld [vmem:[#allocation64_spill] sm:$0xff] }
 0x147   : > { %v6699_v11 = vsel %vm9731_vm6, %v9716_v2, -inf  ;;  %v6756_v5 = vmax.f32 %v13082_v57, %v6683_v27  ;;  %v1293_v45 = vadd.f32 %v1229_v51, %v1165_v29  ;;  %v1309_v49 = vadd.f32 %v1245_v17, %v1181_v43  ;;  %v13094_v27 = vld [vmem:[#allocation28_spill] sm:$0xff] }
 0x148   : > { %v762_v9 = vsub.f32 %v13013_v53, %v13041_v63  ;;  %v6050_v14 = vmax.f32 %v6049_v56, %v5992_v30  ;;  %v6403_v59 = vmin.f32 %v6402_v52, %v6345_v24  ;;  %v970_v44 = vsub.f32 %v13083_v7, %v13045_v33 }
 0x149   : > { %v986_v26 = vsub.f32 %v13083_v7, %v13046_v6  ;;  %v6757_v22 = vmax.f32 %v6756_v5, %v6699_v11  ;;  %vm9778_vm11 = vcmp.le.f32.partialorder %v1293_v45, %v13069_v60  ;;  %v13084_v8 = vmov 0 }
 0x14a   : > { %v13085_v8 = vsel %vm9778_vm11, 4294967295, %v13084_v8  ;;  %vm9783_vm12 = vcmp.le.f32.partialorder %v1309_v49, %v13073_v31  ;;  %v13087_v57 = vmov 0  ;;  %v1034_v53 = vmul.f32 %v522_v62, %v522_v62  ;;  %v13093_v62 = vld [vmem:[#allocation56_spill] sm:$0xff] }
 0x14b   : > { %13086 = vst [vmem:[#allocation24_spill] sm:$0xff] %v13085_v8  ;;  %v13088_v57 = vsel %vm9783_vm12, 4294967295, %v13087_v57  ;;  %v6051_v51 = vrot.slane %v6050_v14, 4  ;;  %v6404_v29 = vrot.slane %v6403_v59, 4  ;;  %vm9791_vm14 = vmpackc.low %vm9783_vm12, %vm9778_vm11  ;;  %v13090_v17 = vmov 0 }
 0x14c   : > { %13089 = vst [vmem:[#allocation70_spill] sm:$0xff] %v13088_v57  ;;  %v13091_v17 = vsel %vm9791_vm14, 4294967295, %v13090_v17  ;;  %v5978_v45 = vsel %vm9778_vm11, %v9555_v34, -inf  ;;  %v5994_v49 = vsel %vm9783_vm12, %v9640_v38, -inf  ;;  %v6758_v5 = vrot.slane %v6757_v22, 4  ;;  %7843 = vmatprep.subr.msk.bf16.mxu1 %vm9791_vm14, %v13001_v50 }
 0x14d   : > { %13092 = vst [vmem:[#allocation71_spill] sm:$0xff] %v13091_v17  ;;  %v6067_v43 = vmax.f32 %v13093_v62, %v5978_v45  ;;  %v6331_v30 = vsel %vm9778_vm11, %v9541_v35, inf  ;;  %v6347_v24 = vsel %vm9783_vm12, %v9705_v18, inf  ;;  %v6052_v56 = vmax.f32 %v6050_v14, %v6051_v51 }
 0x14e   : > { %v6405_v52 = vmin.f32 %v6403_v59, %v6404_v29  ;;  %v6420_v11 = vmin.f32 %v13094_v27, %v6331_v30  ;;  %v6685_v7 = vsel %vm9778_vm11, %v9626_v41, -inf  ;;  %v6759_v17 = vmax.f32 %v6757_v22, %v6758_v5 }
 0x14f   : > { %v6068_v15 = vmax.f32 %v6067_v43, %v5994_v49  ;;  %v6701_v45 = vsel %vm9783_vm12, %v9716_v2, -inf  ;;  %v6774_v62 = vmax.f32 %v9479_v10, %v6685_v7  ;;  %v6053_v39 = vrot.slane %v6052_v56, 2 }
 0x150   : > { %v6406_v1 = vrot.slane %v6405_v52, 2  ;;  %v6421_v55 = vmin.f32 %v6420_v11, %v6347_v24  ;;  %v1050_v13 = vmul.f32 %v538_v37, %v538_v37  ;;  %v6760_v14 = vrot.slane %v6759_v17, 2 }
 0x151   : > { %v6069_v59 = vrot.slane %v6068_v15, 4  ;;  %v6775_v51 = vmax.f32 %v6774_v62, %v6701_v45  ;;  %v1098_v29 = vmul.f32 %v746_v19, %v746_v19  ;;  %v6054_v30 = vmax.f32 %v6052_v56, %v6053_v39 }
 0x152   : > { %v6407_v27 = vmin.f32 %v6405_v52, %v6406_v1  ;;  %v6422_v8 = vrot.slane %v6421_v55, 4  ;;  %v1114_v25 = vmul.f32 %v762_v9, %v762_v9  ;;  %v6761_v22 = vmax.f32 %v6759_v17, %v6760_v14  ;;  %v13095_v52 = vld [vmem:[#allocation10_spill] sm:$0xff] }
 0x153   : > { %v6070_v49 = vmax.f32 %v6068_v15, %v6069_v59  ;;  %v6776_v5 = vrot.slane %v6775_v51, 4  ;;  %v1162_v43 = vadd.f32 %v1098_v29, %v1034_v53  ;;  %v6055_v57 = vrot.slane %v6054_v30, 1 }
 0x154   : > { %v6408_v0 = vrot.slane %v6407_v27, 1  ;;  %v6423_v20 = vmin.f32 %v6421_v55, %v6422_v8  ;;  %v1178_v10 = vadd.f32 %v1114_v25, %v1050_v13  ;;  %v6762_v7 = vrot.slane %v6761_v22, 1 }
 0x155   : > { %v6071_v16 = vrot.slane %v6070_v49, 2  ;;  %v6777_v24 = vmax.f32 %v6775_v51, %v6776_v5  ;;  %v1226_v37 = vmul.f32 %v970_v44, %v970_v44  ;;  %v9819_v11 = vmax.f32 %v6054_v30, %v6055_v57 }
 0x156   : > { %v9821_v45 = vmin.f32 %v6407_v27, %v6408_v0  ;;  %v6424_v39 = vrot.slane %v6423_v20, 2  ;;  %v1242_v1 = vmul.f32 %v986_v26, %v986_v26  ;;  %v9823_v19 = vmax.f32 %v6761_v22, %v6762_v7 }
 0x157   : > { %v6072_v9 = vmax.f32 %v6070_v49, %v6071_v16  ;;  %v6778_v15 = vrot.slane %v6777_v24, 2  ;;  %v1290_v17 = vadd.f32 %v1226_v37, %v1162_v43  ;;  %v13096_v8 = vunpack.c.0.s8 %v9448_v48 }
 0x158   : > { %v6425_v53 = vmin.f32 %v6423_v20, %v6424_v39  ;;  %v1306_v56 = vadd.f32 %v1242_v1, %v1178_v10  ;;  %v524_v13 = vsub.f32 %v13027_v40, %v13037_v58  ;;  %v540_v16 = vsub.f32 %v13027_v40, %v13038_v21 }
 0x159   : > { %v9828_v25 = vsub.s32 %v13096_v8, %v13095_v52  ;;  %v6073_v55 = vrot.slane %v6072_v9, 1  ;;  %v6779_v0 = vmax.f32 %v6777_v24, %v6778_v15  ;;  %vm9833_vm15 = vcmp.le.f32.partialorder %v1290_v17, %v13069_v60  ;;  %v13104_v15 = vld [vmem:[#allocation22_spill] sm:$0xff] }
 0x15a   : > { %v6426_v20 = vrot.slane %v6425_v53, 1  ;;  %vm9840_vm0 = vcmp.le.f32.partialorder %v1306_v56, %v13073_v31  ;;  %v5975_v48 = vsel %vm9833_vm15, %v9555_v34, -inf  ;;  %v6328_v57 = vsel %vm9833_vm15, %v9541_v35, inf }
 0x15b   : > { %13097 = vst [vmem:[#allocation64_spill] sm:$0xff] %v9828_v25  ;;  %v9850_v62 = vmax.f32 %v6072_v9, %v6073_v55  ;;  %v6780_v14 = vrot.slane %v6779_v0, 1  ;;  %vm9856_vm8 = vmpackc.low %vm9840_vm0, %vm9833_vm15  ;;  %v13102_v40 = vmov 0  ;;  %v5991_v59 = vsel %vm9840_vm0, %v9640_v38, -inf }
 0x15c   : > { %v13103_v40 = vsel %vm9856_vm8, 4294967295, %v13102_v40  ;;  %v6040_v51 = vmax.f32 %v9558_v42, %v5975_v48  ;;  %v9864_v29 = vmin.f32 %v6425_v53, %v6426_v20  ;;  %7797 = vmatpush1.bf16.msk.msra.mxu0 %vm9856_vm8, %v13001_v50  ;;  %v6344_v30 = vsel %vm9840_vm0, %v9705_v18, inf }
 0x15d   : > { %v6393_v27 = vmin.f32 %v9560_v47, %v6328_v57  ;;  %v6682_v22 = vsel %vm9833_vm15, %v9626_v41, -inf  ;;  %v9876_v49 = vmax.f32 %v6779_v0, %v6780_v14  ;;  %v6698_v42 = vsel %vm9840_vm0, %v9716_v2, -inf }
 0x15e   : > { %v6041_v5 = vmax.f32 %v6040_v51, %v5991_v59  ;;  %v6747_v43 = vmax.f32 %v9562_v61, %v6682_v22  ;;  %v748_v7 = vsub.f32 %v13029_v4, %v13040_v28  ;;  %v764_v47 = vsub.f32 %v13029_v4, %v13041_v63 }
 0x15f   : > { %v6394_v10 = vmin.f32 %v6393_v27, %v6344_v30  ;;  %v972_v24 = vsub.f32 %v13030_v46, %v13045_v33  ;;  %v988_v1 = vsub.f32 %v13030_v46, %v13046_v6  ;;  %v1036_v9 = vmul.f32 %v524_v13, %v524_v13  ;;  %2695 = vmatmul.mubr.f32.vlgmr.msra.gmra.mrb[2].mxu0 %v13104_v15 }
 0x160   : > { %v6042_v37 = vrot.slane %v6041_v5, 4  ;;  %v6748_v39 = vmax.f32 %v6747_v43, %v6698_v42  ;;  %v1052_v61 = vmul.f32 %v540_v16, %v540_v16  ;;  %v1100_v53 = vmul.f32 %v748_v7, %v748_v7  ;;  %2805 = vmatprep.mubr.f32.mxu0 %v12918_v32 }
 0x161   : > { %v6395_v17 = vrot.slane %v6394_v10, 4  ;;  %v1116_v56 = vmul.f32 %v764_v47, %v764_v47  ;;  %v1228_v4 = vmul.f32 %v972_v24, %v972_v24  ;;  %v1244_v0 = vmul.f32 %v988_v1, %v988_v1 }
 0x162   : > { %v6043_v8 = vmax.f32 %v6041_v5, %v6042_v37  ;;  %v6749_v55 = vrot.slane %v6748_v39, 4  ;;  %v1164_v48 = vadd.f32 %v1100_v53, %v1036_v9  ;;  %v9894_v14 = vsub.f32 %v9502_v3, %v9502_v3 }
 0x163   : > { %v6396_v20 = vmin.f32 %v6394_v10, %v6395_v17  ;;  %v1180_v57 = vadd.f32 %v1116_v56, %v1052_v61  ;;  %v9898_v16 = vsub.f32 %v9511_v12, %v9511_v12  ;;  %v9902_v59 = vsub.f32 %v9518_v23, %v9518_v23 }
 0x164   : > { %v6044_v46 = vrot.slane %v6043_v8, 2  ;;  %v6750_v13 = vmax.f32 %v6748_v39, %v6749_v55  ;;  %v1292_v30 = vadd.f32 %v1228_v4, %v1164_v48  ;;  %v12697_v22 = vand.u32 4294901760, %v9894_v14  ;;  %v13112_v48 = vld [vmem:[#allocation36_spill] sm:$0xff] }
 0x165   : > { %v6397_v51 = vrot.slane %v6396_v20, 2  ;;  %v1308_v27 = vadd.f32 %v1244_v0, %v1180_v57  ;;  %v12696_v3 = vand.u32 4294901760, %v9898_v16  ;;  %v12693_v43 = vand.u32 4294901760, %v9902_v59 }
 0x166   : > { %v6045_v5 = vmax.f32 %v6043_v8, %v6044_v46  ;;  %v6751_v42 = vrot.slane %v6750_v13, 2  ;;  %vm9908_vm8 = vcmp.le.f32.partialorder %v1292_v30, %v13069_v60  ;;  %v2704_v7 = vsub.f32 %v9894_v14, %v12697_v22 }
 0x167   : > { %v6398_v10 = vmin.f32 %v6396_v20, %v6397_v51  ;;  %vm9913_vm14 = vcmp.le.f32.partialorder %v1308_v27, %v13073_v31  ;;  %v13109_v37 = vmov 0  ;;  %v5977_v39 = vsel %vm9908_vm8, %v9555_v34, -inf }
 0x168   : > { %v6046_v47 = vrot.slane %v6045_v5, 1  ;;  %v6752_v24 = vmax.f32 %v6750_v13, %v6751_v42  ;;  %vm9924_vm4 = vmpackc.low %vm9913_vm14, %vm9908_vm8  ;;  %v5993_v1 = vsel %vm9913_vm14, %v9640_v38, -inf  ;;  %v6058_v17 = vmax.f32 %v9653_v54, %v5977_v39 }
 0x169   : > { %v13110_v37 = vsel %vm9924_vm4, 4294967295, %v13109_v37  ;;  %v6399_v9 = vrot.slane %v6398_v10, 1  ;;  %7845 = vmatpush1.bf16.msk.msra.mxu1 %vm9924_vm4, %v13001_v50  ;;  %v6330_v61 = vsel %vm9908_vm8, %v9541_v35, inf  ;;  %v6346_v53 = vsel %vm9913_vm14, %v9705_v18, inf  ;;  %v13181_v35 = vld [vmem:[#allocation68_spill] sm:$0xff] }
 0x16a   : > { %13111 = vst [vmem:[#allocation56_spill] sm:$0xff] %v13110_v37  ;;  %v6047_v56 = vmax.f32 %v6045_v5, %v6046_v47  ;;  %v6753_v8 = vrot.slane %v6752_v24, 1  ;;  %v6411_v55 = vmin.f32 %v9655_v36, %v6330_v61  ;;  %v6684_v4 = vsel %vm9908_vm8, %v9626_v41, -inf }
 0x16b   : > { %v6400_v0 = vmin.f32 %v6398_v10, %v6399_v9  ;;  %v6059_v20 = vmax.f32 %v6058_v17, %v5993_v1  ;;  %v6700_v54 = vsel %vm9913_vm14, %v9716_v2, -inf  ;;  %v6765_v57 = vmax.f32 %v13112_v48, %v6684_v4  ;;  %v13115_v4 = vld [vmem:[#allocation63_spill] sm:$0xff]  ;;  %v13116_v48 = vld [vmem:[#allocation29_spill] sm:$0xff] }
 0x16c   : > { %v6172_v46 = vcombine.low %v6047_v56, %v9819_v11  ;;  %v6754_v13 = vmax.f32 %v6752_v24, %v6753_v8  ;;  %v6412_v51 = vmin.f32 %v6411_v55, %v6346_v53  ;;  %v2705_v30 = vand.u32 4294901760, %v2704_v7  ;;  %3238 = vmatmul.mubr.f32.vlgmr.msra.gmra.mrb[2].mxu1 %v13104_v15  ;;  %v13114_v53 = vld [vmem:[#allocation62_spill] sm:$0xff] }
 0x16d   : > { %v6526_v36 = vcombine.low %v6400_v0, %v9821_v45  ;;  %v6060_v27 = vrot.slane %v6059_v20, 4  ;;  %v6766_v5 = vmax.f32 %v6765_v57, %v6700_v54  ;;  %v2716_v42 = vsub.f32 %v9898_v16, %v12696_v3  ;;  %3348 = vmatprep.mubr.f32.mxu1 %v12918_v32 }
 0x16e   : > { %v9960_v10 = vrot.slane %v6172_v46, %v9828_v25  ;;  %v6880_v11 = vcombine.low %v6754_v13, %v9823_v19  ;;  %v6413_v47 = vrot.slane %v6412_v51, 4  ;;  %v3247_v7 = vsub.f32 %v9902_v59, %v12693_v43 }
 0x16f   : > { %v9967_v45 = vrot.slane %v6526_v36, %v9828_v25  ;;  %v6061_v24 = vmax.f32 %v6059_v20, %v6060_v27  ;;  %v6767_v39 = vrot.slane %v6766_v5, 4  ;;  %v2717_v1 = vand.u32 4294901760, %v2716_v42  ;;  %v13118_v27 = vld [vmem:[#allocation74_spill] sm:$0xff] }
 0x170   : > { %v9970_v9 = vrot.slane %v6880_v11, %v9828_v25  ;;  %v6414_v17 = vmin.f32 %v6412_v51, %v6413_v47  ;;  %v3248_v61 = vand.u32 4294901760, %v3247_v7  ;;  %v9974_v56 = vsub.f32 %v13114_v53, %v13114_v53 }
 0x171   : > { %v6062_v19 = vrot.slane %v6061_v24, 2  ;;  %v6768_v8 = vmax.f32 %v6766_v5, %v6767_v39  ;;  %v7798_v55 = vpack.c.bf16 %v2717_v1, %v2705_v30  ;;  %v9978_v0 = vsub.f32 %v13115_v4, %v13115_v4 }
 0x172   : > { %13113 = vst [vmem:[#allocation28_spill] sm:$0xff] %v9970_v9  ;;  %v6415_v54 = vrot.slane %v6414_v17, 2  ;;  %v12691_v20 = vand.u32 4294901760, %v9974_v56  ;;  %v9983_v57 = vsub.f32 %v13116_v48, %v13116_v48  ;;  %v7452_v13 = vsel %vm9613_vm10, 1.0, %v12918_v32  ;;  %v13158_v9 = vld [vmem:[#allocation33_spill] sm:$0xff] }
 0x173   : > { %v6063_v51 = vmax.f32 %v6061_v24, %v6062_v19  ;;  %v6769_v36 = vrot.slane %v6768_v8, 2  ;;  %7799 = vmatprep.subr.bf16.mxu0 %v7798_v55  ;;  %v12690_v30 = vand.u32 4294901760, %v9978_v0  ;;  %v9991_v5 = vsub.f32 %v13118_v27, %v13118_v27 }
 0x174   : > { %v6416_v42 = vmin.f32 %v6414_v17, %v6415_v54  ;;  %v3259_v11 = vsub.f32 %v9974_v56, %v12691_v20  ;;  %v12692_v47 = vand.u32 4294901760, %v9983_v57  ;;  %v9997_v7 = vsub.f32 %v7452_v13, %v7452_v13 }
 0x175   : > { %v6064_v39 = vrot.slane %v6063_v51, 1  ;;  %v6770_v1 = vmax.f32 %v6768_v8, %v6769_v36  ;;  %v2710_v24 = vsub.f32 %v9978_v0, %v12690_v30  ;;  %v12694_v53 = vand.u32 4294901760, %v9991_v5 }
 0x176   : > { %v6417_v19 = vrot.slane %v6416_v42, 1  ;;  %v3260_v55 = vand.u32 4294901760, %v3259_v11  ;;  %v2722_v17 = vsub.f32 %v9983_v57, %v12692_v47  ;;  %v12695_v4 = vand.u32 4294901760, %v9997_v7 }
 0x177   : > { %v6065_v54 = vmax.f32 %v6063_v51, %v6064_v39  ;;  %v6771_v48 = vrot.slane %v6770_v1, 1  ;;  %v2711_v46 = vand.u32 4294901760, %v2710_v24  ;;  %v3253_v8 = vsub.f32 %v9991_v5, %v12694_v53 }
 0x178   : > { %v6418_v13 = vmin.f32 %v6416_v42, %v6417_v19  ;;  %v7846_v36 = vpack.c.bf16 %v3260_v55, %v3248_v61  ;;  %v2723_v27 = vand.u32 4294901760, %v2722_v17  ;;  %v3265_v11 = vsub.f32 %v9997_v7, %v12695_v4 }
 0x179   : > { %v6173_v30 = vcombine.low %v6065_v54, %v9850_v62  ;;  %v6772_v20 = vmax.f32 %v6770_v1, %v6771_v48  ;;  %v3254_v47 = vand.u32 4294901760, %v3253_v8  ;;  %v7467_v51 = vsel %vm9726_vm5, 1.0, %v12918_v32 }
 0x17a   : > { %v6527_v39 = vcombine.low %v6418_v13, %v9864_v29  ;;  %7847 = vmatprep.subr.bf16.mxu1 %v7846_v36  ;;  %v7800_v24 = vpack.c.bf16 %v2723_v27, %v2711_v46  ;;  %v3266_v53 = vand.u32 4294901760, %v3265_v11  ;;  %v7483_v42 = vsel %vm9731_vm6, 1.0, %v12918_v32  ;;  %v13124_v27 = vld [vmem:[#allocation23_spill] sm:$0xff] }
 0x17b   : > { %v6201_v19 = vrot.slane %v6173_v30, %v9828_v25  ;;  %v6881_v55 = vcombine.low %v6772_v20, %v9876_v49  ;;  %v10023_v62 = vsub.f32 %v7467_v51, %v7467_v51  ;;  %v10025_v1 = vsub.f32 %v7483_v42, %v7483_v42 }
 0x17c   : > { %v6555_v43 = vrot.slane %v6527_v39, %v9828_v25  ;;  %7801 = vmatpush1.bf16.msra.mxu0 %v7800_v24  ;;  %v7848_v17 = vpack.c.bf16 %v3266_v53, %v3254_v47  ;;  %v7469_v54 = vsel %vm9778_vm11, 1.0, %v12918_v32  ;;  %v7485_v46 = vsel %vm9783_vm12, 1.0, %v12918_v32 }
 0x17d   : > { %v6203_v30 = vcombine.low %v9960_v10, %v6201_v19  ;;  %v10036_v49 = vrot.slane %v6881_v55, %v9828_v25  ;;  %v2727_v20 = vand.u32 4294901760, %v10023_v62  ;;  %v2739_v8 = vand.u32 4294901760, %v10025_v1  ;;  %v13159_v10 = vld [vmem:[#allocation32_spill] sm:$0xff] }
 0x17e   : > { %v6557_v13 = vcombine.low %v9967_v45, %v6555_v43  ;;  %7849 = vmatpush1.bf16.msra.mxu1 %v7848_v17  ;;  %v10041_v47 = vsub.f32 %v7469_v54, %v7469_v54  ;;  %v10043_v53 = vsub.f32 %v7485_v46, %v7485_v46  ;;  %v7466_v36 = vsel %vm9833_vm15, 1.0, %v12918_v32 }
 0x17f   : > { %13123 = vst [vmem:[#allocation36_spill] sm:$0xff] %v10036_v49  ;;  %v2728_v39 = vsub.f32 %v10023_v62, %v2727_v20  ;;  %v2740_v45 = vsub.f32 %v10025_v1, %v2739_v8  ;;  %v10056_v24 = vrot.slane %v6203_v30, %v9828_v25  ;;  %v7482_v44 = vsel %vm9840_vm0, 1.0, %v12918_v32 }
 0x180   : > { %v3270_v61 = vand.u32 4294901760, %v10041_v47  ;;  %v3282_v42 = vand.u32 4294901760, %v10043_v53  ;;  %v10064_v19 = vrot.slane %v6557_v13, %v9828_v25  ;;  %v10066_v17 = vsub.f32 %v7466_v36, %v7466_v36 }
 0x181   : > { %13127 = vst [vmem:[#allocation62_spill] sm:$0xff] %v10056_v24  ;;  %v2729_v55 = vand.u32 4294901760, %v2728_v39  ;;  %v2741_v43 = vand.u32 4294901760, %v2740_v45  ;;  %v10070_v48 = vsub.f32 %v7482_v44, %v7482_v44  ;;  %v7468_v46 = vsel %vm9908_vm8, 1.0, %v12918_v32 }
 0x182   : > { %13128 = vst [vmem:[#allocation63_spill] sm:$0xff] %v10064_v19  ;;  %v3271_v29 = vsub.f32 %v10041_v47, %v3270_v61  ;;  %v3283_v54 = vsub.f32 %v10043_v53, %v3282_v42  ;;  %v2733_v26 = vand.u32 4294901760, %v10066_v17  ;;  %v7484_v13 = vsel %vm9913_vm14, 1.0, %v12918_v32 }
 0x183   : > { %v7802_v30 = vpack.c.bf16 %v2741_v43, %v2729_v55  ;;  %v10079_v39 = vsub.f32 %v7468_v46, %v7468_v46  ;;  %v2745_v51 = vand.u32 4294901760, %v10070_v48  ;;  %v10082_v11 = vsub.f32 %v7484_v13, %v7484_v13 }
 0x184   : > { %v3272_v36 = vand.u32 4294901760, %v3271_v29  ;;  %v3284_v45 = vand.u32 4294901760, %v3283_v54  ;;  %v2734_v44 = vsub.f32 %v10066_v17, %v2733_v26  ;;  %v7806_v55 = vpack.c.bf16 %v9898_v16, %v9894_v14 }
 0x185   : > { %7803 = vmatprep.subr.bf16.mxu0 %v7802_v30  ;;  %v3276_v12 = vand.u32 4294901760, %v10079_v39  ;;  %v7854_v23 = vpack.c.bf16 %v9974_v56, %v9902_v59  ;;  %v2746_v46 = vsub.f32 %v10070_v48, %v2745_v51  ;;  %v3288_v29 = vand.u32 4294901760, %v10082_v11 }
 0x186   : > { %v7850_v43 = vpack.c.bf16 %v3284_v45, %v3272_v36  ;;  %v7808_v54 = vpack.c.bf16 %v9983_v57, %v9978_v0  ;;  %v2735_v30 = vand.u32 4294901760, %v2734_v44  ;;  %v7856_v4 = vpack.c.bf16 %v9997_v7, %v9991_v5 }
 0x187   : > { %v3277_v13 = vsub.f32 %v10079_v39, %v3276_v12  ;;  %v7810_v3 = vpack.c.bf16 %v10025_v1, %v10023_v62  ;;  %v2747_v36 = vand.u32 4294901760, %v2746_v46  ;;  %v3289_v45 = vsub.f32 %v10082_v11, %v3288_v29 }
 0x188   : > { %7851 = vmatprep.subr.bf16.mxu1 %v7850_v43  ;;  %v7858_v22 = vpack.c.bf16 %v10043_v53, %v10041_v47  ;;  %v7812_v49 = vpack.c.bf16 %v10070_v48, %v10066_v17  ;;  %v13129_v19 = vand.u32 4294901760, %v9894_v14  ;;  %v13130_v24 = vand.u32 4294901760, %v9898_v16  ;;  %v10119_v47 = vld [vmem:[%s8652_s11 + $0x20] sm:$0x77] }
 0x189   : > { %v3278_v44 = vand.u32 4294901760, %v3277_v13  ;;  %v13131_v62 = vand.u32 4294901760, %v9902_v59  ;;  %v13132_v1 = vand.u32 4294901760, %v9974_v56  ;;  %v7804_v53 = vpack.c.bf16 %v2747_v36, %v2735_v30  ;;  %v10134_v59 = vld [vmem:[%s8652_s11 + $0x28] sm:$0x77] }
 0x18a   : > { %v10110_v52 = vpack.c.bf16 %v13130_v24, %v13129_v19  ;;  %v3290_v17 = vand.u32 4294901760, %v3289_v45  ;;  %v13133_v48 = vand.u32 4294901760, %v9978_v0  ;;  %v13134_v46 = vand.u32 4294901760, %v9983_v57  ;;  %v13137_v57 = vld [vmem:[#allocation12_spill] sm:$0xff] }
 0x18b   : > { %v10116_v43 = vpack.c.bf16 %v13132_v1, %v13131_v62  ;;  %v13135_v14 = vand.u32 4294901760, %v9991_v5  ;;  %v13136_v16 = vand.u32 4294901760, %v9997_v7  ;;  %v10136_v56 = vpack.c.bf16 %v2739_v8, %v2727_v20  ;;  %7805 = vmatpush1.bf16.msra.mxu0 %v7804_v53  ;;  %v13138_v5 = vld [vmem:[#allocation13_spill] sm:$0xff]  ;;  %v13154_v53 = vld [vmem:[#allocation20_spill] sm:$0xff] }
 0x18c   : > { %v10125_v13 = vpack.c.bf16 %v13134_v46, %v13133_v48  ;;  %v10138_v19 = vpack.c.bf16 %v3282_v42, %v3270_v61  ;;  %v10140_v30 = vpack.c.bf16 %v2745_v51, %v2733_v26  ;;  %v10142_v36 = vpack.c.bf16 %v3288_v29, %v3276_v12  ;;  %v13139_v62 = vld [vmem:[#allocation17_spill] sm:$0xff]  ;;  %7807 = vmatprep.subr.bf16.mxu0 %v7806_v55  ;;  %v13140_v61 = vld [vmem:[#allocation14_spill] sm:$0xff]  ;;  %v13141_v12 = vld [vmem:[#allocation15_spill] sm:$0xff] }
 0x18d   : > { %v10131_v24 = vpack.c.bf16 %v13136_v16, %v13135_v14  ;;  %v7852_v0 = vpack.c.bf16 %v3290_v17, %v3278_v44  ;;  %v361_v45 = vrot.slane %v10119_v47, %v13137_v57  ;;  %v589_v7 = vrot.slane %v10119_v47, %v13138_v5  ;;  %v13142_v55 = vld [vmem:[#allocation18_spill] sm:$0xff]  ;;  %v13146_v46 = vld [vmem:[#allocation11_spill] sm:$0xff] }
 0x18e   : > { %v813_v1 = vrot.slane %v10119_v47, %v13139_v62  ;;  %v369_v20 = vrot.slane %v10134_v59, %v13137_v57  ;;  %v597_v8 = vrot.slane %v10134_v59, %v13138_v5  ;;  %v821_v51 = vrot.slane %v10134_v59, %v13139_v62  ;;  %2807 = vmatmul.mubr.f32.vlgmr.msra.gmra.mrb[2].mxu0 %v13146_v46  ;;  %v13153_v48 = vld [vmem:[#allocation26_spill] sm:$0xff]  ;;  %v13182_v62 = vld [vmem:[#allocation27_spill] sm:$0xff] }
 0x18f   : > { %7853 = vmatpush1.bf16.msra.mxu1 %v7852_v0  ;;  %v10159_v26 = vrot.slane %v361_v45, %v13140_v61  ;;  %v10162_v29 = vrot.slane %v589_v7, %v13141_v12  ;;  %7809 = vmatpush1.bf16.msra.mxu0 %v7808_v54  ;;  %v13157_v7 = vld [vmem:[#allocation25_spill] sm:$0xff]  ;;  %vm13188_vm7 = vnez %v13103_v40  ;;  %v13219_v33 = vmov 0 }
 0x190   : > { %v10165_v44 = vrot.slane %v813_v1, %v13142_v55  ;;  %7855 = vmatprep.subr.bf16.mxu1 %v7854_v23  ;;  %v10174_v14 = vrot.slane %v369_v20, %v13140_v61  ;;  %v10177_v16 = vrot.slane %v597_v8, %v13141_v12  ;;  %v10180_v0 = vrot.slane %v821_v51, %v13142_v55  ;;  %v13152_v1 = vld [vmem:[#allocation21_spill] sm:$0xff] }
 0x191   : > { %2893 = vmatprep.mubr.f32.mxu0 %v12918_v32  ;;  %v495_v23 = vsub.f32 %v10159_v26, %v13152_v1  ;;  %v511_v20 = vsub.f32 %v10159_v26, %v13153_v48  ;;  %v719_v8 = vsub.f32 %v10162_v29, %v13154_v53  ;;  %7811 = vmatprep.subr.bf16.mxu0 %v7810_v3 }
 0x192   : > { %13143 = vst [vmem:[#allocation29_spill] sm:$0xff] %v10165_v44  ;;  %13147 = vst [vmem:[#allocation30_spill] sm:$0xff] %v10174_v14  ;;  %3350 = vmatmul.mubr.f32.vlgmr.msra.gmra.mrb[2].mxu1 %v13146_v46  ;;  %v735_v54 = vsub.f32 %v10162_v29, %v13157_v7  ;;  %v943_v17 = vsub.f32 %v10165_v44, %v13158_v9  ;;  %v959_v45 = vsub.f32 %v10165_v44, %v13159_v10 }
 0x193   : > { %13148 = vst [vmem:[#allocation74_spill] sm:$0xff] %v10177_v16  ;;  %13149 = vst [vmem:[#allocation78_spill] sm:$0xff] %v10180_v0  ;;  %7857 = vmatpush1.bf16.msra.mxu1 %v7856_v4  ;;  %3436 = vmatprep.mubr.f32.mxu1 %v12918_v32  ;;  %v1007_v51 = vmul.f32 %v495_v23, %v495_v23  ;;  %v1023_v42 = vmul.f32 %v511_v20, %v511_v20 }
 0x194   : > { %v1071_v57 = vmul.f32 %v719_v8, %v719_v8  ;;  %7859 = vmatprep.subr.bf16.mxu1 %v7858_v22  ;;  %v1087_v3 = vmul.f32 %v735_v54, %v735_v54  ;;  %v1199_v25 = vmul.f32 %v943_v17, %v943_v17  ;;  %v1215_v15 = vmul.f32 %v959_v45, %v959_v45 }
 0x195   : > { %v497_v2 = vsub.f32 %v10174_v14, %v13152_v1  ;;  %7813 = vmatpush1.bf16.msra.mxu0 %v7812_v49  ;;  %v513_v18 = vsub.f32 %v10174_v14, %v13153_v48  ;;  %v721_v4 = vsub.f32 %v10177_v16, %v13154_v53  ;;  %v737_v23 = vsub.f32 %v10177_v16, %v13157_v7 }
 0x196   : > { %v1135_v41 = vadd.f32 %v1071_v57, %v1007_v51  ;;  %7815 = vmatprep.subr.msk.bf16.mxu0 %vm9649_vm1, %v13001_v50  ;;  %v1151_v22 = vadd.f32 %v1087_v3, %v1023_v42  ;;  %v945_v17 = vsub.f32 %v10180_v0, %v13158_v9  ;;  %v961_v49 = vsub.f32 %v10180_v0, %v13159_v10  ;;  %v13165_v3 = vld [vmem:[#allocation16_spill] sm:$0xff]  ;;  %v13183_v0 = vld [vmem:[#allocation71_spill] sm:$0xff] }
 0x197   : > { %v1009_v57 = vmul.f32 %v497_v2, %v497_v2  ;;  %v13162_v45 = vpack.c.bf16 %v10082_v11, %v10079_v39  ;;  %v1025_v51 = vmul.f32 %v513_v18, %v513_v18  ;;  %v1073_v54 = vmul.f32 %v721_v4, %v721_v4 }
 0x198   : > { %v1263_v8 = vadd.f32 %v1199_v25, %v1135_v41  ;;  %v1089_v5 = vmul.f32 %v737_v23, %v737_v23  ;;  %2896 = vmatmul.mubr.f32.vlgmr.msra.gmra.mrb[2].mxu0 %v13165_v3  ;;  %v1279_v31 = vadd.f32 %v1215_v15, %v1151_v22  ;;  %v1201_v2 = vmul.f32 %v945_v17, %v945_v17  ;;  %v13169_v25 = vld [vmem:[#allocation44_spill] sm:$0xff]  ;;  %v13173_v22 = vld [vmem:[#allocation37_spill] sm:$0xff] }
 0x199   : > { %7861 = vmatpush1.bf16.msra.mxu1 %v13162_v45  ;;  %v1217_v60 = vmul.f32 %v961_v49, %v961_v49  ;;  %7817 = vmatpush1.bf16.msk.msra.mxu0 %vm9689_vm2, %v13001_v50  ;;  %v1137_v4 = vadd.f32 %v1073_v54, %v1009_v57  ;;  %v13176_v45 = vld [vmem:[#allocation67_spill] sm:$0xff]  ;;  %vm13184_vm8 = vnez %v13183_v0  ;;  %v751_v20 = vsub.f32 %v10162_v29, %v13040_v28  ;;  %v13213_v17 = vld [vmem:[#allocation29_spill] sm:$0xff] }
 0x19a   : > { %7863 = vmatprep.subr.msk.bf16.mxu1 %vm9669_vm3, %v13001_v50  ;;  %2974 = vmatprep.mubr.f32.mxu0 %v12918_v32  ;;  %vm10239_vm14 = vcmp.le.f32.partialorder %v1263_v8, %v13169_v25  ;;  %v1153_v23 = vadd.f32 %v1089_v5, %v1025_v51  ;;  %vm10248_vm15 = vcmp.le.f32.partialorder %v1279_v31, %v13173_v22  ;;  %v13177_v5 = vld [vmem:[#allocation69_spill] sm:$0xff]  ;;  %v13178_v51 = vld [vmem:[#allocation76_spill] sm:$0xff]  ;;  %v13180_v31 = vld [vmem:[#allocation66_spill] sm:$0xff]  ;;  %v13208_v0 = vmov 0 }
 0x19b   : > { %7819 = vmatprep.subr.msk.bf16.mxu0 %vm9742_vm9, %v13001_v50  ;;  %v5948_v49 = vsel %vm10239_vm14, %v13124_v27, -inf  ;;  %v6301_v57 = vsel %vm10239_vm14, %v13176_v45, inf  ;;  %v6655_v8 = vsel %vm10239_vm14, %v13177_v5, -inf  ;;  %vm13179_vm0 = vnez %v13178_v51 }
 0x19c   : > { %3439 = vmatmul.mubr.f32.vlgmr.msra.gmra.mrb[2].mxu1 %v13165_v3  ;;  %v5964_v54 = vsel %vm10248_vm15, %v13180_v31, -inf  ;;  %v6317_v41 = vsel %vm10248_vm15, %v13181_v35, inf  ;;  %v6671_v11 = vsel %vm10248_vm15, %v13182_v62, -inf  ;;  %v1265_v3 = vadd.f32 %v1201_v2, %v1137_v4 }
 0x19d   : > { %7865 = vmatpush1.bf16.msk.msra.mxu1 %vm13179_vm0, %v13001_v50  ;;  %3517 = vmatprep.mubr.f32.mxu1 %v12918_v32  ;;  %v10277_v16 = vmax.f32 %v5948_v49, %v5964_v54  ;;  %v10279_v14 = vmin.f32 %v6301_v57, %v6317_v41  ;;  %v10281_v6 = vmax.f32 %v6655_v8, %v6671_v11 }
 0x19e   : > { %7867 = vmatprep.subr.msk.bf16.mxu1 %vm13184_vm8, %v13001_v50  ;;  %v1281_v44 = vadd.f32 %v1217_v60, %v1153_v23  ;;  %7821 = vmatpush1.bf16.msk.msra.mxu0 %vm13188_vm7, %v13001_v50  ;;  %vm10287_vm13 = vcmp.le.f32.partialorder %v1265_v3, %v13169_v25  ;;  %v13191_v2 = vrot.slane %v10119_v47, %v13140_v61 }
 0x19f   : > { %13185 = vst [vmem:[#allocation79_spill] sm:$0xff] %v10277_v16  ;;  %13186 = vst [vmem:[#allocation24_spill] sm:$0xff] %v10279_v14  ;;  %v13192_v11 = vrot.slane %v10119_v47, %v13141_v12  ;;  %v809_v41 = vrot.slane %v10119_v47, %v13142_v55  ;;  %7823 = vmatprep.subr.bf16.mxu0 %v10110_v52  ;;  %v5950_v23 = vsel %vm10287_vm13, %v13124_v27, -inf  ;;  %v6303_v49 = vsel %vm10287_vm13, %v13176_v45, inf }
 0x1a0   : > { %13187 = vst [vmem:[#allocation70_spill] sm:$0xff] %v10281_v6  ;;  %v10295_v4 = vrot.slane %v13191_v2, %v13140_v61  ;;  %vm10307_vm12 = vcmp.le.f32.partialorder %v1281_v44, %v13173_v22  ;;  %v6657_v57 = vsel %vm10287_vm13, %v13177_v5, -inf  ;;  %v1103_v3 = vmul.f32 %v751_v20, %v751_v20 }
 0x1a1   : > { %v10301_v60 = vrot.slane %v13192_v11, %v13141_v12  ;;  %7869 = vmatpush1.bf16.msk.msra.mxu1 %vm9924_vm4, %v13001_v50  ;;  %v5966_v52 = vsel %vm10307_vm12, %v13180_v31, -inf  ;;  %v6319_v47 = vsel %vm10307_vm12, %v13181_v35, inf  ;;  %v6673_v44 = vsel %vm10307_vm12, %v13182_v62, -inf  ;;  %v13197_v11 = vld [vmem:[#allocation19_spill] sm:$0xff] }
 0x1a2   : > { %v494_v8 = vsub.f32 %v10295_v4, %v13152_v1  ;;  %7871 = vmatprep.subr.bf16.mxu1 %v10116_v43  ;;  %2978 = vmatmul.mubr.f32.vlgmr.msra.gmra.mrb[2].mxu0 %v13197_v11  ;;  %v10339_v6 = vmax.f32 %v5950_v23, %v5966_v52  ;;  %v10341_v14 = vmin.f32 %v6303_v49, %v6319_v47 }
 0x1a3   : > { %v10343_v16 = vmax.f32 %v6657_v57, %v6673_v44  ;;  %7825 = vmatpush1.bf16.msra.mxu0 %v10125_v13  ;;  %3072 = vmatprep.mubr.f32.mxu0 %v12918_v32  ;;  %v510_v2 = vsub.f32 %v10295_v4, %v13153_v48  ;;  %v718_v43 = vsub.f32 %v10301_v60, %v13154_v53  ;;  %v10371_v57 = vsel %vm10239_vm14, 1.0, %v12918_v32 }
 0x1a4   : > { %v734_v23 = vsub.f32 %v10301_v60, %v13157_v7  ;;  %3521 = vmatmul.mubr.f32.vlgmr.msra.gmra.mrb[2].mxu1 %v13197_v11  ;;  %7827 = vmatprep.subr.bf16.mxu0 %v10136_v56  ;;  %v10362_v13 = vrot.slane %v809_v41, %v13142_v55  ;;  %v1006_v52 = vmul.f32 %v494_v8, %v494_v8 }
 0x1a5   : > { %v365_v47 = vrot.slane %v10134_v59, %v13140_v61  ;;  %7873 = vmatpush1.bf16.msra.mxu1 %v10131_v24  ;;  %3615 = vmatprep.mubr.f32.mxu1 %v12918_v32  ;;  %v1022_v44 = vmul.f32 %v510_v2, %v510_v2  ;;  %v1070_v63 = vmul.f32 %v718_v43, %v718_v43 }
 0x1a6   : > { %v1086_v37 = vmul.f32 %v734_v23, %v734_v23  ;;  %7875 = vmatprep.subr.bf16.mxu1 %v10138_v19  ;;  %v942_v56 = vsub.f32 %v10362_v13, %v13158_v9  ;;  %v958_v41 = vsub.f32 %v10362_v13, %v13159_v10  ;;  %v593_v8 = vrot.slane %v10134_v59, %v13141_v12 }
 0x1a7   : > { %v10379_v24 = vrot.slane %v365_v47, %v13140_v61  ;;  %7829 = vmatpush1.bf16.msra.mxu0 %v10140_v30  ;;  %v1134_v2 = vadd.f32 %v1070_v63, %v1006_v52  ;;  %v817_v23 = vrot.slane %v10134_v59, %v13142_v55  ;;  %v527_v19 = vsub.f32 %v10159_v26, %v13037_v58 }
 0x1a8   : > { %v1150_v43 = vadd.f32 %v1086_v37, %v1022_v44  ;;  %7831 = vmatprep.subr.msk.bf16.mxu0 %vm9649_vm1, %v13001_v50  ;;  %v1198_v49 = vmul.f32 %v942_v56, %v942_v56  ;;  %v1214_v47 = vmul.f32 %v958_v41, %v958_v41  ;;  %v10397_v63 = vrot.slane %v593_v8, %v13141_v12 }
 0x1a9   : > { %v496_v54 = vsub.f32 %v10379_v24, %v13152_v1  ;;  %v512_v30 = vsub.f32 %v10379_v24, %v13153_v48  ;;  %7877 = vmatpush1.bf16.msra.mxu1 %v10142_v36  ;;  %v10400_v37 = vrot.slane %v817_v23, %v13142_v55  ;;  %v543_v59 = vsub.f32 %v10159_v26, %v13038_v21 }
 0x1aa   : > { %7879 = vmatprep.subr.msk.bf16.mxu1 %vm9669_vm3, %v13001_v50  ;;  %3074 = vmatmul.mubr.f32.vlgmr.msra.gmra.mrb[2].mxu0 %v13146_v46  ;;  %v1262_v52 = vadd.f32 %v1198_v49, %v1134_v2  ;;  %v1278_v36 = vadd.f32 %v1214_v47, %v1150_v43  ;;  %v10413_v56 = vsel %vm10248_vm15, 1.0, %v12918_v32  ;;  %v720_v26 = vsub.f32 %v10397_v63, %v13154_v53 }
 0x1ab   : > { %v1008_v44 = vmul.f32 %v496_v54, %v496_v54  ;;  %7833 = vmatpush1.bf16.msk.msra.mxu0 %vm9689_vm2, %v13001_v50  ;;  %3152 = vmatprep.mubr.f32.mxu0 %v12918_v32  ;;  %v736_v42 = vsub.f32 %v10397_v63, %v13157_v7  ;;  %v944_v54 = vsub.f32 %v10400_v37, %v13158_v9  ;;  %v10428_v49 = vsel %vm10287_vm13, 1.0, %v12918_v32  ;;  %vm10487_vm2 = vmpackc.low %vm10248_vm15, %vm10239_vm14  ;;  %v13211_v9 = vld [vmem:[#allocation38_spill] sm:$0xff]  ;;  %v13212_v7 = vld [vmem:[#allocation35_spill] sm:$0xff] }
 0x1ac   : > { %3617 = vmatmul.mubr.f32.vlgmr.msra.gmra.mrb[2].mxu1 %v13146_v46  ;;  %7835 = vmatprep.subr.msk.bf16.mxu0 %vm9742_vm9, %v13001_v50  ;;  %vm10435_vm1 = vcmp.le.f32.partialorder %v1262_v52, %v13169_v25  ;;  %vm10440_vm3 = vcmp.le.f32.partialorder %v1278_v36, %v13173_v22  ;;  %v13204_v41 = vmov 0  ;;  %v960_v8 = vsub.f32 %v10400_v37, %v13159_v10 }
 0x1ad   : > { %v13205_v41 = vsel %vm10440_vm3, 4294967295, %v13204_v41  ;;  %v10449_v2 = vsel %vm10307_vm12, 1.0, %v12918_v32  ;;  %7881 = vmatpush1.bf16.msk.msra.mxu1 %vm13179_vm0, %v13001_v50  ;;  %3695 = vmatprep.mubr.f32.mxu1 %v12918_v32  ;;  %v5947_v15 = vsel %vm10435_vm1, %v13124_v27, -inf  ;;  %v5963_v43 = vsel %vm10440_vm3, %v13180_v31, -inf }
 0x1ae   : > { %13206 = vst [vmem:[#allocation31_spill] sm:$0xff] %v13205_v41  ;;  %13207 = vst [vmem:[#allocation72_spill] sm:$0xff] %v10449_v2  ;;  %v6300_v23 = vsel %vm10435_vm1, %v13176_v45, inf  ;;  %v6316_v47 = vsel %vm10440_vm3, %v13181_v35, inf  ;;  %7883 = vmatprep.subr.msk.bf16.mxu1 %vm13184_vm8, %v13001_v50  ;;  %v10470_v51 = vmax.f32 %v5947_v15, %v5963_v43  ;;  %v6654_v36 = vsel %vm10435_vm1, %v13177_v5, -inf }
 0x1af   : > { %v10472_v52 = vmin.f32 %v6300_v23, %v6316_v47  ;;  %v6670_v11 = vsel %vm10440_vm3, %v13182_v62, -inf  ;;  %7837 = vmatpush1.bf16.msk.msra.mxu0 %vm13188_vm7, %v13001_v50  ;;  %v13209_v0 = vsel %vm10487_vm2, 4294967295, %v13208_v0  ;;  %v1024_v43 = vmul.f32 %v512_v30, %v512_v30  ;;  %vm10507_vm7 = vmpackc.low %vm10307_vm12, %vm10287_vm13 }
 0x1b0   : > { %13210 = vst [vmem:[#allocation73_spill] sm:$0xff] %v13209_v0  ;;  %v10491_v15 = vmax.f32 %v6654_v36, %v6670_v11  ;;  %v1072_v23 = vmul.f32 %v720_v26, %v720_v26  ;;  %v1088_v47 = vmul.f32 %v736_v42, %v736_v42  ;;  %7887 = vmatprep.subr.msk.bf16.mxu0 %vm10487_vm2, %v13001_v50  ;;  %v13215_v11 = vmov 0  ;;  %v13218_v42 = vld [vmem:[#allocation41_spill] sm:$0xff]  ;;  %vm10521_vm13 = vmpackc.low %vm10440_vm3, %vm10435_vm1 }
 0x1b1   : > { %v1200_v10 = vmul.f32 %v944_v54, %v944_v54  ;;  %v1216_v40 = vmul.f32 %v960_v8, %v960_v8  ;;  %v767_v39 = vsub.f32 %v10162_v29, %v13211_v9  ;;  %v975_v53 = vsub.f32 %v13213_v17, %v13212_v7  ;;  %7885 = vmatpush1.bf16.msk.msra.mxu1 %vm9924_vm4, %v13001_v50 }
 0x1b2   : > { %v13216_v11 = vsel %vm10507_vm7, 4294967295, %v13215_v11  ;;  %v1136_v30 = vadd.f32 %v1072_v23, %v1008_v44  ;;  %v1152_v26 = vadd.f32 %v1088_v47, %v1024_v43  ;;  %v991_v29 = vsub.f32 %v13213_v17, %v13218_v42  ;;  %7935 = vmatprep.subr.msk.bf16.mxu1 %vm10507_vm7, %v13001_v50  ;;  %3154 = vmatmul.mubr.f32.vlgmr.msra.gmra.mrb[2].mxu0 %v13146_v46 }
 0x1b3   : > { %13217 = vst [vmem:[#allocation80_spill] sm:$0xff] %v13216_v11  ;;  %v1039_v54 = vmul.f32 %v527_v19, %v527_v19  ;;  %v13220_v33 = vsel %vm10521_vm13, 4294967295, %v13219_v33  ;;  %v1055_v48 = vmul.f32 %v543_v59, %v543_v59  ;;  %v1119_v44 = vmul.f32 %v767_v39, %v767_v39  ;;  %7889 = vmatpush1.bf16.msk.msra.mxu0 %vm10521_vm13, %v13001_v50  ;;  %v13223_v59 = vld [vmem:[#allocation30_spill] sm:$0xff]  ;;  %v13252_v11 = vld [vmem:[#allocation77_spill] sm:$0xff] }
 0x1b4   : > { %13221 = vst [vmem:[#allocation76_spill] sm:$0xff] %v13220_v33  ;;  %v10528_v19 = vsel %vm10435_vm1, 1.0, %v12918_v32  ;;  %v1264_v8 = vadd.f32 %v1200_v10, %v1136_v30  ;;  %v1280_v36 = vadd.f32 %v1216_v40, %v1152_v26  ;;  %v1231_v43 = vmul.f32 %v975_v53, %v975_v53  ;;  %3697 = vmatmul.mubr.f32.vlgmr.msra.gmra.mrb[2].mxu1 %v13146_v46  ;;  %v13230_v53 = vld [vmem:[#allocation74_spill] sm:$0xff] }
 0x1b5   : > { %13222 = vst [vmem:[#allocation71_spill] sm:$0xff] %v10528_v19  ;;  %v1247_v23 = vmul.f32 %v991_v29, %v991_v29  ;;  %v1167_v47 = vadd.f32 %v1103_v3, %v1039_v54  ;;  %v1183_v17 = vadd.f32 %v1119_v44, %v1055_v48  ;;  %v529_v20 = vsub.f32 %v13223_v59, %v13037_v58 }
 0x1b6   : > { %v545_v18 = vsub.f32 %v13223_v59, %v13038_v21  ;;  %vm10539_vm4 = vcmp.le.f32.partialorder %v1264_v8, %v13169_v25  ;;  %v13224_v39 = vmov 0  ;;  %vm10544_vm9 = vcmp.le.f32.partialorder %v1280_v36, %v13173_v22  ;;  %3775 = vmatprep.mubr.f32.mxu0 %v12918_v32  ;;  %4318 = vmatprep.mubr.f32.mxu1 %v12918_v32  ;;  %v13240_v25 = vld [vmem:[#allocation51_spill] sm:$0xff] }
 0x1b7   : > { %v13225_v39 = vsel %vm10539_vm4, 4294967295, %v13224_v39  ;;  %v13227_v10 = vmov 0  ;;  %v753_v40 = vsub.f32 %v13230_v53, %v13040_v28  ;;  %v769_v30 = vsub.f32 %v13230_v53, %v13211_v9  ;;  %vm10557_vm12 = vmpackc.low %vm10544_vm9, %vm10539_vm4 }
 0x1b8   : > { %13226 = vst [vmem:[#allocation38_spill] sm:$0xff] %v13225_v39  ;;  %v13228_v10 = vsel %vm10544_vm9, 4294967295, %v13227_v10  ;;  %v13231_v26 = vmov 0  ;;  %v5949_v29 = vsel %vm10539_vm4, %v13124_v27, -inf  ;;  %v5965_v54 = vsel %vm10544_vm9, %v13180_v31, -inf  ;;  %7937 = vmatpush1.bf16.msk.msra.mxu1 %vm10557_vm12, %v13001_v50  ;;  %v13235_v27 = vld [vmem:[#allocation78_spill] sm:$0xff] }
 0x1b9   : > { %13229 = vst [vmem:[#allocation35_spill] sm:$0xff] %v13228_v10  ;;  %v13232_v26 = vsel %vm10557_vm12, 4294967295, %v13231_v26  ;;  %v6302_v48 = vsel %vm10539_vm4, %v13176_v45, inf  ;;  %v6318_v3 = vsel %vm10544_vm9, %v13181_v35, inf  ;;  %v10577_v44 = vmax.f32 %v5949_v29, %v5965_v54  ;;  %v13253_v31 = vld [vmem:[#allocation70_spill] sm:$0xff] }
 0x1ba   : > { %13233 = vst [vmem:[#allocation29_spill] sm:$0xff] %v13232_v26  ;;  %v10579_v8 = vmin.f32 %v6302_v48, %v6318_v3  ;;  %v6656_v36 = vsel %vm10539_vm4, %v13177_v5, -inf  ;;  %v6672_v59 = vsel %vm10544_vm9, %v13182_v62, -inf  ;;  %v1295_v35 = vadd.f32 %v1231_v43, %v1167_v47  ;;  %v13236_v26 = vld [vmem:[#allocation49_spill] sm:$0xff]  ;;  %v13247_v47 = vld [vmem:[#allocation50_spill] sm:$0xff] }
 0x1bb   : > { %v10587_v53 = vmax.f32 %v6656_v36, %v6672_v59  ;;  %v1311_v45 = vadd.f32 %v1247_v23, %v1183_v17  ;;  %v977_v22 = vsub.f32 %v13235_v27, %v13212_v7  ;;  %v993_v29 = vsub.f32 %v13235_v27, %v13218_v42  ;;  %v13248_v17 = vld [vmem:[#allocation75_spill] sm:$0xff]  ;;  %v13251_v62 = vld [vmem:[#allocation65_spill] sm:$0xff] }
 0x1bc   : > { %v1041_v54 = vmul.f32 %v529_v20, %v529_v20  ;;  %v1057_v48 = vmul.f32 %v545_v18, %v545_v18  ;;  %v1105_v3 = vmul.f32 %v753_v40, %v753_v40  ;;  %vm10594_vm14 = vcmp.le.f32.partialorder %v1295_v35, %v13236_v26  ;;  %v13249_v18 = vld [vmem:[#allocation79_spill] sm:$0xff] }
 0x1bd   : > { %13234 = vst [vmem:[#allocation56_spill] sm:$0xff] %v10587_v53  ;;  %v13237_v5 = vmov 0  ;;  %vm10599_vm15 = vcmp.le.f32.partialorder %v1311_v45, %v13240_v25  ;;  %v13241_v36 = vmov 0  ;;  %v1121_v43 = vmul.f32 %v769_v30, %v769_v30  ;;  %v13250_v30 = vld [vmem:[#allocation24_spill] sm:$0xff] }
 0x1be   : > { %v13238_v5 = vsel %vm10594_vm14, 4294967295, %v13237_v5  ;;  %v13242_v36 = vsel %vm10599_vm15, 4294967295, %v13241_v36  ;;  %v1233_v23 = vmul.f32 %v977_v22, %v977_v22  ;;  %vm10607_vm0 = vmpackc.low %vm10599_vm15, %vm10594_vm14  ;;  %v13244_v27 = vmov 0 }
 0x1bf   : > { %13239 = vst [vmem:[#allocation30_spill] sm:$0xff] %v13238_v5  ;;  %13243 = vst [vmem:[#allocation74_spill] sm:$0xff] %v13242_v36  ;;  %v13245_v27 = vsel %vm10607_vm0, 4294967295, %v13244_v27  ;;  %v5980_v35 = vsel %vm10594_vm14, %v9555_v34, -inf  ;;  %v5996_v45 = vsel %vm10599_vm15, %v9640_v38, -inf  ;;  %v6333_v22 = vsel %vm10594_vm14, %v13247_v47, inf  ;;  %7891 = vmatprep.subr.msk.bf16.mxu0 %vm10607_vm0, %v13001_v50 }
 0x1c0   : > { %13246 = vst [vmem:[#allocation78_spill] sm:$0xff] %v13245_v27  ;;  %v6349_v20 = vsel %vm10599_vm15, %v13248_v17, inf  ;;  %v6085_v40 = vmax.f32 %v13249_v18, %v5980_v35  ;;  %v6438_v59 = vmin.f32 %v13250_v30, %v6333_v22  ;;  %v6687_v33 = vsel %vm10594_vm14, %v13251_v62, -inf }
 0x1c1   : > { %v6703_v0 = vsel %vm10599_vm15, %v13252_v11, -inf  ;;  %v6792_v1 = vmax.f32 %v13253_v31, %v6687_v33  ;;  %v1169_v55 = vadd.f32 %v1105_v3, %v1041_v54  ;;  %v1185_v46 = vadd.f32 %v1121_v43, %v1057_v48 }
 0x1c2   : > { %v1249_v12 = vmul.f32 %v993_v29, %v993_v29  ;;  %v6086_v61 = vmax.f32 %v6085_v40, %v5996_v45  ;;  %v6439_v27 = vmin.f32 %v6438_v59, %v6349_v20  ;;  %v526_v35 = vsub.f32 %v10295_v4, %v13037_v58 }
 0x1c3   : > { %v542_v22 = vsub.f32 %v10295_v4, %v13038_v21  ;;  %v6793_v18 = vmax.f32 %v6792_v1, %v6703_v0  ;;  %v1297_v30 = vadd.f32 %v1233_v23, %v1169_v55  ;;  %v750_v36 = vsub.f32 %v10301_v60, %v13040_v28 }
 0x1c4   : > { %v1313_v5 = vadd.f32 %v1249_v12, %v1185_v46  ;;  %v6087_v10 = vrot.slane %v6086_v61, 4  ;;  %v6440_v39 = vrot.slane %v6439_v27, 4  ;;  %v766_v31 = vsub.f32 %v10301_v60, %v13211_v9 }
 0x1c5   : > { %v974_v33 = vsub.f32 %v10362_v13, %v13212_v7  ;;  %v6794_v29 = vrot.slane %v6793_v18, 4  ;;  %vm10646_vm8 = vcmp.le.f32.partialorder %v1297_v30, %v13236_v26  ;;  %v13254_v54 = vmov 0 }
 0x1c6   : > { %v13255_v54 = vsel %vm10646_vm8, 4294967295, %v13254_v54  ;;  %vm10651_vm1 = vcmp.le.f32.partialorder %v1313_v5, %v13240_v25  ;;  %v13257_v12 = vmov 0  ;;  %v990_v55 = vsub.f32 %v10362_v13, %v13218_v42 }
 0x1c7   : > { %13256 = vst [vmem:[#allocation79_spill] sm:$0xff] %v13255_v54  ;;  %v13258_v12 = vsel %vm10651_vm1, 4294967295, %v13257_v12  ;;  %v6088_v46 = vmax.f32 %v6086_v61, %v6087_v10  ;;  %v6441_v1 = vmin.f32 %v6439_v27, %v6440_v39  ;;  %vm10661_vm5 = vmpackc.low %vm10651_vm1, %vm10646_vm8  ;;  %v13260_v4 = vmov 0 }
 0x1c8   : > { %13259 = vst [vmem:[#allocation24_spill] sm:$0xff] %v13258_v12  ;;  %v13261_v4 = vsel %vm10661_vm5, 4294967295, %v13260_v4  ;;  %v5982_v5 = vsel %vm10646_vm8, %v9555_v34, -inf  ;;  %v5998_v60 = vsel %vm10651_vm1, %v9640_v38, -inf  ;;  %v6795_v0 = vmax.f32 %v6793_v18, %v6794_v29  ;;  %7939 = vmatprep.subr.msk.bf16.mxu1 %vm10661_vm5, %v13001_v50 }
 0x1c9   : > { %13262 = vst [vmem:[#allocation70_spill] sm:$0xff] %v13261_v4  ;;  %v6103_v61 = vmax.f32 %v10339_v6, %v5982_v5  ;;  %v6335_v13 = vsel %vm10646_vm8, %v13247_v47, inf  ;;  %v6351_v39 = vsel %vm10651_vm1, %v13248_v17, inf  ;;  %v6089_v10 = vrot.slane %v6088_v46, 2 }
 0x1ca   : > { %v6442_v48 = vrot.slane %v6441_v1, 2  ;;  %v6456_v3 = vmin.f32 %v10341_v14, %v6335_v13  ;;  %v6689_v43 = vsel %vm10646_vm8, %v13251_v62, -inf  ;;  %v6796_v23 = vrot.slane %v6795_v0, 2 }
 0x1cb   : > { %v6104_v27 = vmax.f32 %v6103_v61, %v5998_v60  ;;  %v6705_v6 = vsel %vm10651_vm1, %v13252_v11, -inf  ;;  %v6810_v45 = vmax.f32 %v10343_v16, %v6689_v43  ;;  %v6090_v20 = vmax.f32 %v6088_v46, %v6089_v10 }
 0x1cc   : > { %v6443_v40 = vmin.f32 %v6441_v1, %v6442_v48  ;;  %v6457_v59 = vmin.f32 %v6456_v3, %v6351_v39  ;;  %v1038_v18 = vmul.f32 %v526_v35, %v526_v35  ;;  %v6797_v30 = vmax.f32 %v6795_v0, %v6796_v23 }
 0x1cd   : > { %v6105_v29 = vrot.slane %v6104_v27, 4  ;;  %v6811_v5 = vmax.f32 %v6810_v45, %v6705_v6  ;;  %v1054_v14 = vmul.f32 %v542_v22, %v542_v22  ;;  %v6091_v13 = vrot.slane %v6090_v20, 1 }
 0x1ce   : > { %v6444_v4 = vrot.slane %v6443_v40, 1  ;;  %v6458_v54 = vrot.slane %v6457_v59, 4  ;;  %v1102_v19 = vmul.f32 %v750_v36, %v750_v36  ;;  %v6798_v41 = vrot.slane %v6797_v30, 1 }
 0x1cf   : > { %v6106_v60 = vmax.f32 %v6104_v27, %v6105_v29  ;;  %v6812_v61 = vrot.slane %v6811_v5, 4  ;;  %v1118_v2 = vmul.f32 %v766_v31, %v766_v31  ;;  %v10689_v12 = vmax.f32 %v6090_v20, %v6091_v13 }
 0x1d0   : > { %v10691_v53 = vmin.f32 %v6443_v40, %v6444_v4  ;;  %v6459_v16 = vmin.f32 %v6457_v59, %v6458_v54  ;;  %v1166_v46 = vadd.f32 %v1102_v19, %v1038_v18  ;;  %v10693_v1 = vmax.f32 %v6797_v30, %v6798_v41 }
 0x1d1   : > { %v6107_v35 = vrot.slane %v6106_v60, 2  ;;  %v6813_v0 = vmax.f32 %v6811_v5, %v6812_v61  ;;  %v1182_v39 = vadd.f32 %v1118_v2, %v1054_v14  ;;  %v1230_v10 = vmul.f32 %v974_v33, %v974_v33 }
 0x1d2   : > { %v6460_v22 = vrot.slane %v6459_v16, 2  ;;  %v1246_v48 = vmul.f32 %v990_v55, %v990_v55  ;;  %v528_v36 = vsub.f32 %v10379_v24, %v13037_v58  ;;  %v544_v31 = vsub.f32 %v10379_v24, %v13038_v21 }
 0x1d3   : > { %v6108_v3 = vmax.f32 %v6106_v60, %v6107_v35  ;;  %v6814_v43 = vrot.slane %v6813_v0, 2  ;;  %v752_v54 = vsub.f32 %v10397_v63, %v13040_v28  ;;  %v1294_v41 = vadd.f32 %v1230_v10, %v1166_v46 }
 0x1d4   : > { %v6461_v19 = vmin.f32 %v6459_v16, %v6460_v22  ;;  %v1310_v4 = vadd.f32 %v1246_v48, %v1182_v39  ;;  %v768_v2 = vsub.f32 %v10397_v63, %v13211_v9  ;;  %v976_v55 = vsub.f32 %v10400_v37, %v13212_v7 }
 0x1d5   : > { %v6109_v23 = vrot.slane %v6108_v3, 1  ;;  %v6815_v33 = vmax.f32 %v6813_v0, %v6814_v43  ;;  %v992_v27 = vsub.f32 %v10400_v37, %v13218_v42  ;;  %vm10708_vm11 = vcmp.le.f32.partialorder %v1294_v41, %v13236_v26 }
 0x1d6   : > { %v6462_v6 = vrot.slane %v6461_v19, 1  ;;  %vm10713_vm10 = vcmp.le.f32.partialorder %v1310_v4, %v13240_v25  ;;  %v1040_v63 = vmul.f32 %v528_v36, %v528_v36  ;;  %v13267_v37 = vmov 0  ;;  %v13269_v36 = vld [vmem:[#allocation22_spill] sm:$0xff] }
 0x1d7   : > { %v10717_v20 = vmax.f32 %v6108_v3, %v6109_v23  ;;  %v6816_v40 = vrot.slane %v6815_v33, 1  ;;  %vm10723_vm6 = vmpackc.low %vm10713_vm10, %vm10708_vm11  ;;  %v5979_v59 = vsel %vm10708_vm11, %v9555_v34, -inf  ;;  %v5995_v18 = vsel %vm10713_vm10, %v9640_v38, -inf }
 0x1d8   : > { %v13268_v37 = vsel %vm10723_vm6, 4294967295, %v13267_v37  ;;  %v10733_v30 = vmin.f32 %v6461_v19, %v6462_v6  ;;  %7893 = vmatpush1.bf16.msk.msra.mxu0 %vm10723_vm6, %v13001_v50  ;;  %v6076_v29 = vmax.f32 %v10470_v51, %v5979_v59  ;;  %v6332_v5 = vsel %vm10708_vm11, %v13247_v47, inf }
 0x1d9   : > { %v6348_v14 = vsel %vm10713_vm10, %v13248_v17, inf  ;;  %v10745_v13 = vmax.f32 %v6815_v33, %v6816_v40  ;;  %v6429_v60 = vmin.f32 %v10472_v52, %v6332_v5  ;;  %v6686_v61 = vsel %vm10708_vm11, %v13251_v62, -inf }
 0x1da   : > { %v6702_v51 = vsel %vm10713_vm10, %v13252_v11, -inf  ;;  %v6077_v16 = vmax.f32 %v6076_v29, %v5995_v18  ;;  %v6783_v46 = vmax.f32 %v10491_v15, %v6686_v61  ;;  %v1056_v35 = vmul.f32 %v544_v31, %v544_v31 }
 0x1db   : > { %v1104_v0 = vmul.f32 %v752_v54, %v752_v54  ;;  %v6430_v39 = vmin.f32 %v6429_v60, %v6348_v14  ;;  %v1120_v22 = vmul.f32 %v768_v2, %v768_v2  ;;  %v1232_v10 = vmul.f32 %v976_v55, %v976_v55  ;;  %3781 = vmatmul.mubr.f32.vlgmr.msra.gmra.mrb[4].mxu0 %v13269_v36 }
 0x1dc   : > { %v1248_v48 = vmul.f32 %v992_v27, %v992_v27  ;;  %v6078_v52 = vrot.slane %v6077_v16, 4  ;;  %v6784_v3 = vmax.f32 %v6783_v46, %v6702_v51  ;;  %v10758_v19 = vsub.f32 %v10371_v57, %v10371_v57  ;;  %3891 = vmatprep.mubr.f32.mxu0 %v12918_v32 }
 0x1dd   : > { %v1168_v43 = vadd.f32 %v1104_v0, %v1040_v63  ;;  %v6431_v41 = vrot.slane %v6430_v39, 4  ;;  %v1184_v4 = vadd.f32 %v1120_v22, %v1056_v35  ;;  %v10763_v15 = vsub.f32 %v10413_v56, %v10413_v56 }
 0x1de   : > { %v10767_v31 = vsub.f32 %v10428_v49, %v10428_v49  ;;  %v6079_v54 = vmax.f32 %v6077_v16, %v6078_v52  ;;  %v6785_v2 = vrot.slane %v6784_v3, 4  ;;  %v12784_v33 = vand.u32 4294901760, %v10758_v19 }
 0x1df   : > { %v1296_v23 = vadd.f32 %v1232_v10, %v1168_v43  ;;  %v6432_v55 = vmin.f32 %v6430_v39, %v6431_v41  ;;  %v1312_v57 = vadd.f32 %v1248_v48, %v1184_v4  ;;  %v12783_v27 = vand.u32 4294901760, %v10763_v15  ;;  %v13276_v43 = vld [vmem:[#allocation56_spill] sm:$0xff] }
 0x1e0   : > { %v12782_v6 = vand.u32 4294901760, %v10767_v31  ;;  %v6080_v63 = vrot.slane %v6079_v54, 2  ;;  %v6786_v40 = vmax.f32 %v6784_v3, %v6785_v2  ;;  %v3790_v49 = vsub.f32 %v10758_v19, %v12784_v33 }
 0x1e1   : > { %vm10773_vm6 = vcmp.le.f32.partialorder %v1296_v23, %v13236_v26  ;;  %v6433_v59 = vrot.slane %v6432_v55, 2  ;;  %vm10781_vm5 = vcmp.le.f32.partialorder %v1312_v57, %v13240_v25  ;;  %v13379_v42 = vmov 0 }
 0x1e2   : > { %v5981_v29 = vsel %vm10773_vm6, %v9555_v34, -inf  ;;  %v6334_v5 = vsel %vm10773_vm6, %v13247_v47, inf  ;;  %v6081_v14 = vmax.f32 %v6079_v54, %v6080_v63  ;;  %v6787_v60 = vrot.slane %v6786_v40, 2  ;;  %vm10795_vm12 = vmpackc.low %vm10781_vm5, %vm10773_vm6  ;;  %v13347_v47 = vld [vmem:[#allocation27_spill] sm:$0xff] }
 0x1e3   : > { %v5997_v51 = vsel %vm10781_vm5, %v9640_v38, -inf  ;;  %v6094_v16 = vmax.f32 %v10577_v44, %v5981_v29  ;;  %v6434_v46 = vmin.f32 %v6432_v55, %v6433_v59  ;;  %7941 = vmatpush1.bf16.msk.msra.mxu1 %vm10795_vm12, %v13001_v50  ;;  %v6350_v35 = vsel %vm10781_vm5, %v13248_v17, inf }
 0x1e4   : > { %v6447_v0 = vmin.f32 %v10579_v8, %v6334_v5  ;;  %v6688_v39 = vsel %vm10773_vm6, %v13251_v62, -inf  ;;  %v6082_v22 = vrot.slane %v6081_v14, 1  ;;  %v6788_v10 = vmax.f32 %v6786_v40, %v6787_v60 }
 0x1e5   : > { %v6095_v48 = vmax.f32 %v6094_v16, %v5997_v51  ;;  %v6704_v44 = vsel %vm10781_vm5, %v13252_v11, -inf  ;;  %v6435_v52 = vrot.slane %v6434_v46, 1  ;;  %v6801_v41 = vmax.f32 %v13276_v43, %v6688_v39 }
 0x1e6   : > { %v6448_v3 = vmin.f32 %v6447_v0, %v6350_v35  ;;  %v3791_v4 = vand.u32 4294901760, %v3790_v49  ;;  %v6083_v54 = vmax.f32 %v6081_v14, %v6082_v22  ;;  %v6789_v2 = vrot.slane %v6788_v10, 1  ;;  %4324 = vmatmul.mubr.f32.vlgmr.msra.gmra.mrb[4].mxu1 %v13269_v36  ;;  %v13277_v35 = vld [vmem:[#allocation64_spill] sm:$0xff] }
 0x1e7   : > { %v6096_v23 = vrot.slane %v6095_v48, 4  ;;  %v3802_v8 = vsub.f32 %v10763_v15, %v12783_v27  ;;  %v6436_v55 = vmin.f32 %v6434_v46, %v6435_v52  ;;  %v6802_v63 = vmax.f32 %v6801_v41, %v6704_v44  ;;  %4434 = vmatprep.mubr.f32.mxu1 %v12918_v32  ;;  %v13278_v41 = vld [vmem:[#allocation72_spill] sm:$0xff] }
 0x1e8   : > { %v6449_v57 = vrot.slane %v6448_v3, 4  ;;  %v4333_v40 = vsub.f32 %v10767_v31, %v12782_v6  ;;  %v6219_v49 = vcombine.low %v6083_v54, %v10689_v12  ;;  %v6790_v59 = vmax.f32 %v6788_v10, %v6789_v2 }
 0x1e9   : > { %v6097_v29 = vmax.f32 %v6095_v48, %v6096_v23  ;;  %v3803_v5 = vand.u32 4294901760, %v3802_v8  ;;  %v6573_v14 = vcombine.low %v6436_v55, %v10691_v53  ;;  %v6803_v51 = vrot.slane %v6802_v63, 4 }
 0x1ea   : > { %v6450_v60 = vmin.f32 %v6448_v3, %v6449_v57  ;;  %v4334_v16 = vand.u32 4294901760, %v4333_v40  ;;  %v6229_v46 = vrot.slane %v6219_v49, %v13277_v35  ;;  %v6927_v0 = vcombine.low %v6790_v59, %v10693_v1  ;;  %v13280_v1 = vld [vmem:[#allocation71_spill] sm:$0xff] }
 0x1eb   : > { %v6098_v39 = vrot.slane %v6097_v29, 2  ;;  %v7894_v22 = vpack.c.bf16 %v3803_v5, %v3791_v4  ;;  %v6583_v44 = vrot.slane %v6573_v14, %v13277_v35  ;;  %v6804_v43 = vmax.f32 %v6802_v63, %v6803_v51 }
 0x1ec   : > { %v6451_v52 = vrot.slane %v6450_v60, 2  ;;  %v10832_v12 = vsub.f32 %v13278_v41, %v13278_v41  ;;  %v10835_v10 = vrot.slane %v6927_v0, %v13277_v35  ;;  %v7454_v3 = vsel %vm10440_vm3, 1.0, %v12918_v32 }
 0x1ed   : > { %v6099_v53 = vmax.f32 %v6097_v29, %v6098_v39  ;;  %7895 = vmatprep.subr.bf16.mxu0 %v7894_v22  ;;  %v10842_v4 = vsub.f32 %v13280_v1, %v13280_v1  ;;  %v6805_v2 = vrot.slane %v6804_v43, 2  ;;  %v10845_v8 = vsub.f32 %v7454_v3, %v7454_v3 }
 0x1ee   : > { %v6452_v54 = vmin.f32 %v6450_v60, %v6451_v52  ;;  %v12781_v23 = vand.u32 4294901760, %v10832_v12  ;;  %v7440_v40 = vsel %vm10539_vm4, 1.0, %v12918_v32  ;;  %v7456_v59 = vsel %vm10544_vm9, 1.0, %v12918_v32 }
 0x1ef   : > { %v6100_v55 = vrot.slane %v6099_v53, 1  ;;  %v12780_v57 = vand.u32 4294901760, %v10842_v4  ;;  %v6806_v5 = vmax.f32 %v6804_v43, %v6805_v2  ;;  %v12779_v60 = vand.u32 4294901760, %v10845_v8 }
 0x1f0   : > { %v6453_v29 = vrot.slane %v6452_v54, 1  ;;  %v4345_v14 = vsub.f32 %v10832_v12, %v12781_v23  ;;  %v10861_v39 = vsub.f32 %v7440_v40, %v7440_v40  ;;  %v10863_v22 = vsub.f32 %v7456_v59, %v7456_v59 }
 0x1f1   : > { %v6101_v51 = vmax.f32 %v6099_v53, %v6100_v55  ;;  %v3796_v0 = vsub.f32 %v10842_v4, %v12780_v57  ;;  %v6807_v41 = vrot.slane %v6806_v5, 1  ;;  %v3808_v43 = vsub.f32 %v10845_v8, %v12779_v60 }
 0x1f2   : > { %v6454_v52 = vmin.f32 %v6452_v54, %v6453_v29  ;;  %v4346_v48 = vand.u32 4294901760, %v4345_v14  ;;  %v12778_v53 = vand.u32 4294901760, %v10861_v39  ;;  %v12777_v2 = vand.u32 4294901760, %v10863_v22 }
 0x1f3   : > { %v6220_v3 = vcombine.low %v6101_v51, %v10717_v20  ;;  %v3797_v1 = vand.u32 4294901760, %v3796_v0  ;;  %v6808_v63 = vmax.f32 %v6806_v5, %v6807_v41  ;;  %v3809_v49 = vand.u32 4294901760, %v3808_v43 }
 0x1f4   : > { %v6574_v55 = vcombine.low %v6454_v52, %v10733_v30  ;;  %v7942_v40 = vpack.c.bf16 %v4346_v48, %v4334_v16  ;;  %v4339_v59 = vsub.f32 %v10861_v39, %v12778_v53  ;;  %v4351_v20 = vsub.f32 %v10863_v22, %v12777_v2 }
 0x1f5   : > { %v6236_v54 = vrot.slane %v6220_v3, %v13277_v35  ;;  %v7471_v14 = vsel %vm10594_vm14, 1.0, %v12918_v32  ;;  %v6928_v30 = vcombine.low %v6808_v63, %v10745_v13  ;;  %v7896_v16 = vpack.c.bf16 %v3809_v49, %v3797_v1 }
 0x1f6   : > { %v6590_v51 = vrot.slane %v6574_v55, %v13277_v35  ;;  %7943 = vmatprep.subr.bf16.mxu1 %v7942_v40  ;;  %v7487_v0 = vsel %vm10599_vm15, 1.0, %v12918_v32  ;;  %v4340_v41 = vand.u32 4294901760, %v4339_v59  ;;  %v4352_v48 = vand.u32 4294901760, %v4351_v20 }
 0x1f7   : > { %v6251_v52 = vcombine.low %v6229_v46, %v6236_v54  ;;  %v10887_v43 = vsub.f32 %v7471_v14, %v7471_v14  ;;  %v6944_v2 = vrot.slane %v6928_v30, %v13277_v35  ;;  %7897 = vmatpush1.bf16.msra.mxu0 %v7896_v16  ;;  %v10890_v29 = vsub.f32 %v7487_v0, %v7487_v0 }
 0x1f8   : > { %v6605_v3 = vcombine.low %v6583_v44, %v6590_v51  ;;  %v7473_v13 = vsel %vm10646_vm8, 1.0, %v12918_v32  ;;  %v7944_v63 = vpack.c.bf16 %v4352_v48, %v4340_v41  ;;  %v7489_v49 = vsel %vm10651_vm1, 1.0, %v12918_v32 }
 0x1f9   : > { %v10896_v1 = vrot.slane %v6251_v52, %v13277_v35  ;;  %v3813_v46 = vand.u32 4294901760, %v10887_v43  ;;  %v6959_v54 = vcombine.low %v10835_v10, %v6944_v2  ;;  %v3825_v59 = vand.u32 4294901760, %v10890_v29 }
 0x1fa   : > { %v10903_v44 = vrot.slane %v6605_v3, %v13277_v35  ;;  %v10907_v20 = vsub.f32 %v7473_v13, %v7473_v13  ;;  %7945 = vmatpush1.bf16.msra.mxu1 %v7944_v63  ;;  %v10910_v51 = vsub.f32 %v7489_v49, %v7489_v49  ;;  %v7470_v30 = vsel %vm10708_vm11, 1.0, %v12918_v32 }
 0x1fb   : > { %13286 = vst [vmem:[#allocation56_spill] sm:$0xff] %v10896_v1  ;;  %v3814_v14 = vsub.f32 %v10887_v43, %v3813_v46  ;;  %v7486_v16 = vsel %vm10713_vm10, 1.0, %v12918_v32  ;;  %v10919_v5 = vrot.slane %v6959_v54, %v13277_v35  ;;  %v3826_v10 = vsub.f32 %v10890_v29, %v3825_v59 }
 0x1fc   : > { %13288 = vst [vmem:[#allocation72_spill] sm:$0xff] %v10903_v44  ;;  %v4356_v2 = vand.u32 4294901760, %v10907_v20  ;;  %v10923_v0 = vsub.f32 %v7470_v30, %v7470_v30  ;;  %v4368_v41 = vand.u32 4294901760, %v10910_v51  ;;  %v10926_v48 = vsub.f32 %v7486_v16, %v7486_v16 }
 0x1fd   : > { %13289 = vst [vmem:[#allocation31_spill] sm:$0xff] %v10919_v5  ;;  %v3815_v52 = vand.u32 4294901760, %v3814_v14  ;;  %v7472_v24 = vsel %vm10773_vm6, 1.0, %v12918_v32  ;;  %v3827_v45 = vand.u32 4294901760, %v3826_v10  ;;  %v7488_v13 = vsel %vm10781_vm5, 1.0, %v12918_v32 }
 0x1fe   : > { %v4357_v3 = vsub.f32 %v10907_v20, %v4356_v2  ;;  %v3819_v55 = vand.u32 4294901760, %v10923_v0  ;;  %v4369_v63 = vsub.f32 %v10910_v51, %v4368_v41  ;;  %v3831_v40 = vand.u32 4294901760, %v10926_v48 }
 0x1ff   : > { %v10938_v49 = vsub.f32 %v7472_v24, %v7472_v24  ;;  %v10940_v54 = vsub.f32 %v7488_v13, %v7488_v13  ;;  %v7898_v14 = vpack.c.bf16 %v3827_v45, %v3815_v52  ;;  %v7902_v16 = vpack.c.bf16 %v10763_v15, %v10758_v19 }
 0x200   : > { %v4358_v56 = vand.u32 4294901760, %v4357_v3  ;;  %v3820_v30 = vsub.f32 %v10923_v0, %v3819_v55  ;;  %v4370_v10 = vand.u32 4294901760, %v4369_v63  ;;  %v3832_v53 = vsub.f32 %v10926_v48, %v3831_v40 }
 0x201   : > { %v4362_v18 = vand.u32 4294901760, %v10938_v49  ;;  %v4374_v60 = vand.u32 4294901760, %v10940_v54  ;;  %7899 = vmatprep.subr.bf16.mxu0 %v7898_v14  ;;  %v7950_v24 = vpack.c.bf16 %v10832_v12, %v10767_v31  ;;  %v7904_v52 = vpack.c.bf16 %v10845_v8, %v10842_v4 }
 0x202   : > { %v3821_v57 = vand.u32 4294901760, %v3820_v30  ;;  %v7952_v45 = vpack.c.bf16 %v10863_v22, %v10861_v39  ;;  %v7946_v3 = vpack.c.bf16 %v4370_v10, %v4358_v56  ;;  %v3833_v13 = vand.u32 4294901760, %v3832_v53 }
 0x203   : > { %v4363_v63 = vsub.f32 %v10938_v49, %v4362_v18  ;;  %v4375_v23 = vsub.f32 %v10940_v54, %v4374_v60  ;;  %v7906_v14 = vpack.c.bf16 %v10890_v29, %v10887_v43  ;;  %v7954_v30 = vpack.c.bf16 %v10910_v51, %v10907_v20  ;;  %v10971_v43 = vld [vmem:[%s8652_s11 + $0x30] sm:$0x77]  ;;  %v10974_v29 = vld [vmem:[%s8652_s11 + $0x38] sm:$0x77]  ;;  %s12263_s11 = scalar_lea.vmem [#allocation6], %s12214_s6  ;;  %s8354_s6 = sshll.u32 %s8485_s27, 4  ;;  %s8355_s6 = int_to_ptr.vmem [resolvable:$false] %s8354_s6 }
 0x204   : > { %v7908_v6 = vpack.c.bf16 %v10926_v48, %v10923_v0  ;;  %7947 = vmatprep.subr.bf16.mxu1 %v7946_v3  ;;  %v7900_v33 = vpack.c.bf16 %v3833_v13, %v3821_v57  ;;  %v13290_v10 = vand.u32 4294901760, %v10758_v19  ;;  %v13291_v5 = vand.u32 4294901760, %v10763_v15  ;;  %s7297_s24 = sshll.u32 %s12263_s11, 4  ;;  %s8356_s23 = scalar_lea.vmem %s8355_s6, 4096  ;;  %s12429_s24 = int_to_ptr.vmem [resolvable:$true] %s7297_s24 }
 0x205   : > { %v4364_v56 = vand.u32 4294901760, %v4363_v63  ;;  %v4376_v53 = vand.u32 4294901760, %v4375_v23  ;;  %v13292_v20 = vand.u32 4294901760, %v10767_v31  ;;  %v13293_v51 = vand.u32 4294901760, %v10832_v12  ;;  %s8350_s26 = scalar_lea.vmem %s12429_s24, 2048  ;;  %p8357_p1 = scmp.lt.s32.totalorder %s12429_s24, %s8355_s6 }
 0x206   : > { %v10968_v44 = vpack.c.bf16 %v13291_v5, %v13290_v10  ;;  %v13294_v57 = vand.u32 4294901760, %v10842_v4  ;;  %v13295_v23 = vand.u32 4294901760, %v10845_v8  ;;  %v13296_v19 = vand.u32 4294901760, %v10861_v39  ;;  %7901 = vmatpush1.bf16.msra.mxu0 %v7900_v33  ;;  %v13298_v4 = vld [vmem:[#allocation12_spill] sm:$0xff]  ;;  %v13299_v10 = vld [vmem:[#allocation13_spill] sm:$0xff]  ;;  %p8351_p8 = scmp.ne.s32.totalorder %s12429_s24, %s8350_s26  ;;  %p8358_p7 = scmp.lt.s32.totalorder %s8356_s23, %s8350_s26 }
 0x207   : > { %v10980_v0 = vpack.c.bf16 %v13293_v51, %v13292_v20  ;;  %v13297_v15 = vand.u32 4294901760, %v10863_v22  ;;  %v10994_v3 = vpack.c.bf16 %v3825_v59, %v3813_v46  ;;  %v7948_v31 = vpack.c.bf16 %v4376_v53, %v4364_v56  ;;  %7903 = vmatprep.subr.bf16.mxu0 %v7902_v16  ;;  %v13300_v22 = vld [vmem:[#allocation17_spill] sm:$0xff]  ;;  %v13301_v59 = vld [vmem:[#allocation14_spill] sm:$0xff]  ;;  %v13317_v16 = vld [vmem:[#allocation32_spill] sm:$0xff] }
 0x208   : > { %v10986_v48 = vpack.c.bf16 %v13295_v23, %v13294_v57  ;;  %v10996_v13 = vpack.c.bf16 %v4368_v41, %v4356_v2  ;;  %v10998_v12 = vpack.c.bf16 %v3831_v40, %v3819_v55  ;;  %v11000_v63 = vpack.c.bf16 %v4374_v60, %v4362_v18  ;;  %v13302_v41 = vld [vmem:[#allocation15_spill] sm:$0xff]  ;;  %v13306_v51 = vld [vmem:[#allocation18_spill] sm:$0xff]  ;;  %p8352_p4 = pnand %p8351_p8, %p13573_p2  ;;  %p8359_p10 = por %p8358_p7, %p8357_p1 }
 0x209   : > { %v10992_v5 = vpack.c.bf16 %v13297_v15, %v13296_v19  ;;  %v377_v8 = vrot.slane %v10971_v43, %v13298_v4  ;;  %v605_v39 = vrot.slane %v10971_v43, %v13299_v10  ;;  %v829_v20 = vrot.slane %v10971_v43, %v13300_v22  ;;  %7949 = vmatpush1.bf16.msra.mxu1 %v7948_v31  ;;  %v13305_v18 = vld [vmem:[#allocation11_spill] sm:$0xff]  ;;  %v13316_v19 = vld [vmem:[#allocation33_spill] sm:$0xff]  ;;  %v13318_v55 = vld [vmem:[#allocation66_spill] sm:$0xff] }
 0x20a   : > { %v385_v33 = vrot.slane %v10974_v29, %v13298_v4  ;;  %v613_v46 = vrot.slane %v10974_v29, %v13299_v10  ;;  %v837_v60 = vrot.slane %v10974_v29, %v13300_v22  ;;  %7951 = vmatprep.subr.bf16.mxu1 %v7950_v24  ;;  %3893 = vmatmul.mubr.f32.vlgmr.msra.gmra.mrb[4].mxu0 %v13305_v18  ;;  %v13312_v10 = vld [vmem:[#allocation21_spill] sm:$0xff]  ;;  %v13319_v2 = vld [vmem:[#allocation39_spill] sm:$0xff]  ;;  %p8353_p11 = pneg %p8352_p4 }
 0x20b   : > { %v11023_v56 = vrot.slane %v377_v8, %v13301_v59  ;;  %v11026_v53 = vrot.slane %v605_v39, %v13302_v41  ;;  %v11029_v57 = vrot.slane %v829_v20, %v13306_v51  ;;  %7905 = vmatpush1.bf16.msra.mxu0 %v7904_v52  ;;  %3979 = vmatprep.mubr.f32.mxu0 %v12918_v32  ;;  %v13313_v39 = vld [vmem:[#allocation26_spill] sm:$0xff]  ;;  %v13314_v20 = vld [vmem:[#allocation20_spill] sm:$0xff] }
 0x20c   : > { %v11036_v24 = vrot.slane %v385_v33, %v13301_v59  ;;  %v11039_v15 = vrot.slane %v613_v46, %v13302_v41  ;;  %v11042_v31 = vrot.slane %v837_v60, %v13306_v51  ;;  %4436 = vmatmul.mubr.f32.vlgmr.msra.gmra.mrb[4].mxu1 %v13305_v18  ;;  %7907 = vmatprep.subr.bf16.mxu0 %v7906_v14  ;;  %v13315_v46 = vld [vmem:[#allocation25_spill] sm:$0xff]  ;;  %p8360_p3 = pnand %p8359_p10, %p8353_p11 }
 0x20d   : > { %v499_v52 = vsub.f32 %v11023_v56, %v13312_v10  ;;  %v515_v22 = vsub.f32 %v11023_v56, %v13313_v39  ;;  %v723_v33 = vsub.f32 %v11026_v53, %v13314_v20  ;;  %7953 = vmatpush1.bf16.msra.mxu1 %v7952_v45  ;;  %4522 = vmatprep.mubr.f32.mxu1 %v12918_v32 }
 0x20e   : > { %13309 = vst [vmem:[#allocation71_spill] sm:$0xff] %v11036_v24  ;;  %13310 = vst [vmem:[#allocation38_spill] sm:$0xff] %v11039_v15  ;;  %v739_v60 = vsub.f32 %v11026_v53, %v13315_v46  ;;  %v947_v8 = vsub.f32 %v11029_v57, %v13316_v19  ;;  %v963_v14 = vsub.f32 %v11029_v57, %v13317_v16  ;;  %vm13320_vm6 = vnez %v13319_v2 }
 0x20f   : > { %13311 = vst [vmem:[#allocation35_spill] sm:$0xff] %v11042_v31  ;;  %7955 = vmatprep.subr.bf16.mxu1 %v7954_v30  ;;  %v1011_v4 = vmul.f32 %v499_v52, %v499_v52  ;;  %v1027_v1 = vmul.f32 %v515_v22, %v515_v22  ;;  %v1075_v23 = vmul.f32 %v723_v33, %v723_v33 }
 0x210   : > { %v501_v45 = vsub.f32 %v11036_v24, %v13312_v10  ;;  %7909 = vmatpush1.bf16.msra.mxu0 %v7908_v6  ;;  %v1091_v40 = vmul.f32 %v739_v60, %v739_v60  ;;  %v1203_v35 = vmul.f32 %v947_v8, %v947_v8  ;;  %v1219_v36 = vmul.f32 %v963_v14, %v963_v14 }
 0x211   : > { %v517_v11 = vsub.f32 %v11036_v24, %v13313_v39  ;;  %7911 = vmatprep.subr.msk.bf16.mxu0 %vm10487_vm2, %v13001_v50  ;;  %v1139_v2 = vadd.f32 %v1075_v23, %v1011_v4  ;;  %v725_v30 = vsub.f32 %v11039_v15, %v13314_v20  ;;  %v741_v52 = vsub.f32 %v11039_v15, %v13315_v46  ;;  %v13324_v23 = vld [vmem:[#allocation16_spill] sm:$0xff] }
 0x212   : > { %v949_v6 = vsub.f32 %v11042_v31, %v13316_v19  ;;  %v13322_v8 = vpack.c.bf16 %v10940_v54, %v10938_v49  ;;  %v1155_v22 = vadd.f32 %v1091_v40, %v1027_v1  ;;  %v965_v33 = vsub.f32 %v11042_v31, %v13317_v16 }
 0x213   : > { %v1013_v60 = vmul.f32 %v501_v45, %v501_v45  ;;  %v1029_v14 = vmul.f32 %v517_v11, %v517_v11  ;;  %3982 = vmatmul.mubr.f32.vlgmr.msra.gmra.mrb[4].mxu0 %v13324_v23  ;;  %v1267_v27 = vadd.f32 %v1203_v35, %v1139_v2  ;;  %v1077_v38 = vmul.f32 %v725_v30, %v725_v30  ;;  %v13331_v2 = vld [vmem:[#allocation44_spill] sm:$0xff] }
 0x214   : > { %7957 = vmatpush1.bf16.msra.mxu1 %v13322_v8  ;;  %v1093_v62 = vmul.f32 %v741_v52, %v741_v52  ;;  %7913 = vmatpush1.bf16.msk.msra.mxu0 %vm10521_vm13, %v13001_v50  ;;  %v1283_v11 = vadd.f32 %v1219_v36, %v1155_v22  ;;  %v1205_v54 = vmul.f32 %v949_v6, %v949_v6  ;;  %v13336_v22 = vld [vmem:[#allocation29_spill] sm:$0xff]  ;;  %v13346_v36 = vld [vmem:[#allocation68_spill] sm:$0xff]  ;;  %v13384_v35 = vmov 0 }
 0x215   : > { %7959 = vmatprep.subr.msk.bf16.mxu1 %vm10507_vm7, %v13001_v50  ;;  %4060 = vmatprep.mubr.f32.mxu0 %v12918_v32  ;;  %v1221_v40 = vmul.f32 %v965_v33, %v965_v33  ;;  %vm11101_vm4 = vcmp.le.f32.partialorder %v1267_v27, %v13331_v2  ;;  %v1141_v52 = vadd.f32 %v1077_v38, %v1013_v60  ;;  %v13338_v33 = vld [vmem:[#allocation37_spill] sm:$0xff]  ;;  %v13341_v27 = vld [vmem:[#allocation23_spill] sm:$0xff] }
 0x216   : > { %7915 = vmatprep.subr.msk.bf16.mxu0 %vm10607_vm0, %v13001_v50  ;;  %v1157_v49 = vadd.f32 %v1093_v62, %v1029_v14  ;;  %vm13337_vm14 = vnez %v13336_v22  ;;  %vm11113_vm15 = vcmp.le.f32.partialorder %v1283_v11, %v13338_v33  ;;  %v5952_v38 = vsel %vm11101_vm4, %v13341_v27, -inf  ;;  %v13342_v62 = vld [vmem:[#allocation67_spill] sm:$0xff]  ;;  %v13343_v14 = vld [vmem:[#allocation69_spill] sm:$0xff] }
 0x217   : > { %4525 = vmatmul.mubr.f32.vlgmr.msra.gmra.mrb[4].mxu1 %v13324_v23  ;;  %v6305_v60 = vsel %vm11101_vm4, %v13342_v62, inf  ;;  %v6659_v6 = vsel %vm11101_vm4, %v13343_v14, -inf  ;;  %v13344_v23 = vld [vmem:[#allocation70_spill] sm:$0xff]  ;;  %v5968_v11 = vsel %vm11113_vm15, %v13318_v55, -inf  ;;  %v6321_v45 = vsel %vm11113_vm15, %v13346_v36, inf }
 0x218   : > { %7961 = vmatpush1.bf16.msk.msra.mxu1 %vm13337_vm14, %v13001_v50  ;;  %4603 = vmatprep.mubr.f32.mxu1 %v12918_v32  ;;  %vm13345_vm8 = vnez %v13344_v23  ;;  %v6675_v31 = vsel %vm11113_vm15, %v13347_v47, -inf  ;;  %v1269_v34 = vadd.f32 %v1205_v54, %v1141_v52  ;;  %vm13348_vm1 = vnez %v13268_v37 }
 0x219   : > { %7963 = vmatprep.subr.msk.bf16.mxu1 %vm13345_vm8, %v13001_v50  ;;  %7917 = vmatpush1.bf16.msk.msra.mxu0 %vm13348_vm1, %v13001_v50  ;;  %v11141_v25 = vmax.f32 %v5952_v38, %v5968_v11  ;;  %v11143_v15 = vmin.f32 %v6305_v60, %v6321_v45  ;;  %v11145_v26 = vmax.f32 %v6659_v6, %v6675_v31  ;;  %v13358_v6 = vld [vmem:[#allocation19_spill] sm:$0xff]  ;;  %v13373_v23 = vmov 0 }
 0x21a   : > { %v1285_v24 = vadd.f32 %v1221_v40, %v1157_v49  ;;  %7919 = vmatprep.subr.bf16.mxu0 %v10968_v44  ;;  %vm11149_vm5 = vcmp.le.f32.partialorder %v1269_v34, %v13331_v2  ;;  %v13354_v54 = vrot.slane %v10971_v43, %v13301_v59  ;;  %v13355_v45 = vrot.slane %v10971_v43, %v13302_v41 }
 0x21b   : > { %13349 = vst [vmem:[#allocation30_spill] sm:$0xff] %v11141_v25  ;;  %13350 = vst [vmem:[#allocation74_spill] sm:$0xff] %v11143_v15  ;;  %v825_v44 = vrot.slane %v10971_v43, %v13306_v51  ;;  %v5954_v49 = vsel %vm11149_vm5, %v13341_v27, -inf  ;;  %v6307_v40 = vsel %vm11149_vm5, %v13342_v62, inf  ;;  %v6661_v43 = vsel %vm11149_vm5, %v13343_v14, -inf  ;;  %v11252_v15 = vpop.f32.mrb[0].mxu0 }
 0x21c   : > { %13351 = vst [vmem:[#allocation79_spill] sm:$0xff] %v11145_v26  ;;  %v11157_v52 = vrot.slane %v13354_v54, %v13301_v59  ;;  %v11163_v31 = vrot.slane %v13355_v45, %v13302_v41  ;;  %7965 = vmatpush1.bf16.msk.msra.mxu1 %vm10795_vm12, %v13001_v50  ;;  %vm11171_vm10 = vcmp.le.f32.partialorder %v1285_v24, %v13338_v33  ;;  %v13359_v26 = vld [vmem:[#allocation47_spill] sm:$0xff]  ;;  %13365 = vst [vmem:[#allocation24_spill] sm:$0xff] %v11252_v15 }
 0x21d   : > { %7967 = vmatprep.subr.bf16.mxu1 %v10980_v0  ;;  %4064 = vmatmul.mubr.f32.vlgmr.msra.gmra.mrb[4].mxu0 %v13358_v6  ;;  %v5970_v24 = vsel %vm11171_vm10, %v13318_v55, -inf  ;;  %v6323_v38 = vsel %vm11171_vm10, %v13346_v36, inf  ;;  %v6677_v60 = vsel %vm11171_vm10, %v13347_v47, -inf  ;;  %vm13360_vm9 = vnez %v13359_v26 }
 0x21e   : > { %v498_v11 = vsub.f32 %v11157_v52, %v13312_v10  ;;  %7921 = vmatpush1.bf16.msra.mxu0 %v10986_v48  ;;  %4158 = vmatprep.mubr.f32.mxu0 %v12918_v32  ;;  %v11199_v0 = vmax.f32 %v5954_v49, %v5970_v24  ;;  %v11201_v54 = vmin.f32 %v6307_v40, %v6323_v38  ;;  %v13361_v40 = vld [vmem:[#allocation45_spill] sm:$0xff] }
 0x21f   : > { %v11203_v45 = vmax.f32 %v6661_v43, %v6677_v60  ;;  %4607 = vmatmul.mubr.f32.vlgmr.msra.gmra.mrb[4].mxu1 %v13358_v6  ;;  %7923 = vmatprep.subr.bf16.mxu0 %v10994_v3  ;;  %v514_v25 = vsub.f32 %v11157_v52, %v13313_v39  ;;  %v722_v48 = vsub.f32 %v11163_v31, %v13314_v20  ;;  %v13363_v60 = vld [vmem:[#allocation48_spill] sm:$0xff] }
 0x220   : > { %v738_v49 = vsub.f32 %v11163_v31, %v13315_v46  ;;  %vm13362_vm3 = vnez %v13361_v40  ;;  %7969 = vmatpush1.bf16.msra.mxu1 %v10992_v5  ;;  %4701 = vmatprep.mubr.f32.mxu1 %v12918_v32  ;;  %v11222_v24 = vrot.slane %v825_v44, %v13306_v51  ;;  %v1010_v3 = vmul.f32 %v498_v11, %v498_v11 }
 0x221   : > { %v381_v38 = vrot.slane %v10974_v29, %v13301_v59  ;;  %vm13364_vm11 = vnez %v13363_v60  ;;  %7971 = vmatprep.subr.bf16.mxu1 %v10996_v13  ;;  %v1026_v6 = vmul.f32 %v514_v25, %v514_v25  ;;  %v1074_v40 = vmul.f32 %v722_v48, %v722_v48 }
 0x222   : > { %v1090_v43 = vmul.f32 %v738_v49, %v738_v49  ;;  %v609_v5 = vrot.slane %v10974_v29, %v13302_v41  ;;  %7925 = vmatpush1.bf16.msra.mxu0 %v10998_v12  ;;  %v946_v44 = vsub.f32 %v11222_v24, %v13316_v19  ;;  %v962_v11 = vsub.f32 %v11222_v24, %v13317_v16 }
 0x223   : > { %v11238_v26 = vrot.slane %v381_v38, %v13301_v59  ;;  %v833_v13 = vrot.slane %v10974_v29, %v13306_v51  ;;  %7927 = vmatprep.subr.msk.bf16.mxu0 %vm10487_vm2, %v13001_v50  ;;  %v1138_v25 = vadd.f32 %v1074_v40, %v1010_v3  ;;  %v11250_v49 = vsub.f32 %v11023_v56, %v13037_v58 }
 0x224   : > { %v1154_v48 = vadd.f32 %v1090_v43, %v1026_v6  ;;  %v11246_v12 = vrot.slane %v609_v5, %v13302_v41  ;;  %7973 = vmatpush1.bf16.msra.mxu1 %v11000_v63  ;;  %v1202_v59 = vmul.f32 %v946_v44, %v946_v44  ;;  %v1218_v38 = vmul.f32 %v962_v11, %v962_v11  ;;  %v11259_v6 = vpop.f32.mrb[1].mxu0 }
 0x225   : > { %v500_v29 = vsub.f32 %v11238_v26, %v13312_v10  ;;  %v516_v17 = vsub.f32 %v11238_v26, %v13313_v39  ;;  %13366 = vst [vmem:[#allocation13_spill] sm:$0xff] %v11259_v6  ;;  %7975 = vmatprep.subr.msk.bf16.mxu1 %vm10507_vm7, %v13001_v50  ;;  %4160 = vmatmul.mubr.f32.vlgmr.msra.gmra.mrb[4].mxu0 %v13305_v18  ;;  %v11275_v10 = vsel %vm11101_vm4, 1.0, %v12918_v32  ;;  %v11277_v39 = vpop.f32.mrb[0].mxu1  ;;  %v11301_v44 = vsel %vm11149_vm5, 1.0, %v12918_v32 }
 0x226   : > { %v724_v41 = vsub.f32 %v11246_v12, %v13314_v20  ;;  %v740_v63 = vsub.f32 %v11246_v12, %v13315_v46  ;;  %v11270_v40 = vrot.slane %v833_v13, %v13306_v51  ;;  %13367 = vst [vmem:[#allocation17_spill] sm:$0xff] %v11277_v39  ;;  %7929 = vmatpush1.bf16.msk.msra.mxu0 %vm10521_vm13, %v13001_v50  ;;  %v11286_v51 = vsel %vm11113_vm15, 1.0, %v12918_v32  ;;  %v11288_v46 = vpop.f32.mrb[1].mxu1  ;;  %vm11344_vm13 = vmpackc.low %vm11113_vm15, %vm11101_vm4  ;;  %v13415_v39 = vld [vmem:[#allocation35_spill] sm:$0xff] }
 0x227   : > { %4238 = vmatprep.mubr.f32.mxu0 %v12918_v32  ;;  %v1266_v20 = vadd.f32 %v1202_v59, %v1138_v25  ;;  %v1282_v4 = vadd.f32 %v1218_v38, %v1154_v48  ;;  %v1012_v43 = vmul.f32 %v500_v29, %v500_v29  ;;  %13368 = vst [vmem:[#allocation14_spill] sm:$0xff] %v11288_v46  ;;  %v11320_v11 = vsel %vm11171_vm10, 1.0, %v12918_v32 }
 0x228   : > { %4703 = vmatmul.mubr.f32.vlgmr.msra.gmra.mrb[4].mxu1 %v13305_v18  ;;  %7931 = vmatprep.subr.msk.bf16.mxu0 %vm10607_vm0, %v13001_v50  ;;  %v948_v1 = vsub.f32 %v11270_v40, %v13316_v19  ;;  %v964_v3 = vsub.f32 %v11270_v40, %v13317_v16  ;;  %v1028_v5 = vmul.f32 %v516_v17, %v516_v17  ;;  %v13374_v23 = vsel %vm11344_vm13, 4294967295, %v13373_v23  ;;  %vm11370_vm0 = vmpackc.low %vm11171_vm10, %vm11149_vm5 }
 0x229   : > { %7977 = vmatpush1.bf16.msk.msra.mxu1 %vm13337_vm14, %v13001_v50  ;;  %4781 = vmatprep.mubr.f32.mxu1 %v12918_v32  ;;  %vm11308_vm2 = vcmp.le.f32.partialorder %v1266_v20, %v13331_v2  ;;  %vm11313_vm7 = vcmp.le.f32.partialorder %v1282_v4, %v13338_v33  ;;  %v1076_v19 = vmul.f32 %v724_v41, %v724_v41  ;;  %v13376_v20 = vmov 0 }
 0x22a   : > { %7979 = vmatprep.subr.msk.bf16.mxu1 %vm13345_vm8, %v13001_v50  ;;  %v5951_v22 = vsel %vm11308_vm2, %v13341_v27, -inf  ;;  %v5967_v13 = vsel %vm11313_vm7, %v13318_v55, -inf  ;;  %v6304_v25 = vsel %vm11308_vm2, %v13342_v62, inf  ;;  %v6320_v48 = vsel %vm11313_vm7, %v13346_v36, inf  ;;  %7933 = vmatpush1.bf16.msk.msra.mxu0 %vm13348_vm1, %v13001_v50  ;;  %13375 = vst [vmem:[#allocation15_spill] sm:$0xff] %v13374_v23 }
 0x22b   : > { %v11348_v59 = vmax.f32 %v5951_v22, %v5967_v13  ;;  %v11350_v38 = vmin.f32 %v6304_v25, %v6320_v48  ;;  %v6658_v29 = vsel %vm11308_vm2, %v13343_v14, -inf  ;;  %v6674_v37 = vsel %vm11313_vm7, %v13347_v47, -inf  ;;  %7983 = vmatprep.subr.msk.bf16.mxu0 %vm11344_vm13, %v13001_v50 }
 0x22c   : > { %v11361_v8 = vmax.f32 %v6658_v29, %v6674_v37  ;;  %v1092_v30 = vmul.f32 %v740_v63, %v740_v63  ;;  %v1140_v17 = vadd.f32 %v1076_v19, %v1012_v43  ;;  %v1204_v41 = vmul.f32 %v948_v1, %v948_v1  ;;  %v13383_v1 = vld [vmem:[#allocation41_spill] sm:$0xff] }
 0x22d   : > { %7981 = vmatpush1.bf16.msk.msra.mxu1 %vm10795_vm12, %v13001_v50  ;;  %v13377_v20 = vsel %vm11370_vm0, 4294967295, %v13376_v20  ;;  %v1220_v4 = vmul.f32 %v964_v3, %v964_v3  ;;  %v547_v22 = vsub.f32 %v11023_v56, %v13038_v21  ;;  %v755_v63 = vsub.f32 %v11026_v53, %v13040_v28  ;;  %4240 = vmatmul.mubr.f32.vlgmr.msra.gmra.mrb[4].mxu0 %v13305_v18  ;;  %vm11388_vm12 = vmpackc.low %vm11313_vm7, %vm11308_vm2 }
 0x22e   : > { %13378 = vst [vmem:[#allocation18_spill] sm:$0xff] %v13377_v20  ;;  %v771_v43 = vsub.f32 %v11026_v53, %v13211_v9  ;;  %8031 = vmatprep.subr.msk.bf16.mxu1 %vm11370_vm0, %v13001_v50  ;;  %v13380_v42 = vsel %vm11388_vm12, 4294967295, %v13379_v42  ;;  %v1156_v61 = vadd.f32 %v1092_v30, %v1028_v5  ;;  %v1268_v56 = vadd.f32 %v1204_v41, %v1140_v17  ;;  %v13412_v20 = vld [vmem:[#allocation74_spill] sm:$0xff] }
 0x22f   : > { %13381 = vst [vmem:[#allocation21_spill] sm:$0xff] %v13380_v42  ;;  %v979_v34 = vsub.f32 %v11029_v57, %v13212_v7  ;;  %v11397_v53 = vsel %vm11308_vm2, 1.0, %v12918_v32  ;;  %7985 = vmatpush1.bf16.msk.msra.mxu0 %vm11388_vm12, %v13001_v50  ;;  %v995_v3 = vsub.f32 %v11029_v57, %v13383_v1  ;;  %v1043_v19 = vmul.f32 %v11250_v49, %v11250_v49 }
 0x230   : > { %13382 = vst [vmem:[#allocation26_spill] sm:$0xff] %v11397_v53  ;;  %v1059_v5 = vmul.f32 %v547_v22, %v547_v22  ;;  %v1107_v13 = vmul.f32 %v755_v63, %v755_v63  ;;  %4783 = vmatmul.mubr.f32.vlgmr.msra.gmra.mrb[4].mxu1 %v13305_v18  ;;  %v1284_v25 = vadd.f32 %v1220_v4, %v1156_v61  ;;  %v13390_v4 = vld [vmem:[#allocation71_spill] sm:$0xff]  ;;  %v13391_v63 = vmov 0 }
 0x231   : > { %vm11408_vm10 = vcmp.le.f32.partialorder %v1268_v56, %v13331_v2  ;;  %v1123_v48 = vmul.f32 %v771_v43, %v771_v43  ;;  %v1235_v29 = vmul.f32 %v979_v34, %v979_v34  ;;  %4861 = vmatprep.mubr.f32.mxu0 %v12918_v32  ;;  %5404 = vmatprep.mubr.f32.mxu1 %v12918_v32  ;;  %v13387_v2 = vmov 0 }
 0x232   : > { %v13385_v35 = vsel %vm11408_vm10, 4294967295, %v13384_v35  ;;  %v5953_v37 = vsel %vm11408_vm10, %v13341_v27, -inf  ;;  %v6306_v57 = vsel %vm11408_vm10, %v13342_v62, inf  ;;  %v6660_v49 = vsel %vm11408_vm10, %v13343_v14, -inf  ;;  %v13414_v62 = vld [vmem:[#allocation79_spill] sm:$0xff] }
 0x233   : > { %13386 = vst [vmem:[#allocation20_spill] sm:$0xff] %v13385_v35  ;;  %v1171_v30 = vadd.f32 %v1107_v13, %v1043_v19  ;;  %vm11424_vm5 = vcmp.le.f32.partialorder %v1284_v25, %v13338_v33  ;;  %v1187_v17 = vadd.f32 %v1123_v48, %v1059_v5  ;;  %v1251_v41 = vmul.f32 %v995_v3, %v995_v3  ;;  %v13394_v13 = vld [vmem:[#allocation49_spill] sm:$0xff] }
 0x234   : > { %v13388_v2 = vsel %vm11424_vm5, 4294967295, %v13387_v2  ;;  %v533_v22 = vsub.f32 %v13390_v4, %v13037_v58  ;;  %vm11434_vm4 = vmpackc.low %vm11424_vm5, %vm11408_vm10  ;;  %v5969_v33 = vsel %vm11424_vm5, %v13318_v55, -inf  ;;  %v6322_v43 = vsel %vm11424_vm5, %v13346_v36, inf  ;;  %v13413_v36 = vld [vmem:[#allocation77_spill] sm:$0xff] }
 0x235   : > { %13389 = vst [vmem:[#allocation25_spill] sm:$0xff] %v13388_v2  ;;  %v13392_v63 = vsel %vm11434_vm4, 4294967295, %v13391_v63  ;;  %v6676_v61 = vsel %vm11424_vm5, %v13347_v47, -inf  ;;  %v1299_v56 = vadd.f32 %v1235_v29, %v1171_v30  ;;  %8033 = vmatpush1.bf16.msk.msra.mxu1 %vm11434_vm4, %v13001_v50  ;;  %v11450_v34 = vmax.f32 %v5953_v37, %v5969_v33  ;;  %v13398_v29 = vld [vmem:[#allocation38_spill] sm:$0xff]  ;;  %v13399_v33 = vld [vmem:[#allocation51_spill] sm:$0xff] }
 0x236   : > { %13393 = vst [vmem:[#allocation33_spill] sm:$0xff] %v13392_v63  ;;  %v11452_v3 = vmin.f32 %v6306_v57, %v6322_v43  ;;  %v11454_v19 = vmax.f32 %v6660_v49, %v6676_v61  ;;  %v1315_v5 = vadd.f32 %v1251_v41, %v1187_v17  ;;  %v13395_v25 = vmov 0  ;;  %v13403_v49 = vld [vmem:[#allocation61_spill] sm:$0xff]  ;;  %v13404_v41 = vld [vmem:[#allocation50_spill] sm:$0xff]  ;;  %v13411_v63 = vld [vmem:[#allocation75_spill] sm:$0xff] }
 0x237   : > { %vm11457_vm14 = vcmp.le.f32.partialorder %v1299_v56, %v13394_v13  ;;  %v549_v48 = vsub.f32 %v13390_v4, %v13038_v21  ;;  %v757_v30 = vsub.f32 %v13398_v29, %v13040_v28  ;;  %v773_v37 = vsub.f32 %v13398_v29, %v13211_v9  ;;  %v13405_v4 = vld [vmem:[#allocation65_spill] sm:$0xff]  ;;  %v13410_v47 = vld [vmem:[#allocation30_spill] sm:$0xff] }
 0x238   : > { %v13396_v25 = vsel %vm11457_vm14, 4294967295, %v13395_v25  ;;  %vm11468_vm15 = vcmp.le.f32.partialorder %v1315_v5, %v13399_v33  ;;  %v13400_v57 = vmov 0  ;;  %v5984_v17 = vsel %vm11457_vm14, %v13403_v49, -inf  ;;  %v13409_v5 = vld [vmem:[#allocation34_spill] sm:$0xff] }
 0x239   : > { %13397 = vst [vmem:[#allocation32_spill] sm:$0xff] %v13396_v25  ;;  %v13401_v57 = vsel %vm11468_vm15, 4294967295, %v13400_v57  ;;  %v6337_v43 = vsel %vm11457_vm14, %v13404_v41, inf  ;;  %v6691_v61 = vsel %vm11457_vm14, %v13405_v4, -inf  ;;  %vm11485_vm8 = vmpackc.low %vm11468_vm15, %vm11457_vm14  ;;  %v13406_v56 = vmov 0 }
 0x23a   : > { %13402 = vst [vmem:[#allocation73_spill] sm:$0xff] %v13401_v57  ;;  %v13407_v56 = vsel %vm11485_vm8, 4294967295, %v13406_v56  ;;  %v6000_v29 = vsel %vm11468_vm15, %v13409_v5, -inf  ;;  %v6121_v14 = vmax.f32 %v13410_v47, %v5984_v17  ;;  %v6353_v42 = vsel %vm11468_vm15, %v13411_v63, inf  ;;  %7987 = vmatprep.subr.msk.bf16.mxu0 %vm11485_vm8, %v13001_v50 }
 0x23b   : > { %13408 = vst [vmem:[#allocation80_spill] sm:$0xff] %v13407_v56  ;;  %v6474_v23 = vmin.f32 %v13412_v20, %v6337_v43  ;;  %v6707_v46 = vsel %vm11468_vm15, %v13413_v36, -inf  ;;  %v6828_v6 = vmax.f32 %v13414_v62, %v6691_v61  ;;  %v981_v15 = vsub.f32 %v13415_v39, %v13212_v7 }
 0x23c   : > { %v997_v47 = vsub.f32 %v13415_v39, %v13383_v1  ;;  %v6122_v17 = vmax.f32 %v6121_v14, %v6000_v29  ;;  %v1045_v60 = vmul.f32 %v533_v22, %v533_v22  ;;  %v1061_v20 = vmul.f32 %v549_v48, %v549_v48 }
 0x23d   : > { %v6475_v18 = vmin.f32 %v6474_v23, %v6353_v42  ;;  %v6829_v43 = vmax.f32 %v6828_v6, %v6707_v46  ;;  %v1109_v27 = vmul.f32 %v757_v30, %v757_v30  ;;  %v1125_v56 = vmul.f32 %v773_v37, %v773_v37 }
 0x23e   : > { %v1237_v55 = vmul.f32 %v981_v15, %v981_v15  ;;  %v6123_v25 = vrot.slane %v6122_v17, 4  ;;  %v1253_v57 = vmul.f32 %v997_v47, %v997_v47  ;;  %v530_v62 = vsub.f32 %v11157_v52, %v13037_v58 }
 0x23f   : > { %v6476_v2 = vrot.slane %v6475_v18, 4  ;;  %v6830_v61 = vrot.slane %v6829_v43, 4  ;;  %v1173_v35 = vadd.f32 %v1109_v27, %v1045_v60  ;;  %v1189_v53 = vadd.f32 %v1125_v56, %v1061_v20 }
 0x240   : > { %v546_v39 = vsub.f32 %v11157_v52, %v13038_v21  ;;  %v6124_v14 = vmax.f32 %v6122_v17, %v6123_v25  ;;  %v754_v6 = vsub.f32 %v11163_v31, %v13040_v28  ;;  %v770_v15 = vsub.f32 %v11163_v31, %v13211_v9 }
 0x241   : > { %v6477_v23 = vmin.f32 %v6475_v18, %v6476_v2  ;;  %v6831_v46 = vmax.f32 %v6829_v43, %v6830_v61  ;;  %v1301_v42 = vadd.f32 %v1237_v55, %v1173_v35  ;;  %v1317_v22 = vadd.f32 %v1253_v57, %v1189_v53 }
 0x242   : > { %v978_v48 = vsub.f32 %v11222_v24, %v13212_v7  ;;  %v6125_v30 = vrot.slane %v6124_v14, 2  ;;  %v994_v60 = vsub.f32 %v11222_v24, %v13383_v1  ;;  %v1042_v52 = vmul.f32 %v530_v62, %v530_v62 }
 0x243   : > { %v6478_v27 = vrot.slane %v6477_v23, 2  ;;  %v6832_v25 = vrot.slane %v6831_v46, 2  ;;  %vm11521_vm1 = vcmp.le.f32.partialorder %v1301_v42, %v13394_v13  ;;  %v13416_v18 = vmov 0 }
 0x244   : > { %v13417_v18 = vsel %vm11521_vm1, 4294967295, %v13416_v18  ;;  %vm11526_vm2 = vcmp.le.f32.partialorder %v1317_v22, %v13399_v33  ;;  %v13419_v31 = vmov 0  ;;  %v1058_v55 = vmul.f32 %v546_v39, %v546_v39 }
 0x245   : > { %13418 = vst [vmem:[#allocation76_spill] sm:$0xff] %v13417_v18  ;;  %v13420_v31 = vsel %vm11526_vm2, 4294967295, %v13419_v31  ;;  %v6126_v53 = vmax.f32 %v6124_v14, %v6125_v30  ;;  %v6479_v35 = vmin.f32 %v6477_v23, %v6478_v27  ;;  %vm11534_vm4 = vmpackc.low %vm11526_vm2, %vm11521_vm1  ;;  %v13422_v24 = vmov 0 }
 0x246   : > { %13421 = vst [vmem:[#allocation78_spill] sm:$0xff] %v13420_v31  ;;  %v13423_v24 = vsel %vm11534_vm4, 4294967295, %v13422_v24  ;;  %v5986_v2 = vsel %vm11521_vm1, %v13403_v49, -inf  ;;  %v6002_v37 = vsel %vm11526_vm2, %v13409_v5, -inf  ;;  %v6833_v57 = vmax.f32 %v6831_v46, %v6832_v25  ;;  %8035 = vmatprep.subr.msk.bf16.mxu1 %vm11534_vm4, %v13001_v50 }
 0x247   : > { %13424 = vst [vmem:[#allocation44_spill] sm:$0xff] %v13423_v24  ;;  %v6139_v56 = vmax.f32 %v11199_v0, %v5986_v2  ;;  %v6339_v29 = vsel %vm11521_vm1, %v13404_v41, inf  ;;  %v6355_v47 = vsel %vm11526_vm2, %v13411_v63, inf  ;;  %v6127_v17 = vrot.slane %v6126_v53, 1 }
 0x248   : > { %v6480_v20 = vrot.slane %v6479_v35, 1  ;;  %v6492_v43 = vmin.f32 %v11201_v54, %v6339_v29  ;;  %v6693_v62 = vsel %vm11521_vm1, %v13405_v4, -inf  ;;  %v6834_v61 = vrot.slane %v6833_v57, 1 }
 0x249   : > { %v6140_v39 = vmax.f32 %v6139_v56, %v6002_v37  ;;  %v6709_v0 = vsel %vm11526_vm2, %v13413_v36, -inf  ;;  %v6846_v14 = vmax.f32 %v11203_v45, %v6693_v62  ;;  %v11562_v23 = vmax.f32 %v6126_v53, %v6127_v17 }
 0x24a   : > { %v11564_v46 = vmin.f32 %v6479_v35, %v6480_v20  ;;  %v6493_v42 = vmin.f32 %v6492_v43, %v6355_v47  ;;  %v1106_v22 = vmul.f32 %v754_v6, %v754_v6  ;;  %v11566_v30 = vmax.f32 %v6833_v57, %v6834_v61 }
 0x24b   : > { %v6141_v54 = vrot.slane %v6140_v39, 4  ;;  %v6847_v27 = vmax.f32 %v6846_v14, %v6709_v0  ;;  %v1122_v25 = vmul.f32 %v770_v15, %v770_v15  ;;  %v1234_v37 = vmul.f32 %v978_v48, %v978_v48 }
 0x24c   : > { %v6494_v2 = vrot.slane %v6493_v42, 4  ;;  %v1170_v29 = vadd.f32 %v1106_v22, %v1042_v52  ;;  %v1250_v56 = vmul.f32 %v994_v60, %v994_v60  ;;  %v532_v45 = vsub.f32 %v11238_v26, %v13037_v58 }
 0x24d   : > { %v6142_v24 = vmax.f32 %v6140_v39, %v6141_v54  ;;  %v6848_v31 = vrot.slane %v6847_v27, 4  ;;  %v1186_v18 = vadd.f32 %v1122_v25, %v1058_v55  ;;  %v548_v6 = vsub.f32 %v11238_v26, %v13038_v21 }
 0x24e   : > { %v6495_v53 = vmin.f32 %v6493_v42, %v6494_v2  ;;  %v1298_v35 = vadd.f32 %v1234_v37, %v1170_v29  ;;  %v756_v57 = vsub.f32 %v11246_v12, %v13040_v28  ;;  %v772_v48 = vsub.f32 %v11246_v12, %v13211_v9  ;;  %v13431_v2 = vld [vmem:[#allocation22_spill] sm:$0xff] }
 0x24f   : > { %v6143_v47 = vrot.slane %v6142_v24, 2  ;;  %v6849_v15 = vmax.f32 %v6847_v27, %v6848_v31  ;;  %v1314_v17 = vadd.f32 %v1250_v56, %v1186_v18  ;;  %v980_v58 = vsub.f32 %v11270_v40, %v13212_v7 }
 0x250   : > { %v6496_v60 = vrot.slane %v6495_v53, 2  ;;  %vm11577_vm4 = vcmp.le.f32.partialorder %v1298_v35, %v13394_v13  ;;  %v996_v21 = vsub.f32 %v11270_v40, %v13383_v1  ;;  %v13429_v7 = vmov 0 }
 0x251   : > { %v6144_v26 = vmax.f32 %v6142_v24, %v6143_v47  ;;  %v6850_v28 = vrot.slane %v6849_v15, 2  ;;  %vm11586_vm8 = vcmp.le.f32.partialorder %v1314_v17, %v13399_v33  ;;  %v5983_v9 = vsel %vm11577_vm4, %v13403_v49, -inf }
 0x252   : > { %v6497_v12 = vmin.f32 %v6495_v53, %v6496_v60  ;;  %vm11597_vm12 = vmpackc.low %vm11586_vm8, %vm11577_vm4  ;;  %v5999_v40 = vsel %vm11586_vm8, %v13409_v5, -inf  ;;  %v6112_v1 = vmax.f32 %v11348_v59, %v5983_v9  ;;  %v6336_v31 = vsel %vm11577_vm4, %v13404_v41, inf }
 0x253   : > { %v13430_v7 = vsel %vm11597_vm12, 4294967295, %v13429_v7  ;;  %v6145_v55 = vrot.slane %v6144_v26, 1  ;;  %v6851_v24 = vmax.f32 %v6849_v15, %v6850_v28  ;;  %7989 = vmatpush1.bf16.msk.msra.mxu0 %vm11597_vm12, %v13001_v50  ;;  %v6352_v20 = vsel %vm11586_vm8, %v13411_v63, inf }
 0x254   : > { %v6465_v43 = vmin.f32 %v11350_v38, %v6336_v31  ;;  %v6498_v62 = vrot.slane %v6497_v12, 1  ;;  %v6113_v61 = vmax.f32 %v6112_v1, %v5999_v40  ;;  %v6690_v59 = vsel %vm11577_vm4, %v13405_v4, -inf }
 0x255   : > { %v6706_v39 = vsel %vm11586_vm8, %v13413_v36, -inf  ;;  %v11621_v0 = vmax.f32 %v6144_v26, %v6145_v55  ;;  %v6852_v14 = vrot.slane %v6851_v24, 1  ;;  %v6819_v22 = vmax.f32 %v11361_v8, %v6690_v59 }
 0x256   : > { %v6466_v42 = vmin.f32 %v6465_v43, %v6352_v20  ;;  %v11624_v54 = vmin.f32 %v6497_v12, %v6498_v62  ;;  %v6114_v27 = vrot.slane %v6113_v61, 4  ;;  %v1044_v38 = vmul.f32 %v532_v45, %v532_v45  ;;  %4867 = vmatmul.mubr.f32.vlgmr.msra.gmra.mrb[6].mxu0 %v13431_v2 }
 0x257   : > { %v1060_v25 = vmul.f32 %v548_v6, %v548_v6  ;;  %v11627_v29 = vmax.f32 %v6851_v24, %v6852_v14  ;;  %v6820_v56 = vmax.f32 %v6819_v22, %v6706_v39  ;;  %v1108_v53 = vmul.f32 %v756_v57, %v756_v57  ;;  %4977 = vmatprep.mubr.f32.mxu0 %v12918_v32 }
 0x258   : > { %v6467_v37 = vrot.slane %v6466_v42, 4  ;;  %v6115_v35 = vmax.f32 %v6113_v61, %v6114_v27  ;;  %v1124_v47 = vmul.f32 %v772_v48, %v772_v48  ;;  %v1236_v15 = vmul.f32 %v980_v58, %v980_v58 }
 0x259   : > { %v1252_v17 = vmul.f32 %v996_v21, %v996_v21  ;;  %v6821_v8 = vrot.slane %v6820_v56, 4  ;;  %v1172_v26 = vadd.f32 %v1108_v53, %v1044_v38  ;;  %v11632_v45 = vsub.f32 %v11275_v10, %v11275_v10 }
 0x25a   : > { %v6468_v60 = vmin.f32 %v6466_v42, %v6467_v37  ;;  %v6116_v6 = vrot.slane %v6115_v35, 2  ;;  %v1188_v28 = vadd.f32 %v1124_v47, %v1060_v25  ;;  %v11636_v9 = vsub.f32 %v11286_v51, %v11286_v51 }
 0x25b   : > { %v11640_v57 = vsub.f32 %v11301_v44, %v11301_v44  ;;  %v6822_v58 = vmax.f32 %v6820_v56, %v6821_v8  ;;  %v1300_v21 = vadd.f32 %v1236_v15, %v1172_v26  ;;  %v4875_v12 = vand.u32 4294901760, %v11632_v45  ;;  %v13438_v26 = vld [vmem:[#allocation64_spill] sm:$0xff] }
 0x25c   : > { %v6469_v48 = vrot.slane %v6468_v60, 2  ;;  %v6117_v40 = vmax.f32 %v6115_v35, %v6116_v6  ;;  %v1316_v1 = vadd.f32 %v1252_v17, %v1188_v28  ;;  %v4887_v10 = vand.u32 4294901760, %v11636_v9 }
 0x25d   : > { %v5418_v31 = vand.u32 4294901760, %v11640_v57  ;;  %v6823_v24 = vrot.slane %v6822_v58, 2  ;;  %vm11646_vm12 = vcmp.le.f32.partialorder %v1300_v21, %v13394_v13  ;;  %v4876_v44 = vsub.f32 %v11632_v45, %v4875_v12 }
 0x25e   : > { %v6470_v55 = vmin.f32 %v6468_v60, %v6469_v48  ;;  %v6118_v20 = vrot.slane %v6117_v40, 1  ;;  %vm11654_vm0 = vcmp.le.f32.partialorder %v1316_v1, %v13399_v33  ;;  %v5985_v62 = vsel %vm11646_vm12, %v13403_v49, -inf }
 0x25f   : > { %v6338_v13 = vsel %vm11646_vm12, %v13404_v41, inf  ;;  %v6824_v59 = vmax.f32 %v6822_v58, %v6823_v24  ;;  %vm11668_vm13 = vmpackc.low %vm11654_vm0, %vm11646_vm12  ;;  %v6001_v33 = vsel %vm11654_vm0, %v13409_v5, -inf  ;;  %v6130_v14 = vmax.f32 %v11450_v34, %v5985_v62 }
 0x260   : > { %v6471_v61 = vrot.slane %v6470_v55, 1  ;;  %v6119_v42 = vmax.f32 %v6117_v40, %v6118_v20  ;;  %8037 = vmatpush1.bf16.msk.msra.mxu1 %vm11668_vm13, %v13001_v50  ;;  %v6354_v22 = vsel %vm11654_vm0, %v13411_v63, inf  ;;  %v6483_v27 = vmin.f32 %v11452_v3, %v6338_v13 }
 0x261   : > { %v6692_v38 = vsel %vm11646_vm12, %v13405_v4, -inf  ;;  %v6825_v37 = vrot.slane %v6824_v59, 1  ;;  %v6131_v56 = vmax.f32 %v6130_v14, %v6001_v33  ;;  %v6708_v34 = vsel %vm11654_vm0, %v13413_v36, -inf }
 0x262   : > { %v6472_v25 = vmin.f32 %v6470_v55, %v6471_v61  ;;  %v6221_v53 = vcombine.low %v6119_v42, %v11562_v23  ;;  %v6484_v35 = vmin.f32 %v6483_v27, %v6354_v22  ;;  %v6837_v47 = vmax.f32 %v11454_v19, %v6692_v38 }
 0x263   : > { %v4877_v15 = vand.u32 4294901760, %v4876_v44  ;;  %v6826_v3 = vmax.f32 %v6824_v59, %v6825_v37  ;;  %v6132_v60 = vrot.slane %v6131_v56, 4  ;;  %v4888_v8 = vsub.f32 %v11636_v9, %v4887_v10  ;;  %5410 = vmatmul.mubr.f32.vlgmr.msra.gmra.mrb[6].mxu1 %v13431_v2  ;;  %v13439_v59 = vld [vmem:[#allocation26_spill] sm:$0xff] }
 0x264   : > { %v6575_v17 = vcombine.low %v6472_v25, %v11564_v46  ;;  %v11697_v6 = vrot.slane %v6221_v53, %v13438_v26  ;;  %v6485_v28 = vrot.slane %v6484_v35, 4  ;;  %v6838_v48 = vmax.f32 %v6837_v47, %v6708_v34  ;;  %5520 = vmatprep.mubr.f32.mxu1 %v12918_v32  ;;  %v13442_v34 = vld [vmem:[#allocation10_spill] sm:$0xff] }
 0x265   : > { %v5419_v19 = vsub.f32 %v11640_v57, %v5418_v31  ;;  %v6929_v46 = vcombine.low %v6826_v3, %v11566_v30  ;;  %v6133_v58 = vmax.f32 %v6131_v56, %v6132_v60  ;;  %v4889_v21 = vand.u32 4294901760, %v4888_v8 }
 0x266   : > { %v11704_v23 = vrot.slane %v6575_v17, %v13438_v26  ;;  %v6486_v40 = vmin.f32 %v6484_v35, %v6485_v28  ;;  %v6839_v2 = vrot.slane %v6838_v48, 4  ;;  %v11709_v55 = vsub.f32 %v11320_v11, %v11320_v11 }
 0x267   : > { %v5420_v1 = vand.u32 4294901760, %v5419_v19  ;;  %v11712_v24 = vrot.slane %v6929_v46, %v13438_v26  ;;  %v6134_v44 = vrot.slane %v6133_v58, 2  ;;  %v7990_v20 = vpack.c.bf16 %v4889_v21, %v4877_v15 }
 0x268   : > { %v7458_v62 = vsel %vm11313_vm7, 1.0, %v12918_v32  ;;  %v6487_v13 = vrot.slane %v6486_v40, 2  ;;  %v6840_v30 = vmax.f32 %v6838_v48, %v6839_v2  ;;  %v5430_v61 = vand.u32 4294901760, %v11709_v55 }
 0x269   : > { %v11720_v33 = vsub.f32 %v13439_v59, %v13439_v59  ;;  %v6135_v14 = vmax.f32 %v6133_v58, %v6134_v44  ;;  %7991 = vmatprep.subr.bf16.mxu0 %v7990_v20  ;;  %v11722_v11 = vsub.f32 %v7458_v62, %v7458_v62  ;;  %v7444_v22 = vsel %vm11408_vm10, 1.0, %v12918_v32 }
 0x26a   : > { %v7460_v16 = vsel %vm11424_vm5, 1.0, %v12918_v32  ;;  %v6488_v38 = vmin.f32 %v6486_v40, %v6487_v13  ;;  %v6841_v25 = vrot.slane %v6840_v30, 2  ;;  %v5431_v37 = vsub.f32 %v11709_v55, %v5430_v61 }
 0x26b   : > { %v4881_v56 = vand.u32 4294901760, %v11720_v33  ;;  %vm280_vm7 = vcmp.eq.s32.totalorder %v13442_v34, 0  ;;  %v6136_v53 = vrot.slane %v6135_v14, 1  ;;  %v4893_v35 = vand.u32 4294901760, %v11722_v11 }
 0x26c   : > { %v11736_v47 = vsub.f32 %v7444_v22, %v7444_v22  ;;  %v11738_v15 = vsub.f32 %v7460_v16, %v7460_v16  ;;  %v6489_v17 = vrot.slane %v6488_v38, 1  ;;  %v6842_v3 = vmax.f32 %v6840_v30, %v6841_v25 }
 0x26d   : > { %v5432_v60 = vand.u32 4294901760, %v5431_v37  ;;  %v4882_v8 = vsub.f32 %v11720_v33, %v4881_v56  ;;  %v6137_v28 = vmax.f32 %v6135_v14, %v6136_v53  ;;  %v4894_v48 = vsub.f32 %v11722_v11, %v4893_v35 }
 0x26e   : > { %v5424_v19 = vand.u32 4294901760, %v11736_v47  ;;  %v5436_v46 = vand.u32 4294901760, %v11738_v15  ;;  %v6490_v58 = vmin.f32 %v6488_v38, %v6489_v17  ;;  %v6843_v21 = vrot.slane %v6842_v3, 1 }
 0x26f   : > { %v8038_v40 = vpack.c.bf16 %v5432_v60, %v5420_v1  ;;  %v4883_v2 = vand.u32 4294901760, %v4882_v8  ;;  %v6222_v44 = vcombine.low %v6137_v28, %v11621_v0  ;;  %v4895_v20 = vand.u32 4294901760, %v4894_v48 }
 0x270   : > { %v5425_v62 = vsub.f32 %v11736_v47, %v5424_v19  ;;  %v5437_v13 = vsub.f32 %v11738_v15, %v5436_v46  ;;  %v6576_v30 = vcombine.low %v6490_v58, %v11624_v54  ;;  %v6844_v59 = vmax.f32 %v6842_v3, %v6843_v21 }
 0x271   : > { %8039 = vmatprep.subr.bf16.mxu1 %v8038_v40  ;;  %v7475_v1 = vsel %vm11457_vm14, 1.0, %v12918_v32  ;;  %v7491_v0 = vsel %vm11468_vm15, 1.0, %v12918_v32  ;;  %v6250_v22 = vrot.slane %v6222_v44, %v13438_v26  ;;  %v7992_v27 = vpack.c.bf16 %v4895_v20, %v4883_v2 }
 0x272   : > { %v5426_v16 = vand.u32 4294901760, %v5425_v62  ;;  %v5438_v38 = vand.u32 4294901760, %v5437_v13  ;;  %v6604_v25 = vrot.slane %v6576_v30, %v13438_v26  ;;  %v6930_v37 = vcombine.low %v6844_v59, %v11627_v29 }
 0x273   : > { %v11765_v54 = vsub.f32 %v7475_v1, %v7475_v1  ;;  %v11767_v53 = vsub.f32 %v7491_v0, %v7491_v0  ;;  %v6252_v17 = vcombine.low %v11697_v6, %v6250_v22  ;;  %7993 = vmatpush1.bf16.msra.mxu0 %v7992_v27  ;;  %v7477_v8 = vsel %vm11521_vm1, 1.0, %v12918_v32 }
 0x274   : > { %v8040_v3 = vpack.c.bf16 %v5438_v38, %v5426_v16  ;;  %v7493_v48 = vsel %vm11526_vm2, 1.0, %v12918_v32  ;;  %v6606_v58 = vcombine.low %v11704_v23, %v6604_v25  ;;  %v6958_v29 = vrot.slane %v6930_v37, %v13438_v26 }
 0x275   : > { %v4899_v21 = vand.u32 4294901760, %v11765_v54  ;;  %v4911_v40 = vand.u32 4294901760, %v11767_v53  ;;  %v11780_v6 = vsub.f32 %v7477_v8, %v7477_v8  ;;  %v11782_v2 = vsub.f32 %v7493_v48, %v7493_v48 }
 0x276   : > { %8041 = vmatpush1.bf16.msra.mxu1 %v8040_v3  ;;  %v7474_v44 = vsel %vm11577_vm4, 1.0, %v12918_v32  ;;  %v281_v20 = vsel %vm280_vm7, -inf, %v12918_v32  ;;  %v11791_v23 = vrot.slane %v6252_v17, %v13438_v26  ;;  %v6960_v62 = vcombine.low %v11712_v24, %v6958_v29 }
 0x277   : > { %v4900_v13 = vsub.f32 %v11765_v54, %v4899_v21  ;;  %v4912_v30 = vsub.f32 %v11767_v53, %v4911_v40  ;;  %v5442_v59 = vand.u32 4294901760, %v11780_v6  ;;  %v5454_v14 = vand.u32 4294901760, %v11782_v2 }
 0x278   : > { %13447 = vst [vmem:[#allocation29_spill] sm:$0xff] %v11791_v23  ;;  %v7490_v52 = vsel %vm11586_vm8, 1.0, %v12918_v32  ;;  %v11801_v1 = vsub.f32 %v7474_v44, %v7474_v44  ;;  %vm282_vm10 = vcmp.eq.s32.totalorder %v13442_v34, 1  ;;  %v11805_v42 = vrot.slane %v6606_v58, %v13438_v26 }
 0x279   : > { %v4901_v24 = vand.u32 4294901760, %v4900_v13  ;;  %v4913_v0 = vand.u32 4294901760, %v4912_v30  ;;  %v11807_v22 = vsub.f32 %v7490_v52, %v7490_v52  ;;  %v5443_v27 = vsub.f32 %v11780_v6, %v5442_v59 }
 0x27a   : > { %13448 = vst [vmem:[#allocation37_spill] sm:$0xff] %v11805_v42  ;;  %v5455_v16 = vsub.f32 %v11782_v2, %v5454_v14  ;;  %v4905_v38 = vand.u32 4294901760, %v11801_v1  ;;  %v7476_v18 = vsel %vm11646_vm12, 1.0, %v12918_v32  ;;  %v7492_v17 = vsel %vm11654_vm0, 1.0, %v12918_v32 }
 0x27b   : > { %v7994_v25 = vpack.c.bf16 %v4913_v0, %v4901_v24  ;;  %v4917_v37 = vand.u32 4294901760, %v11807_v22  ;;  %v11819_v3 = vsub.f32 %v7476_v18, %v7476_v18  ;;  %v5444_v60 = vand.u32 4294901760, %v5443_v27 }
 0x27c   : > { %v5456_v8 = vand.u32 4294901760, %v5455_v16  ;;  %v4906_v28 = vsub.f32 %v11801_v1, %v4905_v38  ;;  %v11822_v48 = vsub.f32 %v7492_v17, %v7492_v17  ;;  %v11825_v58 = vrot.slane %v6960_v62, %v13438_v26 }
 0x27d   : > { %7995 = vmatprep.subr.bf16.mxu0 %v7994_v25  ;;  %v4918_v51 = vsub.f32 %v11807_v22, %v4917_v37  ;;  %v5448_v29 = vand.u32 4294901760, %v11819_v3  ;;  %v7998_v43 = vpack.c.bf16 %v11636_v9, %v11632_v45  ;;  %v8046_v52 = vpack.c.bf16 %v11709_v55, %v11640_v57 }
 0x27e   : > { %13449 = vst [vmem:[#allocation70_spill] sm:$0xff] %v11825_v58  ;;  %v8042_v44 = vpack.c.bf16 %v5456_v8, %v5444_v60  ;;  %v4907_v13 = vand.u32 4294901760, %v4906_v28  ;;  %v5460_v30 = vand.u32 4294901760, %v11822_v48  ;;  %v8000_v62 = vpack.c.bf16 %v11722_v11, %v11720_v33 }
 0x27f   : > { %v4919_v24 = vand.u32 4294901760, %v4918_v51  ;;  %v5449_v0 = vsub.f32 %v11819_v3, %v5448_v29  ;;  %v8048_v27 = vpack.c.bf16 %v11738_v15, %v11736_v47  ;;  %v8002_v18 = vpack.c.bf16 %v11767_v53, %v11765_v54  ;;  %v13456_v15 = vld [vmem:[#allocation42_spill] sm:$0xff] }
 0x280   : > { %8043 = vmatprep.subr.bf16.mxu1 %v8042_v44  ;;  %v5461_v16 = vsub.f32 %v11822_v48, %v5460_v30  ;;  %v8050_v25 = vpack.c.bf16 %v11782_v2, %v11780_v6  ;;  %v8004_v17 = vpack.c.bf16 %v11807_v22, %v11801_v1  ;;  %v11852_v51 = vpack.c.bf16 %v4887_v10, %v4875_v12 }
 0x281   : > { %v7996_v60 = vpack.c.bf16 %v4919_v24, %v4907_v13  ;;  %v5450_v8 = vand.u32 4294901760, %v5449_v0  ;;  %v11858_v54 = vpack.c.bf16 %v5430_v61, %v5418_v31  ;;  %v11864_v53 = vpack.c.bf16 %v4893_v35, %v4881_v56  ;;  %v13451_v61 = vld [vmem:[#allocation66_spill] sm:$0xff]  ;;  %v13454_v56 = vld [vmem:[#allocation23_spill] sm:$0xff]  ;;  %v13473_v24 = vld [vmem:[#allocation24_spill] sm:$0xff] }
 0x282   : > { %v5462_v44 = vand.u32 4294901760, %v5461_v16  ;;  %v11870_v45 = vpack.c.bf16 %v5436_v46, %v5424_v19  ;;  %v11872_v9 = vpack.c.bf16 %v4911_v40, %v4899_v21  ;;  %v11874_v57 = vpack.c.bf16 %v5454_v14, %v5442_v59  ;;  %v13474_v16 = vld [vmem:[#allocation17_spill] sm:$0xff] }
 0x283   : > { %7997 = vmatpush1.bf16.msra.mxu0 %v7996_v60  ;;  %v11876_v12 = vpack.c.bf16 %v4917_v37, %v4905_v38  ;;  %v283_v10 = vsel %vm282_vm10, inf, %v281_v20  ;;  %vm284_vm0 = vcmp.eq.s32.totalorder %v13442_v34, 3  ;;  %v13452_v33 = vsel %vm13320_vm6, %v13451_v61, -inf  ;;  %v13461_v20 = vld [vmem:[#allocation40_spill] sm:$0xff]  ;;  %v13466_v38 = vld [vmem:[#allocation43_spill] sm:$0xff] }
 0x284   : > { %v8044_v31 = vpack.c.bf16 %v5462_v44, %v5450_v8  ;;  %7999 = vmatprep.subr.bf16.mxu0 %v7998_v43  ;;  %v13455_v35 = vsel %vm13360_vm9, %v13454_v56, -inf  ;;  %vm13457_vm12 = vnez %v13456_v15  ;;  %v13460_v21 = vsel %vm13362_vm3, %v13454_v56, -inf  ;;  %v13469_v43 = vld [vmem:[#allocation46_spill] sm:$0xff]  ;;  %v13475_v8 = vld [vmem:[#allocation13_spill] sm:$0xff] }
 0x285   : > { %v6003_v47 = vmax.f32 %v13455_v35, %v13452_v33  ;;  %v13458_v19 = vsel %vm13457_vm12, %v13451_v61, -inf  ;;  %v11897_v6 = vpack.c.bf16 %v5460_v30, %v5448_v29  ;;  %v11899_v2 = vsel %vm284_vm0, -inf, %v283_v10  ;;  %v13472_v30 = vld [vmem:[#allocation11_spill] sm:$0xff]  ;;  %v13477_v33 = vld [vmem:[#allocation14_spill] sm:$0xff] }
 0x286   : > { %v6012_v40 = vmax.f32 %v13460_v21, %v13458_v19  ;;  %vm13462_vm5 = vnez %v13461_v20  ;;  %v13465_v1 = vsel %vm13364_vm11, %v13454_v56, -inf  ;;  %vm13467_vm4 = vnez %v13466_v38  ;;  %8045 = vmatpush1.bf16.msra.mxu1 %v8044_v31  ;;  %4979 = vmatmul.mubr.f32.vlgmr.msra.gmra.mrb[6].mxu0 %v13472_v30  ;;  %v13476_v10 = vld [vmem:[#allocation67_spill] sm:$0xff]  ;;  %v13481_v21 = vld [vmem:[#allocation52_spill] sm:$0xff] }
 0x287   : > { %v13463_v59 = vsel %vm13462_vm5, %v13451_v61, -inf  ;;  %v13468_v37 = vsel %vm13467_vm4, %v13451_v61, -inf  ;;  %vm13470_vm14 = vnez %v13469_v43  ;;  %v5891_v0 = vadd.f32 %v13473_v24, %v11899_v2  ;;  %8047 = vmatprep.subr.bf16.mxu1 %v8046_v52  ;;  %8001 = vmatpush1.bf16.msra.mxu0 %v8000_v62  ;;  %v13484_v52 = vld [vmem:[#allocation59_spill] sm:$0xff]  ;;  %v13535_v43 = vld [vmem:[#allocation62_spill] sm:$0xff] }
 0x288   : > { %v6021_v22 = vmax.f32 %v13465_v1, %v13463_v59  ;;  %v13471_v29 = vsel %vm13470_vm14, %v13454_v56, -inf  ;;  %v5893_v60 = vadd.f32 %v13474_v16, %v11899_v2  ;;  %v5892_v44 = vadd.f32 %v13475_v8, %v11899_v2  ;;  %v13478_v56 = vld [vmem:[#allocation58_spill] sm:$0xff]  ;;  %8003 = vmatprep.subr.bf16.mxu0 %v8002_v18  ;;  %5065 = vmatprep.mubr.f32.mxu0 %v12918_v32  ;;  %v13493_v8 = vld [vmem:[#allocation53_spill] sm:$0xff] }
 0x289   : > { %v6030_v13 = vmax.f32 %v13471_v29, %v13468_v37  ;;  %v6295_v61 = vsel %vm13470_vm14, %v13476_v10, inf  ;;  %v5894_v31 = vadd.f32 %v13477_v33, %v11899_v2  ;;  %vm13479_vm15 = vnez %v13478_v56  ;;  %5907 = vst [vmem:[#allocation2] sm:$0xff] %v5891_v0  ;;  %v13487_v29 = vld [vmem:[#allocation57_spill] sm:$0xff]  ;;  %5522 = vmatmul.mubr.f32.vlgmr.msra.gmra.mrb[6].mxu1 %v13472_v30  ;;  %v13490_v0 = vld [vmem:[#allocation55_spill] sm:$0xff] }
 0x28a   : > { %v13480_v35 = vsel %vm13479_vm15, %v13403_v49, -inf  ;;  %vm13482_vm8 = vnez %v13481_v21  ;;  %v6324_v37 = vsel %vm13479_vm15, %v13404_v41, inf  ;;  %5909 = vst [vmem:[#allocation2 + $0x10] sm:$0xff] %v5893_v60  ;;  %5908 = vst [vmem:[#allocation2 + $0x8] sm:$0xff] %v5892_v44  ;;  %vm13485_vm1 = vnez %v13484_v52  ;;  %8049 = vmatpush1.bf16.msra.mxu1 %v8048_v27  ;;  %5608 = vmatprep.mubr.f32.mxu1 %v12918_v32  ;;  %v13513_v52 = vld [vmem:[#allocation16_spill] sm:$0xff] }
 0x28b   : > { %v6004_v19 = vmax.f32 %v6003_v47, %v13480_v35  ;;  %v13483_v59 = vsel %vm13482_vm8, %v13403_v49, -inf  ;;  %v13486_v62 = vsel %vm13485_vm1, %v13403_v49, -inf  ;;  %vm13488_vm2 = vnez %v13487_v29  ;;  %5910 = vst [vmem:[#allocation2 + $0x18] sm:$0xff] %v5894_v31  ;;  %v13496_v31 = vld [vmem:[#allocation60_spill] sm:$0xff]  ;;  %8051 = vmatprep.subr.bf16.mxu1 %v8050_v25  ;;  %8005 = vmatpush1.bf16.msra.mxu0 %v8004_v17 }
 0x28c   : > { %v6013_v1 = vmax.f32 %v6012_v40, %v13483_v59  ;;  %v6022_v47 = vmax.f32 %v6021_v22, %v13486_v62  ;;  %v13489_v24 = vsel %vm13488_vm2, %v13403_v49, -inf  ;;  %v6325_v16 = vsel %vm13482_vm8, %v13404_v41, inf  ;;  %v13499_v59 = vld [vmem:[#allocation54_spill] sm:$0xff] }
 0x28d   : > { %v6031_v40 = vmax.f32 %v6030_v13, %v13489_v24  ;;  %v6326_v18 = vsel %vm13485_vm1, %v13404_v41, inf  ;;  %vm13491_vm7 = vnez %v13490_v0  ;;  %vm13494_vm10 = vnez %v13493_v8 }
 0x28e   : > { %v13492_v22 = vsel %vm13491_vm7, %v13409_v5, -inf  ;;  %v13495_v49 = vsel %vm13494_vm10, %v13409_v5, -inf  ;;  %v6327_v44 = vsel %vm13488_vm2, %v13404_v41, inf  ;;  %v6340_v33 = vsel %vm13491_vm7, %v13411_v63, inf  ;;  %5068 = vmatmul.mubr.f32.vlgmr.msra.gmra.mrb[6].mxu0 %v13513_v52 }
 0x28f   : > { %v6005_v60 = vmax.f32 %v6004_v19, %v13492_v22  ;;  %v6014_v13 = vmax.f32 %v6013_v1, %v13495_v49  ;;  %vm13497_vm0 = vnez %v13496_v31  ;;  %vm13500_vm1 = vnez %v13499_v59  ;;  %5146 = vmatprep.mubr.f32.mxu0 %v12918_v32 }
 0x290   : > { %v13498_v35 = vsel %vm13497_vm0, %v13409_v5, -inf  ;;  %v13501_v1 = vsel %vm13500_vm1, %v13409_v5, -inf  ;;  %v6341_v41 = vsel %vm13494_vm10, %v13411_v63, inf  ;;  %v6342_v27 = vsel %vm13497_vm0, %v13411_v63, inf }
 0x291   : > { %v6023_v19 = vmax.f32 %v6022_v47, %v13498_v35  ;;  %v6032_v62 = vmax.f32 %v6031_v40, %v13501_v1  ;;  %v6006_v24 = vrot.slane %v6005_v60, 4  ;;  %v6015_v22 = vrot.slane %v6014_v13, 4  ;;  %v13502_v47 = vld [vmem:[#allocation68_spill] sm:$0xff]  ;;  %v13507_v1 = vld [vmem:[#allocation15_spill] sm:$0xff] }
 0x292   : > { %v13503_v49 = vsel %vm13320_vm6, %v13502_v47, inf  ;;  %v13504_v5 = vsel %vm13360_vm9, %v13476_v10, inf  ;;  %v13505_v35 = vsel %vm13457_vm12, %v13502_v47, inf  ;;  %v13506_v25 = vsel %vm13362_vm3, %v13476_v10, inf }
 0x293   : > { %v6356_v40 = vmin.f32 %v13504_v5, %v13503_v49  ;;  %v6365_v17 = vmin.f32 %v13506_v25, %v13505_v35  ;;  %vm13508_vm7 = vnez %v13507_v1  ;;  %v6024_v28 = vrot.slane %v6023_v19, 4 }
 0x294   : > { %8007 = vmatprep.subr.msk.bf16.mxu0 %vm13508_vm7, %v13001_v50  ;;  %v6033_v34 = vrot.slane %v6032_v62, 4  ;;  %v13509_v58 = vsel %vm13462_vm5, %v13502_v47, inf  ;;  %v13510_v49 = vsel %vm13364_vm11, %v13476_v10, inf  ;;  %v13511_v0 = vsel %vm13467_vm4, %v13502_v47, inf  ;;  %v13514_v47 = vld [vmem:[#allocation18_spill] sm:$0xff] }
 0x295   : > { %v6374_v5 = vmin.f32 %v13510_v49, %v13509_v58  ;;  %v6383_v35 = vmin.f32 %v6295_v61, %v13511_v0  ;;  %v6007_v25 = vmax.f32 %v6005_v60, %v6006_v24  ;;  %v6016_v42 = vmax.f32 %v6014_v13, %v6015_v22  ;;  %v13516_v61 = vld [vmem:[#allocation21_spill] sm:$0xff]  ;;  %v13522_v24 = vld [vmem:[#allocation44_spill] sm:$0xff] }
 0x296   : > { %v6357_v23 = vmin.f32 %v6356_v40, %v6324_v37  ;;  %v6366_v8 = vmin.f32 %v6365_v17, %v6325_v16  ;;  %v13512_v29 = vpack.c.bf16 %v11822_v48, %v11819_v3  ;;  %v6025_v21 = vmax.f32 %v6023_v19, %v6024_v28  ;;  %v13518_v28 = vld [vmem:[#allocation80_spill] sm:$0xff] }
 0x297   : > { %v6034_v56 = vmax.f32 %v6032_v62, %v6033_v34  ;;  %v6343_v58 = vsel %vm13500_vm1, %v13411_v63, inf  ;;  %v6375_v10 = vmin.f32 %v6374_v5, %v6326_v18  ;;  %vm13515_vm10 = vnez %v13514_v47  ;;  %v13520_v62 = vld [vmem:[#allocation33_spill] sm:$0xff] }
 0x298   : > { %8053 = vmatpush1.bf16.msra.mxu1 %v13512_v29  ;;  %vm13517_vm2 = vnez %v13516_v61  ;;  %v6008_v37 = vrot.slane %v6007_v25, 2  ;;  %v6017_v3 = vrot.slane %v6016_v42, 2  ;;  %v6358_v48 = vmin.f32 %v6357_v23, %v6340_v33 }
 0x299   : > { %8055 = vmatprep.subr.msk.bf16.mxu1 %vm13515_vm10, %v13001_v50  ;;  %8009 = vmatpush1.bf16.msk.msra.mxu0 %vm13517_vm2, %v13001_v50  ;;  %v6367_v29 = vmin.f32 %v6366_v8, %v6341_v41  ;;  %vm13519_vm8 = vnez %v13518_v28  ;;  %v6026_v63 = vrot.slane %v6025_v21, 2  ;;  %v6035_v34 = vrot.slane %v6034_v56, 2 }
 0x29a   : > { %8011 = vmatprep.subr.msk.bf16.mxu0 %vm13519_vm8, %v13001_v50  ;;  %v6376_v16 = vmin.f32 %v6375_v10, %v6342_v27  ;;  %v6384_v18 = vmin.f32 %v6383_v35, %v6327_v44  ;;  %v6009_v0 = vmax.f32 %v6007_v25, %v6008_v37  ;;  %v6018_v60 = vmax.f32 %v6016_v42, %v6017_v3  ;;  %v13525_v25 = vld [vmem:[#allocation19_spill] sm:$0xff] }
 0x29b   : > { %5611 = vmatmul.mubr.f32.vlgmr.msra.gmra.mrb[6].mxu1 %v13513_v52  ;;  %v6359_v13 = vrot.slane %v6358_v48, 4  ;;  %v6368_v19 = vrot.slane %v6367_v29, 4  ;;  %vm13521_vm1 = vnez %v13520_v62  ;;  %v6027_v23 = vmax.f32 %v6025_v21, %v6026_v63 }
 0x29c   : > { %8057 = vmatpush1.bf16.msk.msra.mxu1 %vm13521_vm1, %v13001_v50  ;;  %5689 = vmatprep.mubr.f32.mxu1 %v12918_v32  ;;  %v6036_v8 = vmax.f32 %v6034_v56, %v6035_v34  ;;  %v6377_v33 = vrot.slane %v6376_v16, 4  ;;  %v6385_v41 = vmin.f32 %v6384_v18, %v6343_v58  ;;  %vm13523_vm8 = vnez %v13522_v24  ;;  %v3155_v58 = vpop.f32.mrb[2].mxu0  ;;  %v3698_v18 = vpop.f32.mrb[2].mxu1  ;;  %v13545_v24 = vld [vmem:[#allocation55_spill] sm:$0xff] }
 0x29d   : > { %8059 = vmatprep.subr.msk.bf16.mxu1 %vm13523_vm8, %v13001_v50  ;;  %vm13524_vm15 = vnez %v13430_v7  ;;  %v6010_v42 = vrot.slane %v6009_v0, 1  ;;  %v6019_v52 = vrot.slane %v6018_v60, 1  ;;  %v6360_v44 = vmin.f32 %v6358_v48, %v6359_v13  ;;  %v3157_v63 = vpop.f32.mrb[3].mxu0 }
 0x29e   : > { %8013 = vmatpush1.bf16.msk.msra.mxu0 %vm13524_vm15, %v13001_v50  ;;  %v6369_v27 = vmin.f32 %v6367_v29, %v6368_v19  ;;  %v6028_v22 = vrot.slane %v6027_v23, 1  ;;  %v6037_v40 = vrot.slane %v6036_v8, 1  ;;  %v6378_v21 = vmin.f32 %v6376_v16, %v6377_v33 }
 0x29f   : > { %8015 = vmatprep.subr.bf16.mxu0 %v11852_v51  ;;  %v6386_v56 = vrot.slane %v6385_v41, 4  ;;  %v6011_v17 = vmax.f32 %v6009_v0, %v6010_v42  ;;  %v6020_v49 = vmax.f32 %v6018_v60, %v6019_v52  ;;  %v6361_v5 = vrot.slane %v6360_v44, 2 }
 0x2a0   : > { %v6370_v35 = vrot.slane %v6369_v27, 2  ;;  %8061 = vmatpush1.bf16.msk.msra.mxu1 %vm11668_vm13, %v13001_v50  ;;  %v6029_v10 = vmax.f32 %v6027_v23, %v6028_v22  ;;  %v6038_v37 = vmax.f32 %v6036_v8, %v6037_v40  ;;  %v6379_v3 = vrot.slane %v6378_v21, 2  ;;  %v13526_v22 = vld [vmem:[#allocation69_spill] sm:$0xff] }
 0x2a1   : > { %5150 = vmatmul.mubr.f32.vlgmr.msra.gmra.mrb[6].mxu0 %v13525_v25  ;;  %v6387_v48 = vmin.f32 %v6385_v41, %v6386_v56  ;;  %v6696_v51 = vsel %vm13497_vm0, %v13413_v36, -inf  ;;  %8063 = vmatprep.subr.bf16.mxu1 %v11858_v54  ;;  %v5895_v29 = vadd.f32 %v3155_v58, %v11899_v2  ;;  %v6170_v34 = vcombine.low %v6011_v17, %v6020_v49  ;;  %v13527_v49 = vld [vmem:[#allocation27_spill] sm:$0xff] }
 0x2a2   : > { %8017 = vmatpush1.bf16.msra.mxu0 %v11864_v53  ;;  %v6362_v16 = vmin.f32 %v6360_v44, %v6361_v5  ;;  %5244 = vmatprep.mubr.f32.mxu0 %v12918_v32  ;;  %v5896_v0 = vadd.f32 %v3157_v63, %v11899_v2  ;;  %v6171_v60 = vcombine.low %v6029_v10, %v6038_v37  ;;  %v3700_v53 = vpop.f32.mrb[3].mxu1  ;;  %v6647_v40 = vsel %vm13362_vm3, %v13526_v22, -inf  ;;  %v13532_v58 = vld [vmem:[#allocation59_spill] sm:$0xff] }
 0x2a3   : > { %8019 = vmatprep.subr.bf16.mxu0 %v11872_v9  ;;  %v6371_v13 = vmin.f32 %v6369_v27, %v6370_v35  ;;  %v6388_v19 = vrot.slane %v6387_v48, 2  ;;  %5693 = vmatmul.mubr.f32.vlgmr.msra.gmra.mrb[6].mxu1 %v13525_v25  ;;  %5911 = vst [vmem:[#allocation2 + $0x20] sm:$0xff] %v5895_v29  ;;  %v5897_v54 = vadd.f32 %v3698_v18, %v11899_v2  ;;  %v6662_v11 = vsel %vm13320_vm6, %v13527_v49, -inf  ;;  %v13530_v25 = vld [vmem:[#allocation52_spill] sm:$0xff] }
 0x2a4   : > { %v6180_v23 = vrot.slane %v6170_v34, %v13438_v26  ;;  %v6363_v8 = vrot.slane %v6362_v16, 1  ;;  %v6380_v33 = vmin.f32 %v6378_v21, %v6379_v3  ;;  %8065 = vmatpush1.bf16.msra.mxu1 %v11870_v45  ;;  %5787 = vmatprep.mubr.f32.mxu1 %v12918_v32  ;;  %5912 = vst [vmem:[#allocation2 + $0x28] sm:$0xff] %v5896_v0  ;;  %v6646_v45 = vsel %vm13360_vm9, %v13526_v22, -inf  ;;  %v13536_v3 = vld [vmem:[#allocation57_spill] sm:$0xff] }
 0x2a5   : > { %v5898_v9 = vadd.f32 %v3700_v53, %v11899_v2  ;;  %v6187_v41 = vrot.slane %v6171_v60, %v13438_v26  ;;  %v6372_v42 = vrot.slane %v6371_v13, 1  ;;  %v6389_v52 = vmin.f32 %v6387_v48, %v6388_v19  ;;  %8067 = vmatprep.subr.bf16.mxu1 %v11874_v57  ;;  %5913 = vst [vmem:[#allocation2 + $0x30] sm:$0xff] %v5897_v54  ;;  %v13538_v0 = vld [vmem:[#allocation53_spill] sm:$0xff]  ;;  %v13543_v53 = vld [vmem:[#allocation72_spill] sm:$0xff] }
 0x2a6   : > { %8021 = vmatpush1.bf16.msra.mxu0 %v11876_v12  ;;  %v6364_v44 = vmin.f32 %v6362_v16, %v6363_v8  ;;  %v6381_v27 = vrot.slane %v6380_v33, 1  ;;  %v6648_v12 = vsel %vm13364_vm11, %v13526_v22, -inf  ;;  %v6663_v46 = vsel %vm13457_vm12, %v13527_v49, -inf  ;;  %v13542_v54 = vld [vmem:[#allocation37_spill] sm:$0xff] }
 0x2a7   : > { %8023 = vmatprep.subr.msk.bf16.mxu0 %vm13508_vm7, %v13001_v50  ;;  %5914 = vst [vmem:[#allocation2 + $0x38] sm:$0xff] %v5898_v9  ;;  %v6202_v21 = vcombine.low %v6180_v23, %v6187_v41  ;;  %v6373_v57 = vmin.f32 %v6371_v13, %v6372_v42  ;;  %v6390_v56 = vrot.slane %v6389_v52, 1  ;;  %v6664_v1 = vsel %vm13462_vm5, %v13527_v49, -inf  ;;  %v13541_v13 = vld [vmem:[#allocation56_spill] sm:$0xff] }
 0x2a8   : > { %v6382_v17 = vmin.f32 %v6380_v33, %v6381_v27  ;;  %8069 = vmatpush1.bf16.msra.mxu1 %v11897_v6  ;;  %v6665_v55 = vsel %vm13467_vm4, %v13527_v49, -inf  ;;  %v6649_v15 = vsel %vm13470_vm14, %v13526_v22, -inf  ;;  %v13528_v6 = vld [vmem:[#allocation58_spill] sm:$0xff]  ;;  %vm13531_vm11 = vnez %v13530_v25 }
 0x2a9   : > { %5246 = vmatmul.mubr.f32.vlgmr.msra.gmra.mrb[6].mxu0 %v13472_v30  ;;  %v6210_v14 = vrot.slane %v6202_v21, %v13438_v26  ;;  %v6391_v5 = vmin.f32 %v6389_v52, %v6390_v56  ;;  %v6524_v35 = vcombine.low %v6364_v44, %v6373_v57  ;;  %8071 = vmatprep.subr.msk.bf16.mxu1 %vm13515_vm10, %v13001_v50  ;;  %v6679_v38 = vsel %vm13531_vm11, %v13405_v4, -inf  ;;  %v6501_v42 = vld [vmem:[#allocation2 + $0x1] ss:$8 sm:$0xf] }
 0x2aa   : > { %8025 = vmatpush1.bf16.msk.msra.mxu0 %vm13517_vm2, %v13001_v50  ;;  %vm13529_vm6 = vnez %v13528_v6  ;;  %vm13533_vm3 = vnez %v13532_v58  ;;  %vm13534_vm9 = vnez %v13518_v28  ;;  %5324 = vmatprep.mubr.f32.mxu0 %v12918_v32  ;;  %vm13537_vm12 = vnez %v13536_v3  ;;  %v6147_v28 = vld [vmem:[#allocation2] ss:$8 sm:$0xf] }
 0x2ab   : > { %v6678_v20 = vsel %vm13529_vm6, %v13405_v4, -inf  ;;  %v6680_v47 = vsel %vm13533_vm3, %v13405_v4, -inf  ;;  %8027 = vmatprep.subr.msk.bf16.mxu0 %vm13534_vm9, %v13001_v50  ;;  %v6218_v61 = vcombine.low %v6210_v14, %v13535_v43  ;;  %v6525_v10 = vcombine.low %v6382_v17, %v6391_v5  ;;  %5789 = vmatmul.mubr.f32.vlgmr.msra.gmra.mrb[6].mxu1 %v13472_v30 }
 0x2ac   : > { %v6534_v37 = vrot.slane %v6524_v35, %v13438_v26  ;;  %v6681_v48 = vsel %vm13537_vm12, %v13405_v4, -inf  ;;  %v6710_v29 = vmax.f32 %v6646_v45, %v6662_v11  ;;  %v6719_v63 = vmax.f32 %v6647_v40, %v6663_v46  ;;  %8073 = vmatpush1.bf16.msk.msra.mxu1 %vm13521_vm1, %v13001_v50  ;;  %5867 = vmatprep.mubr.f32.mxu1 %v12918_v32  ;;  %v13540_v4 = vld [vmem:[#allocation29_spill] sm:$0xff]  ;;  %v13548_v11 = vld [vmem:[#allocation70_spill] sm:$0xff]  ;;  %v13549_v46 = vld [vmem:[#allocation31_spill] sm:$0xff] }
 0x2ad   : > { %v6728_v34 = vmax.f32 %v6648_v12, %v6664_v1  ;;  %v6737_v16 = vmax.f32 %v6649_v15, %v6665_v55  ;;  %v6541_v18 = vrot.slane %v6525_v10, %v13438_v26  ;;  %vm13539_vm5 = vnez %v13538_v0  ;;  %8075 = vmatprep.subr.msk.bf16.mxu1 %vm13523_vm8, %v13001_v50  ;;  %v13551_v0 = vld [vmem:[#allocation28_spill] sm:$0xff] }
 0x2ae   : > { %v6695_v60 = vsel %vm13539_vm5, %v13413_v36, -inf  ;;  %v6267_v19 = vcombine.low %v13541_v13, %v13540_v4  ;;  %v6621_v23 = vcombine.low %v13543_v53, %v13542_v54  ;;  %8029 = vmatpush1.bf16.msk.msra.mxu0 %vm13524_vm15, %v13001_v50  ;;  %v6148_v32 = vld [vmem:[#allocation2] ss:$8 sm:$0xf0]  ;;  %v6711_v8 = vmax.f32 %v6710_v29, %v6678_v20 }
 0x2af   : > { %v6502_v62 = vld [vmem:[#allocation2 + $0x1] ss:$8 sm:$0xf0]  ;;  %v6720_v33 = vmax.f32 %v6719_v63, %v6679_v38  ;;  %v6729_v9 = vmax.f32 %v6728_v34, %v6680_v47  ;;  %v6149_v41 = vor.u32 %v6148_v32, %v6147_v28  ;;  %v6556_v52 = vcombine.low %v6534_v37, %v6541_v18  ;;  %v6856_v18 = vld [vmem:[#allocation2 + $0x3] ss:$8 sm:$0xf0] }
 0x2b0   : > { %vm13544_vm4 = vnez %v13499_v59  ;;  %v6738_v27 = vmax.f32 %v6737_v16, %v6681_v48  ;;  %v6503_v22 = vor.u32 %v6502_v62, %v6501_v42  ;;  %vm13546_vm14 = vnez %v13545_v24  ;;  %8077 = vmatpush1.bf16.msk.msra.mxu1 %vm11668_vm13, %v13001_v50 }
 0x2b1   : > { %v6697_v44 = vsel %vm13544_vm4, %v13413_v36, -inf  ;;  %v13547_v45 = vsel %vm13546_vm14, %v13413_v36, -inf  ;;  %v6721_v40 = vmax.f32 %v6720_v33, %v6695_v60  ;;  %v6730_v21 = vmax.f32 %v6729_v9, %v6696_v51  ;;  %5326 = vmatmul.mubr.f32.vlgmr.msra.gmra.mrb[6].mxu0 %v13472_v30  ;;  %v13550_v36 = vld [vmem:[#allocation63_spill] sm:$0xff]  ;;  %v13552_v60 = vld [vmem:[#allocation36_spill] sm:$0xff] }
 0x2b2   : > { %v6712_v7 = vmax.f32 %v6711_v8, %v13547_v45  ;;  %v6270_v59 = vmax.f32 %v6149_v41, %v6218_v61  ;;  %v6564_v57 = vrot.slane %v6556_v52, %v13438_v26  ;;  %v6739_v56 = vmax.f32 %v6738_v27, %v6697_v44  ;;  %v6855_v33 = vld [vmem:[#allocation2 + $0x3] ss:$8 sm:$0xf] }
 0x2b3   : > { %v6722_v17 = vrot.slane %v6721_v40, 4  ;;  %v6731_v49 = vrot.slane %v6730_v21, 4  ;;  %v6975_v1 = vcombine.low %v13549_v46, %v13548_v11  ;;  %5869 = vmatmul.mubr.f32.vlgmr.msra.gmra.mrb[6].mxu1 %v13472_v30  ;;  %v13553_v32 = vcombine.low %v13551_v0, %v13552_v60 }
 0x2b4   : > { %v6713_v12 = vrot.slane %v6712_v7, 4  ;;  %6272 = vst [vmem:[#allocation2] ss:$8 sm:$0xf] %v6270_v59  ;;  %v6572_v31 = vcombine.low %v6564_v57, %v13550_v36  ;;  %v6740_v51 = vrot.slane %v6739_v56, 4  ;;  %v6857_v9 = vor.u32 %v6856_v18, %v6855_v33 }
 0x2b5   : > { %6273 = vst [vmem:[#allocation2] ss:$8 sm:$0xf0] %v6270_v59  ;;  %v6723_v39 = vmax.f32 %v6721_v40, %v6722_v17  ;;  %v6732_v14 = vmax.f32 %v6730_v21, %v6731_v49  ;;  %v6925_v62 = vrot.slane %v13553_v32, %v13438_v26 }
 0x2b6   : > { %v6714_v50 = vmax.f32 %v6712_v7, %v6713_v12  ;;  %v6624_v5 = vmin.f32 %v6503_v22, %v6572_v31  ;;  %v6741_v35 = vmax.f32 %v6739_v56, %v6740_v51  ;;  %v13554_v31 = vmov 0  }
 0x2b7   : > { %v6724_v15 = vrot.slane %v6723_v39, 2  ;;  %v6733_v6 = vrot.slane %v6732_v14, 2 }
 0x2b8   : > { %v6715_v55 = vrot.slane %v6714_v50, 2  ;;  %6626 = vst [vmem:[#allocation2 + $0x1] ss:$8 sm:$0xf] %v6624_v5  ;;  %v6742_v20 = vrot.slane %v6741_v35, 2 }
 0x2b9   : > { %6627 = vst [vmem:[#allocation2 + $0x1] ss:$8 sm:$0xf0] %v6624_v5  ;;  %v6725_v38 = vmax.f32 %v6723_v39, %v6724_v15  ;;  %v6734_v58 = vmax.f32 %v6732_v14, %v6733_v6  ;;  %v13555_v6 = vld [vmem:[#allocation12_spill] sm:$0xff] }
 0x2ba   : > { %v6716_v25 = vmax.f32 %v6714_v50, %v6715_v55  ;;  %v6743_v47 = vmax.f32 %v6741_v35, %v6742_v20 }
 0x2bb   : > { %v6726_v61 = vrot.slane %v6725_v38, 1  ;;  %v6735_v10 = vrot.slane %v6734_v58, 1 }
 0x2bc   : > { %v6717_v43 = vrot.slane %v6716_v25, 1  ;;  %v6744_v37 = vrot.slane %v6743_v47, 1 }
 0x2bd   : > { %v6727_v3 = vmax.f32 %v6725_v38, %v6726_v61  ;;  %v6736_v48 = vmax.f32 %v6734_v58, %v6735_v10  ;;  %v13556_v58 = vld [vmem:[#allocation10_spill] sm:$0xff] }
 0x2be   : > { %v6718_v30 = vmax.f32 %v6716_v25, %v6717_v43  ;;  %v6745_v29 = vmax.f32 %v6743_v47, %v6744_v37  ;;  %vm7054_vm6 = vcmp.eq.s32.totalorder %v13556_v58, 2 }
 0x2c0   : > { %v6878_v63 = vcombine.low %v6718_v30, %v6727_v3  ;;  %v6879_v34 = vcombine.low %v6736_v48, %v6745_v29 }
 0x2c2   : > { %v6888_v16 = vrot.slane %v6878_v63, %v13438_v26  ;;  %v6895_v28 = vrot.slane %v6879_v34, %v13438_v26 }
 0x2c4   : > { %v6910_v8 = vcombine.low %v6888_v16, %v6895_v28 }
 0x2c6   : > { %v6918_v41 = vrot.slane %v6910_v8, %v13438_v26 }
 0x2c8   : > { %v6926_v42 = vcombine.low %v6918_v41, %v6925_v62 }
 0x2ca   : > { %v6978_v52 = vmax.f32 %v6857_v9, %v6926_v42 }
 0x2cc   : > { %6980 = vst [vmem:[#allocation2 + $0x3] ss:$8 sm:$0xf] %v6978_v52  ;;  %6981 = vst [vmem:[#allocation2 + $0x3] ss:$8 sm:$0xf0] %v6978_v52 }
 0x2d3   : > { %v12167_v44 = vld [vmem:[#allocation2] sm:$0xff]  ;;  %v12169_v27 = vld [vmem:[#allocation2 + $0x8] sm:$0xff]  ;;  %v12171_v22 = vld [vmem:[#allocation2 + $0x10] sm:$0xff] }
 0x2d4   : > { %v12173_v24 = vld [vmem:[#allocation2 + $0x18] sm:$0xff]  ;;  %v12175_v45 = vld [vmem:[#allocation2 + $0x20] sm:$0xff]  ;;  %v7019_v7 = vmax.f32 %v12167_v44, 1.0  ;;  %v12178_v40 = vld [vmem:[#allocation2 + $0x28] sm:$0xff]  ;;  %v7020_v26 = vmax.f32 %v12169_v27, 1.0  ;;  %v7021_v21 = vmax.f32 %v12171_v22, 1.0 }
 0x2d5   : > { %v12182_v59 = vld [vmem:[#allocation2 + $0x30] sm:$0xff]  ;;  %v7022_v57 = vmax.f32 %v12173_v24, 1.0  ;;  %v12185_v56 = vld [vmem:[#allocation2 + $0x38] sm:$0xff]  ;;  %v7023_v12 = vmax.f32 %v12175_v45, 1.0  ;;  %v7024_v17 = vmax.f32 %v12178_v40, 1.0  ;;  %vm7003_vm13 = vcmp.gt.f32.partialorder %v12167_v44, 0.0 }
 0x2d6   : > { %8288 = vrcp.f32 %v7019_v7  ;;  %v7025_v49 = vmax.f32 %v12182_v59, 1.0  ;;  %vm7004_vm15 = vcmp.gt.f32.partialorder %v12169_v27, 0.0  ;;  %v7026_v36 = vmax.f32 %v12185_v56, 1.0 }
 0x2d7   : > { %8290 = vrcp.f32 %v7020_v26  ;;  %vm7005_vm8 = vcmp.gt.f32.partialorder %v12171_v22, 0.0  ;;  %vm7006_vm1 = vcmp.gt.f32.partialorder %v12173_v24, 0.0  ;;  %vm7007_vm2 = vcmp.gt.f32.partialorder %v12175_v45, 0.0 }
 0x2d8   : > { %8292 = vrcp.f32 %v7021_v21  ;;  %vm7008_vm7 = vcmp.gt.f32.partialorder %v12178_v40, 0.0  ;;  %vm7009_vm10 = vcmp.gt.f32.partialorder %v12182_v59, 0.0  ;;  %vm7010_vm0 = vcmp.gt.f32.partialorder %v12185_v56, 0.0 }
 0x2d9   : > { %8294 = vrcp.f32 %v7022_v57  ;;  %v7152_v51 = vsel %vm7003_vm13, 1, %v13554_v31  ;;  %v7153_v50 = vsel %vm7004_vm15, 1, %v13554_v31  ;;  %v7154_v39 = vsel %vm7005_vm8, 1, %v13554_v31 }
 0x2da   : > { %8296 = vrcp.f32 %v7023_v12  ;;  %v7155_v14 = vsel %vm7006_vm1, 1, %v13554_v31  ;;  %v7156_v5 = vsel %vm7007_vm2, 1, %v13554_v31  ;;  %v7157_v35 = vsel %vm7008_vm7, 1, %v13554_v31 }
 0x2db   : > { %8298 = vrcp.f32 %v7024_v17  ;;  %v7158_v55 = vsel %vm7009_vm10, 1, %v13554_v31  ;;  %v7159_v15 = vsel %vm7010_vm0, 1, %v13554_v31  ;;  %v7171_v20 = vrot.slane %v7152_v51, %v13555_v6 }
 0x2dc   : > { %8300 = vrcp.f32 %v7025_v49  ;;  %v7175_v25 = vrot.slane %v7153_v50, %v13555_v6  ;;  %v7179_v47 = vrot.slane %v7154_v39, %v13555_v6  ;;  %v7183_v10 = vrot.slane %v7155_v14, %v13555_v6 }
 0x2dd   : > { %8302 = vrcp.f32 %v7026_v36  ;;  %v7187_v37 = vrot.slane %v7156_v5, %v13555_v6  ;;  %v7191_v48 = vrot.slane %v7157_v35, %v13555_v6  ;;  %v7195_v29 = vrot.slane %v7158_v55, %v13555_v6 }
 0x2de   : > { %v7199_v63 = vrot.slane %v7159_v15, %v13555_v6  ;;  %vm12226_vm11 = vcmp.eq.s32.totalorder %v7171_v20, 1  ;;  %vm12230_vm3 = vcmp.eq.s32.totalorder %v7175_v25, 1  ;;  %vm12238_vm9 = vcmp.eq.s32.totalorder %v7179_v47, 1 }
 0x2df   : > { %vm12246_vm12 = vcmp.eq.s32.totalorder %v7183_v10, 1  ;;  %vm7236_vm5 = vcmp.eq.s32.totalorder %v7187_v37, 1  ;;  %vm7237_vm4 = vcmp.eq.s32.totalorder %v7191_v48, 1  ;;  %vm7238_vm14 = vcmp.eq.s32.totalorder %v7195_v29, 1 }
 0x2e0   : > { %v8289_v38 = vpop.eup %8288  ;;  %vm7239_vm13 = vcmp.eq.s32.totalorder %v7199_v63, 1 }
 0x2e1   : > { %v8291_v43 = vpop.eup %8290  ;;  %v7059_v61 = vrot.slane %v8289_v38, %v13555_v6 }
 0x2e2   : > { %v8293_v30 = vpop.eup %8292  ;;  %v7063_v3 = vrot.slane %v8291_v43, %v13555_v6 }
 0x2e3   : > { %v8295_v34 = vpop.eup %8294  ;;  %v7067_v16 = vrot.slane %v8293_v30, %v13555_v6  ;;  %v7120_v28 = vsel %vm7054_vm6, %v7059_v61, 1.0 }
 0x2e4   : > { %v8297_v60 = vpop.eup %8296  ;;  %v7071_v32 = vrot.slane %v8295_v34, %v13555_v6  ;;  %v7121_v62 = vsel %vm7054_vm6, %v7063_v3, 1.0  ;;  %v7136_v8 = vmul.f32 %v7120_v28, %v12167_v44 }
 0x2e5   : > { %v8299_v9 = vpop.eup %8298  ;;  %v7075_v41 = vrot.slane %v8297_v60, %v13555_v6  ;;  %v7122_v42 = vsel %vm7054_vm6, %v7067_v16, 1.0  ;;  %v7137_v52 = vmul.f32 %v7121_v62, %v12169_v27 }
 0x2e6   : > { %v8301_v26 = vpop.eup %8300  ;;  %v7079_v44 = vrot.slane %v8299_v9, %v13555_v6  ;;  %v7123_v21 = vsel %vm7054_vm6, %v7071_v32, 1.0  ;;  %v7138_v57 = vmul.f32 %v7122_v42, %v12171_v22  ;;  %v7248_v12 = vsel %vm12226_vm11, %v7136_v8, 0.0 }
 0x2e7   : > { %v8303_v17 = vpop.eup %8302  ;;  %v7083_v49 = vrot.slane %v8301_v26, %v13555_v6  ;;  %v7124_v27 = vsel %vm7054_vm6, %v7075_v41, 1.0  ;;  %v7139_v36 = vmul.f32 %v7123_v21, %v12173_v24  ;;  %v7249_v51 = vsel %vm12230_vm3, %v7137_v52, 0.0  ;;  %7264 = vst [vmem:[%s12263_s11] sm:$0xff] %v7248_v12 }
 0x2e8   : > { %v7087_v22 = vrot.slane %v8303_v17, %v13555_v6  ;;  %v7125_v50 = vsel %vm7054_vm6, %v7079_v44, 1.0  ;;  %v7140_v39 = vmul.f32 %v7124_v27, %v12175_v45  ;;  %v7250_v24 = vsel %vm12238_vm9, %v7138_v57, 0.0  ;;  %7265 = vst [vmem:[%s12263_s11 + $0x8] sm:$0xff] %v7249_v51 }
 0x2e9   : > { %v7126_v14 = vsel %vm7054_vm6, %v7083_v49, 1.0  ;;  %v7141_v5 = vmul.f32 %v7125_v50, %v12178_v40  ;;  %v7251_v35 = vsel %vm12246_vm12, %v7139_v36, 0.0  ;;  %7266 = vst [vmem:[%s12263_s11 + $0x10] sm:$0xff] %v7250_v24 }
 0x2ea   : > { %v7127_v45 = vsel %vm7054_vm6, %v7087_v22, 1.0  ;;  %v7142_v55 = vmul.f32 %v7126_v14, %v12182_v59  ;;  %v7252_v15 = vsel %vm7236_vm5, %v7140_v39, 0.0  ;;  %7267 = vst [vmem:[%s12263_s11 + $0x18] sm:$0xff] %v7251_v35 }
 0x2eb   : > { %v7143_v20 = vmul.f32 %v7127_v45, %v12185_v56  ;;  %v7253_v25 = vsel %vm7237_vm4, %v7141_v5, 0.0  ;;  %7268 = vst [vmem:[%s12263_s11 + $0x20] sm:$0xff] %v7252_v15 }
 0x2ec   : > { %v7254_v40 = vsel %vm7238_vm14, %v7142_v55, 0.0  ;;  %7269 = vst [vmem:[%s12263_s11 + $0x28] sm:$0xff] %v7253_v25 }
 0x2ed   : > { %v7255_v38 = vsel %vm7239_vm13, %v7143_v20, 0.0  ;;  %7270 = vst [vmem:[%s12263_s11 + $0x30] sm:$0xff] %v7254_v40 }
 0x2ee   : > { %7271 = vst [vmem:[%s12263_s11 + $0x38] sm:$0xff] %v7255_v38 }
 0x300   : > { %v4241_v47 = vpop.f32.mrb[4].mxu0 }
 0x301   : > { %v5899_v43 = vadd.f32 %v4241_v47, %v11899_v2  ;;  %v4243_v61 = vpop.f32.mrb[5].mxu0 }
 0x302   : > { %v5900_v59 = vadd.f32 %v4243_v61, %v11899_v2 }
 0x303   : > { %v4784_v10 = vpop.f32.mrb[4].mxu1  ;;  %5915 = vst [vmem:[#allocation2 + $0x40] sm:$0xff] %v5899_v43 }
 0x304   : > { %v5901_v37 = vadd.f32 %v4784_v10, %v11899_v2  ;;  %v4786_v56 = vpop.f32.mrb[5].mxu1  ;;  %5916 = vst [vmem:[#allocation2 + $0x48] sm:$0xff] %v5900_v59 }
 0x305   : > { %v5902_v30 = vadd.f32 %v4786_v56, %v11899_v2 }
 0x306   : > { %5917 = vst [vmem:[#allocation2 + $0x50] sm:$0xff] %v5901_v37 }
 0x307   : > { %5918 = vst [vmem:[#allocation2 + $0x58] sm:$0xff] %v5902_v30 }
 0x30e   : > { %v6151_v0 = vld [vmem:[#allocation2 + $0x40] ss:$8 sm:$0xf]  ;;  %v6505_v60 = vld [vmem:[#allocation2 + $0x41] ss:$8 sm:$0xf] }
 0x30f   : > { %v6859_v9 = vld [vmem:[#allocation2 + $0x43] ss:$8 sm:$0xf] }
 0x384   : > { %v5327_v3 = vpop.f32.mrb[6].mxu0 }
 0x385   : > { %v5903_v48 = vadd.f32 %v5327_v3, %v11899_v2  ;;  %v5329_v29 = vpop.f32.mrb[7].mxu0 }
 0x386   : > { %v5904_v63 = vadd.f32 %v5329_v29, %v11899_v2  ;;  %v5870_v34 = vpop.f32.mrb[6].mxu1 }
 0x387   : > { %5919 = vst [vmem:[#allocation2 + $0x60] sm:$0xff] %v5903_v48  ;;  %v5905_v16 = vadd.f32 %v5870_v34, %v11899_v2  ;;  %v5872_v28 = vpop.f32.mrb[7].mxu1 }
 0x388   : > { %5920 = vst [vmem:[#allocation2 + $0x68] sm:$0xff] %v5904_v63  ;;  %v5906_v18 = vadd.f32 %v5872_v28, %v11899_v2 }
 0x389   : > { %5921 = vst [vmem:[#allocation2 + $0x70] sm:$0xff] %v5905_v16 }
 0x38a   : > { %5922 = vst [vmem:[#allocation2 + $0x78] sm:$0xff] %v5906_v18 }
 0x391   : > { %v6152_v32 = vld [vmem:[#allocation2 + $0x40] ss:$8 sm:$0xf0]  ;;  %v6506_v62 = vld [vmem:[#allocation2 + $0x41] ss:$8 sm:$0xf0] }
 0x392   : > { %v6153_v8 = vor.u32 %v6152_v32, %v6151_v0  ;;  %v6507_v33 = vor.u32 %v6506_v62, %v6505_v60  ;;  %v6860_v41 = vld [vmem:[#allocation2 + $0x43] ss:$8 sm:$0xf0] }
 0x393   : > { %v6861_v42 = vor.u32 %v6860_v41, %v6859_v9 }
 0x394   : > { %v6271_v52 = vmax.f32 %v6153_v8, %v6267_v19  ;;  %v6625_v7 = vmin.f32 %v6507_v33, %v6621_v23 }
 0x395   : > { %v6979_v2 = vmax.f32 %v6861_v42, %v6975_v1 }
 0x396   : > { %6274 = vst [vmem:[#allocation2 + $0x40] ss:$8 sm:$0xf] %v6271_v52  ;;  %6275 = vst [vmem:[#allocation2 + $0x40] ss:$8 sm:$0xf0] %v6271_v52 }
 0x397   : > { %6628 = vst [vmem:[#allocation2 + $0x41] ss:$8 sm:$0xf] %v6625_v7  ;;  %6629 = vst [vmem:[#allocation2 + $0x41] ss:$8 sm:$0xf0] %v6625_v7 }
 0x398   : > { %6982 = vst [vmem:[#allocation2 + $0x43] ss:$8 sm:$0xf] %v6979_v2  ;;  %6983 = vst [vmem:[#allocation2 + $0x43] ss:$8 sm:$0xf0] %v6979_v2 }
 0x39f   : > { %v12305_v26 = vld [vmem:[#allocation2 + $0x40] sm:$0xff]  ;;  %v12307_v44 = vld [vmem:[#allocation2 + $0x48] sm:$0xff]  ;;  %v12309_v4 = vld [vmem:[#allocation2 + $0x50] sm:$0xff] }
 0x3a0   : > { %v12311_v13 = vld [vmem:[#allocation2 + $0x58] sm:$0xff]  ;;  %v12313_v19 = vld [vmem:[#allocation2 + $0x60] sm:$0xff]  ;;  %v7027_v54 = vmax.f32 %v12305_v26, 1.0  ;;  %v12316_v53 = vld [vmem:[#allocation2 + $0x68] sm:$0xff]  ;;  %v7028_v23 = vmax.f32 %v12307_v44, 1.0  ;;  %v7029_v11 = vmax.f32 %v12309_v4, 1.0 }
 0x3a1   : > { %v12320_v46 = vld [vmem:[#allocation2 + $0x70] sm:$0xff]  ;;  %v7030_v1 = vmax.f32 %v12311_v13, 1.0  ;;  %v12323_v21 = vld [vmem:[#allocation2 + $0x78] sm:$0xff]  ;;  %v7031_v57 = vmax.f32 %v12313_v19, 1.0  ;;  %v7032_v12 = vmax.f32 %v12316_v53, 1.0  ;;  %vm7011_vm15 = vcmp.gt.f32.partialorder %v12305_v26, 0.0 }
 0x3a2   : > { %8304 = vrcp.f32 %v7027_v54  ;;  %v7033_v17 = vmax.f32 %v12320_v46, 1.0  ;;  %vm7012_vm8 = vcmp.gt.f32.partialorder %v12307_v44, 0.0  ;;  %v7034_v49 = vmax.f32 %v12323_v21, 1.0 }
 0x3a3   : > { %8306 = vrcp.f32 %v7028_v23  ;;  %vm7013_vm1 = vcmp.gt.f32.partialorder %v12309_v4, 0.0  ;;  %vm7014_vm2 = vcmp.gt.f32.partialorder %v12311_v13, 0.0  ;;  %vm7015_vm7 = vcmp.gt.f32.partialorder %v12313_v19, 0.0 }
 0x3a4   : > { %8308 = vrcp.f32 %v7029_v11  ;;  %vm7016_vm10 = vcmp.gt.f32.partialorder %v12316_v53, 0.0  ;;  %vm7017_vm0 = vcmp.gt.f32.partialorder %v12320_v46, 0.0  ;;  %vm7018_vm11 = vcmp.gt.f32.partialorder %v12323_v21, 0.0 }
 0x3a5   : > { %8310 = vrcp.f32 %v7030_v1  ;;  %v7160_v27 = vsel %vm7011_vm15, 1, %v13554_v31  ;;  %v7161_v36 = vsel %vm7012_vm8, 1, %v13554_v31  ;;  %v7162_v51 = vsel %vm7013_vm1, 1, %v13554_v31 }
 0x3a6   : > { %8312 = vrcp.f32 %v7031_v57  ;;  %v7163_v22 = vsel %vm7014_vm2, 1, %v13554_v31  ;;  %v7164_v50 = vsel %vm7015_vm7, 1, %v13554_v31  ;;  %v7165_v39 = vsel %vm7016_vm10, 1, %v13554_v31 }
 0x3a7   : > { %8314 = vrcp.f32 %v7032_v12  ;;  %v7166_v24 = vsel %vm7017_vm0, 1, %v13554_v31  ;;  %v12345_v14 = vsel %vm7018_vm11, 1, %v13554_v31  ;;  %v7203_v5 = vrot.slane %v7160_v27, %v13555_v6 }
 0x3a8   : > { %8316 = vrcp.f32 %v7033_v17  ;;  %v7207_v35 = vrot.slane %v7161_v36, %v13555_v6  ;;  %v7211_v55 = vrot.slane %v7162_v51, %v13555_v6  ;;  %v7215_v25 = vrot.slane %v7163_v22, %v13555_v6 }
 0x3a9   : > { %8318 = vrcp.f32 %v7034_v49  ;;  %v7219_v40 = vrot.slane %v7164_v50, %v13555_v6  ;;  %v7223_v47 = vrot.slane %v7165_v39, %v13555_v6  ;;  %v7227_v43 = vrot.slane %v7166_v24, %v13555_v6 }
 0x3aa   : > { %v7231_v61 = vrot.slane %v12345_v14, %v13555_v6  ;;  %vm12361_vm3 = vcmp.eq.s32.totalorder %v7203_v5, 1  ;;  %vm12365_vm9 = vcmp.eq.s32.totalorder %v7207_v35, 1  ;;  %vm12375_vm12 = vcmp.eq.s32.totalorder %v7211_v55, 1 }
 0x3ab   : > { %vm12383_vm5 = vcmp.eq.s32.totalorder %v7215_v25, 1  ;;  %vm7244_vm4 = vcmp.eq.s32.totalorder %v7219_v40, 1  ;;  %vm7245_vm14 = vcmp.eq.s32.totalorder %v7223_v47, 1  ;;  %vm7246_vm13 = vcmp.eq.s32.totalorder %v7227_v43, 1 }
 0x3ac   : > { %v8305_v45 = vpop.eup %8304  ;;  %vm7247_vm15 = vcmp.eq.s32.totalorder %v7231_v61, 1 }
 0x3ad   : > { %v8307_v15 = vpop.eup %8306  ;;  %v7091_v20 = vrot.slane %v8305_v45, %v13555_v6 }
 0x3ae   : > { %v8309_v38 = vpop.eup %8308  ;;  %v7095_v31 = vrot.slane %v8307_v15, %v13555_v6 }
 0x3af   : > { %v8311_v10 = vpop.eup %8310  ;;  %v7099_v59 = vrot.slane %v8309_v38, %v13555_v6  ;;  %v7128_v37 = vsel %vm7054_vm6, %v7091_v20, 1.0 }
 0x3b0   : > { %v8313_v3 = vpop.eup %8312  ;;  %v7103_v48 = vrot.slane %v8311_v10, %v13555_v6  ;;  %v7129_v29 = vsel %vm7054_vm6, %v7095_v31, 1.0  ;;  %v7144_v63 = vmul.f32 %v7128_v37, %v12305_v26 }
 0x3b1   : > { %v8315_v16 = vpop.eup %8314  ;;  %v7107_v28 = vrot.slane %v8313_v3, %v13555_v6  ;;  %v7130_v18 = vsel %vm7054_vm6, %v7099_v59, 1.0  ;;  %v7145_v0 = vmul.f32 %v7129_v29, %v12307_v44 }
 0x3b2   : > { %v8317_v32 = vpop.eup %8316  ;;  %v7111_v62 = vrot.slane %v8315_v16, %v13555_v6  ;;  %v7131_v8 = vsel %vm7054_vm6, %v7103_v48, 1.0  ;;  %v7146_v33 = vmul.f32 %v7130_v18, %v12309_v4  ;;  %v7256_v9 = vsel %vm12361_vm3, %v7144_v63, 0.0 }
 0x3b3   : > { %v8319_v41 = vpop.eup %8318  ;;  %v7115_v42 = vrot.slane %v8317_v32, %v13555_v6  ;;  %v7132_v52 = vsel %vm7054_vm6, %v7107_v28, 1.0  ;;  %v7147_v7 = vmul.f32 %v7131_v8, %v12311_v13  ;;  %v7257_v2 = vsel %vm12365_vm9, %v7145_v0, 0.0  ;;  %7272 = vst [vmem:[%s12263_s11 + $0x40] sm:$0xff] %v7256_v9 }
 0x3b4   : > { %v7119_v26 = vrot.slane %v8319_v41, %v13555_v6  ;;  %v7133_v44 = vsel %vm7054_vm6, %v7111_v62, 1.0  ;;  %v7148_v4 = vmul.f32 %v7132_v52, %v12313_v19  ;;  %v7258_v54 = vsel %vm12375_vm12, %v7146_v33, 0.0  ;;  %7273 = vst [vmem:[%s12263_s11 + $0x48] sm:$0xff] %v7257_v2 }
 0x3b5   : > { %v7134_v13 = vsel %vm7054_vm6, %v7115_v42, 1.0  ;;  %v7149_v23 = vmul.f32 %v7133_v44, %v12316_v53  ;;  %v7259_v6 = vsel %vm12383_vm5, %v7147_v7, 0.0  ;;  %7274 = vst [vmem:[%s12263_s11 + $0x50] sm:$0xff] %v7258_v54 }
 0x3b6   : > { %v7135_v19 = vsel %vm7054_vm6, %v7119_v26, 1.0  ;;  %v7150_v11 = vmul.f32 %v7134_v13, %v12320_v46  ;;  %v7260_v1 = vsel %vm7244_vm4, %v7148_v4, 0.0  ;;  %7275 = vst [vmem:[%s12263_s11 + $0x58] sm:$0xff] %v7259_v6 }
 0x3b7   : > { %v7151_v53 = vmul.f32 %v7135_v19, %v12323_v21  ;;  %v7261_v57 = vsel %vm7245_vm14, %v7149_v23, 0.0  ;;  %7276 = vst [vmem:[%s12263_s11 + $0x60] sm:$0xff] %v7260_v1 }
 0x3b8   : > { %v7262_v12 = vsel %vm7246_vm13, %v7150_v11, 0.0  ;;  %7277 = vst [vmem:[%s12263_s11 + $0x68] sm:$0xff] %v7261_v57 }
 0x3b9   : > { %v7263_v58 = vsel %vm7247_vm15, %v7151_v53, 0.0  ;;  %7278 = vst [vmem:[%s12263_s11 + $0x70] sm:$0xff] %v7262_v12 }
 0x3ba   : > { %7279 = vst [vmem:[%s12263_s11 + $0x78] sm:$0xff] %v7263_v58 }
 0x3bb   : > { %8363 = shalt.err (!%p8360_p3)
}
 0x3bc   : > { %s8364_s29 = scalar_lea.hbm %s12427_s4, 2048  ;;  %s8368_s18 = scalar_lea.hbm %s12496_s3, 8192 }
 0x3bd   : > { %p8365_p12 = scmp.ne.s32.totalorder %s12427_s4, %s8364_s29  ;;  %p8369_p6 = scmp.lt.u32.totalorder %s12427_s4, %s12496_s3 }
 0x3be   : > { %p8370_p9 = scmp.lt.u32.totalorder %s8368_s18, %s8364_s29  ;;  %p8372_p8 = scmp.lt.u32.totalorder %s8364_s29, %s12427_s4 }
 0x3bf   : > { %p8366_p0 = pnand %p8365_p12, %p13573_p2 }
 0x3c0   : > { %p8371_p13 = por %p8370_p9, %p8369_p6 }
 0x3c1   : > { %p8367_p5 = pneg %p8366_p0 }
 0x3c2   : > { %p8373_p4 = por %p8372_p8, %p8371_p13 }
 0x3c4   : > { %p8374_p11 = pnand %p8373_p4, %p8367_p5 }
 0x3c6   : > { %8377 = shalt.err (!%p8374_p11)
}
 0x3c7   : > { %8160 = dma.vmem_to_hbm [thread:$0]  (%p13573_p2), %s12429_s24, 2048, %s12427_s4, %s7281_s5  }
 0x3c8 PF: > { %p8171_p1 = scmp.ge.s32.totalorder %s8472_s22, 2  ;;  %s7309_s15 = sand.u32 1, %s8432_s12  }
 0x3c9   : > { %p13574_p7 = scmp.ne.s32.totalorder %s12872_s10, 0  ;;  %s7310_s26 = scalar_lea.sflag [#allocation5], %s7309_s15 }
 0x3cb   : > { %p8167_p10 = pnand %p8171_p1, %p13574_p7 }
 0x3cd   : > { %8427 = dma.done.wait (!%p8167_p10), %s7310_s26, 2048  }
 0x3ce   : > { %8429 = vsyncadd (!%p8167_p10), %s7310_s26, 4294965248  ;;  %s19_s22 = sadd.s32 1, %s8472_s22   ;;  %s13575_s9 = sld [smem:[#allocation9_spill]] }
 0x3cf   : > { %p16_p3 = scmp.ge.s32.totalorder %s19_s22, 6   ;;  %s13576_s12 = smov %s8436_s13 }
 0x3d0   : > { %s13577_s13 = smov %s8440_s14  ;;  %s13578_s14 = smov %s8594_s8 }
 0x3d1   : > { %s13579_s15 = smov %s8448_s16  ;;  %s13580_s16 = smov %s8452_s17 }
 0x3d2   : > { %s13581_s17 = smov %s8580_s30  ;;  %s13582_s18 = smov %s8464_s20 }
 0x3d3   : > { %s13583_s19 = smov %s8468_s21  ;;  %s13584_s20 = smov %s13587_s25 }
 0x3d4   : > { %s13585_s21 = smov %s13575_s9  ;;  %18 = sbr.rel (!%p16_p3) target bundleno = 9 (0x9), region = 96 }
 0x3db   :  { %7315 = vsyncpa [#allocation4], 1 }
 0x3dc   :  { %7317 = vsyncpa [#allocation4 + $0x1], 1 }
 0x3dd   :  { %7318 = vsyncpa [#allocation5], 1 }
 0x3de   :  { %7320 = vsyncpa [#allocation5 + $0x1], 1 }

</bundles_post_ra>
